<compile_context>
chip_gen: v5e
topology: v5e:2x2
jax: 0.10.0
libtpu: 0.0.40
codegen_flags: <defaults>
</compile_context>

<pallas_src>
import numpy as np

import jax
import jax.numpy as jnp
from jax.experimental import pallas as pl
from jax.experimental.pallas import tpu as pltpu

_LANES = 128
_BF16 = jnp.bfloat16
_F32 = jnp.float32


# ------------------------------- fused kernel --------------------------------

def _resnet_bottom_kernel(
    x_stem_ref,   # (1, 608, 24) bf16 : stem LHS, kw*cin folded into K, even/odd-h phases
    w_stem_ref,   # (7, 24, 128) bf16 : one K=24 weight slab per kh tap
    w_blk_ref,    # (36, 128, 128) bf16 : [l1.conv1, l1.conv2, l2.conv1, l2.conv2] x 9 taps
    w_dn_ref,     # (128, 128) bf16 : 1x1/s2 downsample
    s_sel_ref,    # (160, 104) bf16 : constant 0/1 selection matrix (phases + downsample)
    scale_ref,    # (6, 128) f32 : folded BN scales [stem, l1.bn1, l1.bn2, l2.bn1, l2.bn2, l2.dn]
    bias_ref,     # (6, 128) f32 : folded BN biases
    mcol10_ref,   # (80, 1) f32 : 1 for valid wide-output columns (width-10 layout)
    mcol6_ref,    # (24, 1) f32 : 1 for valid wide-output columns (width-6 layout)
    mrow8_ref,    # (8, 1) f32 : zeroes row 0 (maxpool left-border term)
    o_ref,        # (1, 1, 128) f32 : pooled features for this image
    stem_ref,     # (256, 128) f32 scratch : stem output, row = 16*oy + column-slot
    b1in_ref,     # (104, 128) f32 scratch : maxpool output, zero-padded (10,10) flat
    h1pad_ref,    # (104, 128) f32 scratch : block1 conv1 output, padded (10,10) flat
    y1pad_ref,    # (104, 128) f32 scratch : block1 output, padded (10,10) flat
    y1sel_ref,    # (160, 128) f32 scratch : 4 stride-2 phase blocks + downsample rows
    h2pad_ref,    # (48, 128) f32 scratch : block2 conv1 output, padded (6,6) flat
):
    f32, bf16 = jnp.float32, jnp.bfloat16

    def bn(k):
        return scale_ref[pl.ds(k, 1), :], bias_ref[pl.ds(k, 1), :]

    # Zero the zero-padded feature scratches (they persist across grid steps).
    b1in_ref[...] = jnp.zeros(b1in_ref.shape, f32)
    h1pad_ref[...] = jnp.zeros(h1pad_ref.shape, f32)
    y1pad_ref[...] = jnp.zeros(y1pad_ref.shape, f32)
    h2pad_ref[...] = jnp.zeros(h2pad_ref.shape, f32)

    # ---------------- Stem: 7x7 / stride-2 conv + folded BN + ReLU ----------------
    # x_stem rows: [even-h phase (304 rows) | odd-h phase (304 rows)];
    # row within a phase = 16*h_half + j, where column slot j holds output-x in the order
    # [0,2,...,14,1,3,...,15]; lanes = kw*cin (21 real, padded to 24).
    s0, b0 = bn(0)
    for m in range(2):                                   # M tiled: 2 chunks of 128 rows
        acc = jnp.zeros((128, 128), f32)
        for dh in range(7):
            base = 16 * (dh // 2) + (0 if dh % 2 == 0 else 304)
            lhs = x_stem_ref[0, pl.ds(base + 128 * m, 128), :]
            acc = acc + jnp.dot(lhs, w_stem_ref[dh], preferred_element_type=f32)
        stem_ref[pl.ds(128 * m, 128), :] = jnp.maximum(acc * s0 + b0, 0.0)

    # ---------------- MaxPool 3x3 / stride 2 (fused, VMEM resident) ----------------
    # Zero-padding is exact here because the stem output is post-ReLU (>= 0).
    mrow8 = mrow8_ref[...]
    for py in range(8):
        vert = jnp.maximum(stem_ref[pl.ds(32 * py, 16), :],        # stem row y = 2*py
                           stem_ref[pl.ds(32 * py + 16, 16), :])   # y = 2*py + 1
        if py > 0:
            vert = jnp.maximum(vert, stem_ref[pl.ds(32 * py - 16, 16), :])  # y = 2*py - 1
        # slots 0..7 = even x, 8..15 = odd x  =>  window {2px-1, 2px, 2px+1} is contiguous.
        pooled = jnp.maximum(jnp.maximum(vert[0:8, :], vert[8:16, :]),
                             vert[7:15, :] * mrow8)
        b1in_ref[pl.ds(10 * py + 11, 8), :] = pooled                # padded (py+1, 1..8)

    # ------------------------- BasicBlock 1 (stride 1) -------------------------
    taps10 = tuple(10 * dy + dx for dy in range(3) for dx in range(3))
    mcol10 = mcol10_ref[...]

    s1, c1b = bn(1)
    acc = jnp.zeros((80, 128), f32)
    for t, off in enumerate(taps10):
        acc = acc + jnp.dot(b1in_ref[pl.ds(off, 80), :].astype(bf16),
                            w_blk_ref[t], preferred_element_type=f32)
    h1pad_ref[pl.ds(11, 80), :] = jnp.maximum(acc * s1 + c1b, 0.0) * mcol10

    s2, c2b = bn(2)
    acc = jnp.zeros((80, 128), f32)
    for t, off in enumerate(taps10):
        acc = acc + jnp.dot(h1pad_ref[pl.ds(off, 80), :].astype(bf16),
                            w_blk_ref[9 + t], preferred_element_type=f32)
    resid = b1in_ref[pl.ds(11, 80), :]                               # identity, wide-aligned
    y1pad_ref[pl.ds(11, 80), :] = jnp.maximum(acc * s2 + c2b + resid, 0.0) * mcol10

    # One MXU "gather": padded block-1 output -> the 4 stride-2 phase blocks (for the
    # 3x3/s2 conv) and the 1x1/s2 downsample rows, via a constant 0/1 selection matrix.
    y1sel_ref[...] = jnp.dot(s_sel_ref[...], y1pad_ref[...].astype(bf16),
                             preferred_element_type=f32)

    # -------------------- BasicBlock 2 (stride 2 + downsample) --------------------
    mcol6 = mcol6_ref[...]
    s3, c3b = bn(3)
    acc = jnp.zeros((24, 128), f32)
    t = 0
    for dy in range(3):
        for dx in range(3):
            ph = (dy % 2) * 2 + (dx % 2)
            start = 32 * ph + (dy // 2) * 6 + (dx // 2)
            acc = acc + jnp.dot(y1sel_ref[pl.ds(start, 24), :].astype(bf16),
                                w_blk_ref[18 + t], preferred_element_type=f32)
            t += 1
    h2pad_ref[pl.ds(7, 24), :] = jnp.maximum(acc * s3 + c3b, 0.0) * mcol6

    taps6 = tuple(6 * dy + dx for dy in range(3) for dx in range(3))
    s4, c4b = bn(4)
    acc = jnp.zeros((24, 128), f32)
    for t, off in enumerate(taps6):
        acc = acc + jnp.dot(h2pad_ref[pl.ds(off, 24), :].astype(bf16),
                            w_blk_ref[27 + t], preferred_element_type=f32)
    y2 = acc * s4 + c4b

    s5, c5b = bn(5)
    ds = jnp.dot(y1sel_ref[pl.ds(128, 24), :].astype(bf16), w_dn_ref[...],
                 preferred_element_type=f32) * s5 + c5b

    # residual add + ReLU + global average pool (junk wide-columns excluded by the mask).
    out = jnp.maximum(y2 + ds, 0.0)
    o_ref[0] = jnp.sum(out * (mcol6 * (1.0 / 16.0)), axis=0, keepdims=True)


# ----------------------------- wrapper / packing ------------------------------

def _fold_bn(b, eps=1e-5):
    scale = b["gamma"] / jnp.sqrt(b["var"] + eps)
    bias = b["beta"] - b["mean"] * scale
    c = scale.shape[0]
    scale = jnp.pad(scale, (0, _LANES - c), constant_values=1.0)
    bias = jnp.pad(bias, (0, _LANES - c))
    return scale.astype(_F32), bias.astype(_F32)


def _pack_stem_w(w):
    kh, kw, cin, cout = w.shape                       # (7, 7, 3, c1)
    wp = jnp.pad(w.reshape(kh, kw * cin, cout),
                 ((0, 0), (0, 24 - kw * cin), (0, _LANES - cout)))
    return wp.astype(_BF16)                           # (7, 24, 128)


def _pack_blk_w(w):
    kh, kw, cin, cout = w.shape                       # (3, 3, cin, cout)
    return jnp.pad(w.reshape(kh * kw, cin, cout),
                   ((0, 0), (0, _LANES - cin), (0, _LANES - cout)))   # (9, 128, 128)


def _pack_down_w(w):
    cin, cout = w.shape[2], w.shape[3]
    return jnp.pad(w[0, 0], ((0, _LANES - cin), (0, _LANES - cout)))  # (128, 128)


def _build_stem_lhs(x_nhwc):
    """Stem LHS: kw*cin folded into lanes, output-x reordered [evens|odds], h phase-split."""
    n = x_nhwc.shape[0]
    xp = jnp.pad(x_nhwc, ((0, 0), (3, 3), (3, 3), (0, 0)))           # (N, 38, 38, 3)
    order = np.concatenate([np.arange(0, 16, 2), np.arange(1, 16, 2)])
    slabs = [xp[:, :, dw:dw + 32:2, :][:, :, order, :] for dw in range(7)]
    xs = jnp.concatenate(slabs, axis=-1)                             # (N, 38, 16, 21)
    xs = jnp.pad(xs, ((0, 0), (0, 0), (0, 0), (0, 3)))               # (N, 38, 16, 24)
    even = xs[:, 0::2].reshape(n, 304, 24)
    odd = xs[:, 1::2].reshape(n, 304, 24)
    return jnp.concatenate([even, odd], axis=1).astype(_BF16)        # (N, 608, 24)


def _selection_matrix():
    """(160,104) 0/1 matrix: padded-(10,10) block1 output -> 4 s2 phase blocks + ds rows."""
    s = np.zeros((160, 104), np.float32)
    for p in range(2):
        for q in range(2):
            blk = 32 * (2 * p + q)
            for i in range(5):
                for j in range(5):
                    s[blk + 6 * i + j, (2 * i + p) * 10 + (2 * j + q)] = 1.0
    for py in range(4):
        for px in range(4):
            s[128 + 6 * py + px, (2 * py + 1) * 10 + (2 * px + 1)] = 1.0
    return s


def resnet_bottom_forward(params, x_nchw):
    """Equivalent of ResNetBottom.forward: features(x) then torch.flatten(x, 1)."""
    n, cin, h, w = x_nchw.shape
    assert (cin, h, w) == (3, 32, 32), "kernel is specialized for 3x32x32 inputs"
    c2 = params["layer2"]["conv2_w"].shape[-1]

    x = jnp.transpose(x_nchw, (0, 2, 3, 1)).astype(_F32)             # NCHW -> NHWC
    x_stem = _build_stem_lhs(x)
    w_stem = _pack_stem_w(params["conv1_w"])
    w_blk = jnp.concatenate([
        _pack_blk_w(params["layer1"]["conv1_w"]),
        _pack_blk_w(params["layer1"]["conv2_w"]),
        _pack_blk_w(params["layer2"]["conv1_w"]),
        _pack_blk_w(params["layer2"]["conv2_w"]),
    ], axis=0).astype(_BF16)                                          # (36, 128, 128)
    w_dn = _pack_down_w(params["layer2"]["down_w"]).astype(_BF16)
    s_sel = jnp.asarray(_selection_matrix(), _BF16)

    folds = [_fold_bn(params["bn1"]),
             _fold_bn(params["layer1"]["bn1"]), _fold_bn(params["layer1"]["bn2"]),
             _fold_bn(params["layer2"]["bn1"]), _fold_bn(params["layer2"]["bn2"]),
             _fold_bn(params["layer2"]["down_bn"])]
    scales = jnp.stack([f[0] for f in folds], axis=0)                 # (6, 128)
    biases = jnp.stack([f[1] for f in folds], axis=0)                 # (6, 128)

    mcol10 = jnp.asarray((np.arange(80) % 10 < 8).astype(np.float32).reshape(80, 1))
    mcol6 = jnp.asarray((np.arange(24) % 6 < 4).astype(np.float32).reshape(24, 1))
    mrow8 = jnp.asarray((np.arange(8) >= 1).astype(np.float32).reshape(8, 1))

    def full(shape):
        return pl.BlockSpec(shape, lambda i, _r=len(shape): (0,) * _r)

    out = pl.pallas_call(
        _resnet_bottom_kernel,
        grid=(n,),
        in_specs=[
            pl.BlockSpec((1, 608, 24), lambda i: (i, 0, 0)),
            full((7, 24, 128)),
            full((36, 128, 128)),
            full((128, 128)),
            full((160, 104)),
            full((6, 128)),
            full((6, 128)),
            full((80, 1)),
            full((24, 1)),
            full((8, 1)),
        ],
        out_specs=pl.BlockSpec((1, 1, 128), lambda i: (i, 0, 0)),
        out_shape=jax.ShapeDtypeStruct((n, 1, 128), _F32),
        scratch_shapes=[
            pltpu.VMEM((256, 128), _F32),   # stem output
            pltpu.VMEM((104, 128), _F32),   # maxpool output (padded 10x10)
            pltpu.VMEM((104, 128), _F32),   # block1 conv1 output (padded 10x10)
            pltpu.VMEM((104, 128), _F32),   # block1 output (padded 10x10)
            pltpu.VMEM((160, 128), _F32),   # stride-2 phase blocks + downsample rows
            pltpu.VMEM((48, 128), _F32),    # block2 conv1 output (padded 6x6)
        ],
        compiler_params=pltpu.CompilerParams(
            dimension_semantics=("parallel",),
            vmem_limit_bytes=32 * 1024 * 1024,
        ),
    )(x_stem, w_stem, w_blk, w_dn, s_sel, scales, biases, mcol10, mcol6, mrow8)
    return out[:, 0, :c2]                                             # flatten(avgpool(features))


# ----------------------------- deterministic params --------------------------

def _init_bn(key, c):
    k1, k2, k3, k4 = jax.random.split(key, 4)
    return {
        "gamma": 1.0 + 0.1 * jax.random.normal(k1, (c,), jnp.float32),
        "beta": 0.1 * jax.random.normal(k2, (c,), jnp.float32),
        "mean": 0.05 * jax.random.normal(k3, (c,), jnp.float32),
        "var": 1.0 + 0.1 * jnp.abs(jax.random.normal(k4, (c,), jnp.float32)),
    }


def _init_conv(key, kh, kw, cin, cout):
    fan_in = kh * kw * cin
    return jax.random.normal(key, (kh, kw, cin, cout), jnp.float32) * (2.0 / fan_in) ** 0.5


def init_params(key, c1=16, c2=32):
    ks = jax.random.split(key, 12)
    return {
        "conv1_w": _init_conv(ks[0], 7, 7, 3, c1),
        "bn1": _init_bn(ks[1], c1),
        "layer1": {
            "conv1_w": _init_conv(ks[2], 3, 3, c1, c1),
            "bn1": _init_bn(ks[3], c1),
            "conv2_w": _init_conv(ks[4], 3, 3, c1, c1),
            "bn2": _init_bn(ks[5], c1),
        },
        "layer2": {
            "conv1_w": _init_conv(ks[6], 3, 3, c1, c2),
            "bn1": _init_bn(ks[7], c2),
            "conv2_w": _init_conv(ks[8], 3, 3, c2, c2),
            "bn2": _init_bn(ks[9], c2),
            "down_w": _init_conv(ks[10], 1, 1, c1, c2),
            "down_bn": _init_bn(ks[11], c2),
        },
    }


# ----------------------------- pure-JAX f32 reference -------------------------

def _ref_forward(params, x_nchw):
    hi = jax.lax.Precision.HIGHEST

    def conv(x, w, stride, pad):
        return jax.lax.conv_general_dilated(
            x, w, (stride, stride), [(pad, pad), (pad, pad)],
            dimension_numbers=("NHWC", "HWIO", "NHWC"), precision=hi)

    def bn(x, b, eps=1e-5):
        s = b["gamma"] / jnp.sqrt(b["var"] + eps)
        return x * s + (b["beta"] - b["mean"] * s)

    x = jnp.transpose(x_nchw, (0, 2, 3, 1)).astype(jnp.float32)
    y = jax.nn.relu(bn(conv(x, params["conv1_w"], 2, 3), params["bn1"]))
    y = jax.lax.reduce_window(y, -jnp.inf, jax.lax.max, (1, 3, 3, 1), (1, 2, 2, 1),
                              [(0, 0), (1, 1), (1, 1), (0, 0)])
    p = params["layer1"]
    h = jax.nn.relu(bn(conv(y, p["conv1_w"], 1, 1), p["bn1"]))
    h = bn(conv(h, p["conv2_w"], 1, 1), p["bn2"])
    y = jax.nn.relu(h + y)
    p = params["layer2"]
    h = jax.nn.relu(bn(conv(y, p["conv1_w"], 2, 1), p["bn1"]))
    h = bn(conv(h, p["conv2_w"], 1, 1), p["bn2"])
    sc = bn(conv(y, p["down_w"], 2, 0), p["down_bn"])
    y = jax.nn.relu(h + sc)
    return jnp.mean(y, axis=(1, 2))


if __name__ == "__main__":
    key = jax.random.PRNGKey(0)
    pkey, xkey = jax.random.split(key)
    params = init_params(pkey)

    # Small NCHW input, matching the PyTorch module's convention.
    x = jax.random.normal(xkey, (2, 3, 32, 32), jnp.float32)

    fwd = jax.jit(lambda xx: resnet_bottom_forward(params, xx))
    out = jax.block_until_ready(fwd(x))

    assert out.shape == (2, 32), out.shape
    assert out.dtype == jnp.float32
    assert bool(jnp.all(jnp.isfinite(out)))

    # Validate against an f32 XLA reference (loose tolerance: bf16 MXU inputs).
    ref = jax.block_until_ready(jax.jit(lambda xx: _ref_forward(params, xx))(x))
    np.testing.assert_allclose(np.asarray(out, np.float32), np.asarray(ref, np.float32),
                               rtol=0.1, atol=0.1)
    print("KERNEL_OK")
</pallas_src>

<mosaic_0001>
module attributes {stable_mosaic.version = 11 : i64} {
  func.func @_resnet_bottom_kernel(%arg0: i32, %arg1: memref<1x608x24xbf16, #tpu.memory_space<vmem>>, %arg2: memref<7x24x128xbf16, #tpu.memory_space<vmem>>, %arg3: memref<36x128x128xbf16, #tpu.memory_space<vmem>>, %arg4: memref<128x128xbf16, #tpu.memory_space<vmem>>, %arg5: memref<160x104xbf16, #tpu.memory_space<vmem>>, %arg6: memref<6x128xf32, #tpu.memory_space<vmem>>, %arg7: memref<6x128xf32, #tpu.memory_space<vmem>>, %arg8: memref<80x1xf32, #tpu.memory_space<vmem>>, %arg9: memref<24x1xf32, #tpu.memory_space<vmem>>, %arg10: memref<8x1xf32, #tpu.memory_space<vmem>>, %arg11: memref<1x1x128xf32, #tpu.memory_space<vmem>>, %arg12: memref<256x128xf32, #tpu.memory_space<vmem>>, %arg13: memref<104x128xf32, #tpu.memory_space<vmem>>, %arg14: memref<104x128xf32, #tpu.memory_space<vmem>>, %arg15: memref<104x128xf32, #tpu.memory_space<vmem>>, %arg16: memref<160x128xf32, #tpu.memory_space<vmem>>, %arg17: memref<48x128xf32, #tpu.memory_space<vmem>>) attributes {dimension_semantics = [#tpu.dimension_semantics<parallel>], iteration_bounds = array<i64: 2>, scalar_prefetch = 0 : i64, scratch_operands = 6 : i64, tpu.core_type = #tpu.core_type<tc>, window_params = [{transform_indices = @transform_0, window_bounds = array<i64: 1, 608, 24>}, {pipeline_mode = #tpu.pipeline_mode<synchronous>, transform_indices = @transform_1, window_bounds = array<i64: 7, 24, 128>}, {pipeline_mode = #tpu.pipeline_mode<synchronous>, transform_indices = @transform_2, window_bounds = array<i64: 36, 128, 128>}, {pipeline_mode = #tpu.pipeline_mode<synchronous>, transform_indices = @transform_3, window_bounds = array<i64: 128, 128>}, {pipeline_mode = #tpu.pipeline_mode<synchronous>, transform_indices = @transform_4, window_bounds = array<i64: 160, 104>}, {pipeline_mode = #tpu.pipeline_mode<synchronous>, transform_indices = @transform_5, window_bounds = array<i64: 6, 128>}, {pipeline_mode = #tpu.pipeline_mode<synchronous>, transform_indices = @transform_6, window_bounds = array<i64: 6, 128>}, {pipeline_mode = #tpu.pipeline_mode<synchronous>, transform_indices = @transform_7, window_bounds = array<i64: 80, 1>}, {pipeline_mode = #tpu.pipeline_mode<synchronous>, transform_indices = @transform_8, window_bounds = array<i64: 24, 1>}, {pipeline_mode = #tpu.pipeline_mode<synchronous>, transform_indices = @transform_9, window_bounds = array<i64: 8, 1>}, {transform_indices = @transform_10, window_bounds = array<i64: 1, 1, 128>}]} {
    %cst = arith.constant 0.000000e+00 : f32
    %0 = vector.broadcast %cst : f32 to vector<104x128xf32>
    %c0 = arith.constant 0 : index
    %c0_0 = arith.constant 0 : index
    %1 = vector.load %arg13[%c0, %c0_0] : memref<104x128xf32, #tpu.memory_space<vmem>>, vector<104x128xf32>
    tpu.vector_store %arg13[%c0, %c0_0], %0 {strides = array<i32>} : memref<104x128xf32, #tpu.memory_space<vmem>>, vector<104x128xf32>,
    %cst_1 = arith.constant 0.000000e+00 : f32
    %2 = vector.broadcast %cst_1 : f32 to vector<104x128xf32>
    %c0_2 = arith.constant 0 : index
    %c0_3 = arith.constant 0 : index
    %3 = vector.load %arg14[%c0_2, %c0_3] : memref<104x128xf32, #tpu.memory_space<vmem>>, vector<104x128xf32>
    tpu.vector_store %arg14[%c0_2, %c0_3], %2 {strides = array<i32>} : memref<104x128xf32, #tpu.memory_space<vmem>>, vector<104x128xf32>,
    %cst_4 = arith.constant 0.000000e+00 : f32
    %4 = vector.broadcast %cst_4 : f32 to vector<104x128xf32>
    %c0_5 = arith.constant 0 : index
    %c0_6 = arith.constant 0 : index
    %5 = vector.load %arg15[%c0_5, %c0_6] : memref<104x128xf32, #tpu.memory_space<vmem>>, vector<104x128xf32>
    tpu.vector_store %arg15[%c0_5, %c0_6], %4 {strides = array<i32>} : memref<104x128xf32, #tpu.memory_space<vmem>>, vector<104x128xf32>,
    %cst_7 = arith.constant 0.000000e+00 : f32
    %6 = vector.broadcast %cst_7 : f32 to vector<48x128xf32>
    %c0_8 = arith.constant 0 : index
    %c0_9 = arith.constant 0 : index
    %7 = vector.load %arg17[%c0_8, %c0_9] : memref<48x128xf32, #tpu.memory_space<vmem>>, vector<48x128xf32>
    tpu.vector_store %arg17[%c0_8, %c0_9], %6 {strides = array<i32>} : memref<48x128xf32, #tpu.memory_space<vmem>>, vector<48x128xf32>,
    %c0_10 = arith.constant 0 : index
    %c0_11 = arith.constant 0 : index
    %8 = vector.load %arg6[%c0_10, %c0_11] : memref<6x128xf32, #tpu.memory_space<vmem>>, vector<1x128xf32>
    %c0_12 = arith.constant 0 : index
    %c0_13 = arith.constant 0 : index
    %9 = vector.load %arg7[%c0_12, %c0_13] : memref<6x128xf32, #tpu.memory_space<vmem>>, vector<1x128xf32>
    %cst_14 = arith.constant 0.000000e+00 : f32
    %10 = vector.broadcast %cst_14 : f32 to vector<128x128xf32>
    %c0_15 = arith.constant 0 : index
    %c0_16 = arith.constant 0 : index
    %c0_17 = arith.constant 0 : index
    %11 = vector.load %arg1[%c0_15, %c0_16, %c0_17] : memref<1x608x24xbf16, #tpu.memory_space<vmem>>, vector<1x128x24xbf16>
    %12 = vector.shape_cast %11 : vector<1x128x24xbf16> to vector<128x24xbf16>
    %c0_18 = arith.constant 0 : index
    %c0_19 = arith.constant 0 : index
    %c0_20 = arith.constant 0 : index
    %13 = vector.load %arg2[%c0_18, %c0_19, %c0_20] : memref<7x24x128xbf16, #tpu.memory_space<vmem>>, vector<1x24x128xbf16>
    %14 = vector.shape_cast %13 : vector<1x24x128xbf16> to vector<24x128xbf16>
    %cst_21 = arith.constant dense<0.000000e+00> : vector<128x128xf32>
    %15 = tpu.matmul %12, %14, %cst_21 {dimension_numbers = #tpu.dot_dimension_numbers<[1], [0], [0], [1], [0, 0, 1, 1], [], []>} : vector<128x24xbf16>, vector<24x128xbf16>, vector<128x128xf32> -> vector<128x128xf32>
    %16 = arith.addf %10, %15 : vector<128x128xf32>
    %c0_22 = arith.constant 0 : index
    %c304 = arith.constant 304 : index
    %c0_23 = arith.constant 0 : index
    %17 = vector.load %arg1[%c0_22, %c304, %c0_23] : memref<1x608x24xbf16, #tpu.memory_space<vmem>>, vector<1x128x24xbf16>
    %18 = vector.shape_cast %17 : vector<1x128x24xbf16> to vector<128x24xbf16>
    %c1 = arith.constant 1 : index
    %c0_24 = arith.constant 0 : index
    %c0_25 = arith.constant 0 : index
    %19 = vector.load %arg2[%c1, %c0_24, %c0_25] : memref<7x24x128xbf16, #tpu.memory_space<vmem>>, vector<1x24x128xbf16>
    %20 = vector.shape_cast %19 : vector<1x24x128xbf16> to vector<24x128xbf16>
    %cst_26 = arith.constant dense<0.000000e+00> : vector<128x128xf32>
    %21 = tpu.matmul %18, %20, %cst_26 {dimension_numbers = #tpu.dot_dimension_numbers<[1], [0], [0], [1], [0, 0, 1, 1], [], []>} : vector<128x24xbf16>, vector<24x128xbf16>, vector<128x128xf32> -> vector<128x128xf32>
    %22 = arith.addf %16, %21 : vector<128x128xf32>
    %c0_27 = arith.constant 0 : index
    %c16 = arith.constant 16 : index
    %c0_28 = arith.constant 0 : index
    %23 = vector.load %arg1[%c0_27, %c16, %c0_28] : memref<1x608x24xbf16, #tpu.memory_space<vmem>>, vector<1x128x24xbf16>
    %24 = vector.shape_cast %23 : vector<1x128x24xbf16> to vector<128x24xbf16>
    %c2 = arith.constant 2 : index
    %c0_29 = arith.constant 0 : index
    %c0_30 = arith.constant 0 : index
    %25 = vector.load %arg2[%c2, %c0_29, %c0_30] : memref<7x24x128xbf16, #tpu.memory_space<vmem>>, vector<1x24x128xbf16>
    %26 = vector.shape_cast %25 : vector<1x24x128xbf16> to vector<24x128xbf16>
    %cst_31 = arith.constant dense<0.000000e+00> : vector<128x128xf32>
    %27 = tpu.matmul %24, %26, %cst_31 {dimension_numbers = #tpu.dot_dimension_numbers<[1], [0], [0], [1], [0, 0, 1, 1], [], []>} : vector<128x24xbf16>, vector<24x128xbf16>, vector<128x128xf32> -> vector<128x128xf32>
    %28 = arith.addf %22, %27 : vector<128x128xf32>
    %c0_32 = arith.constant 0 : index
    %c320 = arith.constant 320 : index
    %c0_33 = arith.constant 0 : index
    %29 = vector.load %arg1[%c0_32, %c320, %c0_33] : memref<1x608x24xbf16, #tpu.memory_space<vmem>>, vector<1x128x24xbf16>
    %30 = vector.shape_cast %29 : vector<1x128x24xbf16> to vector<128x24xbf16>
    %c3 = arith.constant 3 : index
    %c0_34 = arith.constant 0 : index
    %c0_35 = arith.constant 0 : index
    %31 = vector.load %arg2[%c3, %c0_34, %c0_35] : memref<7x24x128xbf16, #tpu.memory_space<vmem>>, vector<1x24x128xbf16>
    %32 = vector.shape_cast %31 : vector<1x24x128xbf16> to vector<24x128xbf16>
    %cst_36 = arith.constant dense<0.000000e+00> : vector<128x128xf32>
    %33 = tpu.matmul %30, %32, %cst_36 {dimension_numbers = #tpu.dot_dimension_numbers<[1], [0], [0], [1], [0, 0, 1, 1], [], []>} : vector<128x24xbf16>, vector<24x128xbf16>, vector<128x128xf32> -> vector<128x128xf32>
    %34 = arith.addf %28, %33 : vector<128x128xf32>
    %c0_37 = arith.constant 0 : index
    %c32 = arith.constant 32 : index
    %c0_38 = arith.constant 0 : index
    %35 = vector.load %arg1[%c0_37, %c32, %c0_38] : memref<1x608x24xbf16, #tpu.memory_space<vmem>>, vector<1x128x24xbf16>
    %36 = vector.shape_cast %35 : vector<1x128x24xbf16> to vector<128x24xbf16>
    %c4 = arith.constant 4 : index
    %c0_39 = arith.constant 0 : index
    %c0_40 = arith.constant 0 : index
    %37 = vector.load %arg2[%c4, %c0_39, %c0_40] : memref<7x24x128xbf16, #tpu.memory_space<vmem>>, vector<1x24x128xbf16>
    %38 = vector.shape_cast %37 : vector<1x24x128xbf16> to vector<24x128xbf16>
    %cst_41 = arith.constant dense<0.000000e+00> : vector<128x128xf32>
    %39 = tpu.matmul %36, %38, %cst_41 {dimension_numbers = #tpu.dot_dimension_numbers<[1], [0], [0], [1], [0, 0, 1, 1], [], []>} : vector<128x24xbf16>, vector<24x128xbf16>, vector<128x128xf32> -> vector<128x128xf32>
    %40 = arith.addf %34, %39 : vector<128x128xf32>
    %c0_42 = arith.constant 0 : index
    %c336 = arith.constant 336 : index
    %c0_43 = arith.constant 0 : index
    %41 = vector.load %arg1[%c0_42, %c336, %c0_43] : memref<1x608x24xbf16, #tpu.memory_space<vmem>>, vector<1x128x24xbf16>
    %42 = vector.shape_cast %41 : vector<1x128x24xbf16> to vector<128x24xbf16>
    %c5 = arith.constant 5 : index
    %c0_44 = arith.constant 0 : index
    %c0_45 = arith.constant 0 : index
    %43 = vector.load %arg2[%c5, %c0_44, %c0_45] : memref<7x24x128xbf16, #tpu.memory_space<vmem>>, vector<1x24x128xbf16>
    %44 = vector.shape_cast %43 : vector<1x24x128xbf16> to vector<24x128xbf16>
    %cst_46 = arith.constant dense<0.000000e+00> : vector<128x128xf32>
    %45 = tpu.matmul %42, %44, %cst_46 {dimension_numbers = #tpu.dot_dimension_numbers<[1], [0], [0], [1], [0, 0, 1, 1], [], []>} : vector<128x24xbf16>, vector<24x128xbf16>, vector<128x128xf32> -> vector<128x128xf32>
    %46 = arith.addf %40, %45 : vector<128x128xf32>
    %c0_47 = arith.constant 0 : index
    %c48 = arith.constant 48 : index
    %c0_48 = arith.constant 0 : index
    %47 = vector.load %arg1[%c0_47, %c48, %c0_48] : memref<1x608x24xbf16, #tpu.memory_space<vmem>>, vector<1x128x24xbf16>
    %48 = vector.shape_cast %47 : vector<1x128x24xbf16> to vector<128x24xbf16>
    %c6 = arith.constant 6 : index
    %c0_49 = arith.constant 0 : index
    %c0_50 = arith.constant 0 : index
    %49 = vector.load %arg2[%c6, %c0_49, %c0_50] : memref<7x24x128xbf16, #tpu.memory_space<vmem>>, vector<1x24x128xbf16>
    %50 = vector.shape_cast %49 : vector<1x24x128xbf16> to vector<24x128xbf16>
    %cst_51 = arith.constant dense<0.000000e+00> : vector<128x128xf32>
    %51 = tpu.matmul %48, %50, %cst_51 {dimension_numbers = #tpu.dot_dimension_numbers<[1], [0], [0], [1], [0, 0, 1, 1], [], []>} : vector<128x24xbf16>, vector<24x128xbf16>, vector<128x128xf32> -> vector<128x128xf32>
    %52 = arith.addf %46, %51 : vector<128x128xf32>
    %53 = vector.broadcast %8 : vector<1x128xf32> to vector<128x128xf32>
    %54 = arith.mulf %52, %53 : vector<128x128xf32>
    %55 = vector.broadcast %9 : vector<1x128xf32> to vector<128x128xf32>
    %56 = arith.addf %54, %55 : vector<128x128xf32>
    %cst_52 = arith.constant 0.000000e+00 : f32
    %57 = vector.broadcast %cst_52 : f32 to vector<128x128xf32>
    %58 = arith.maximumf %56, %57 : vector<128x128xf32>
    %c0_53 = arith.constant 0 : index
    %c0_54 = arith.constant 0 : index
    %59 = vector.load %arg12[%c0_53, %c0_54] : memref<256x128xf32, #tpu.memory_space<vmem>>, vector<128x128xf32>
    tpu.vector_store %arg12[%c0_53, %c0_54], %58 {strides = array<i32>} : memref<256x128xf32, #tpu.memory_space<vmem>>, vector<128x128xf32>,
    %cst_55 = arith.constant 0.000000e+00 : f32
    %60 = vector.broadcast %cst_55 : f32 to vector<128x128xf32>
    %c0_56 = arith.constant 0 : index
    %c128 = arith.constant 128 : index
    %c0_57 = arith.constant 0 : index
    %61 = vector.load %arg1[%c0_56, %c128, %c0_57] : memref<1x608x24xbf16, #tpu.memory_space<vmem>>, vector<1x128x24xbf16>
    %62 = vector.shape_cast %61 : vector<1x128x24xbf16> to vector<128x24xbf16>
    %c0_58 = arith.constant 0 : index
    %c0_59 = arith.constant 0 : index
    %c0_60 = arith.constant 0 : index
    %63 = vector.load %arg2[%c0_58, %c0_59, %c0_60] : memref<7x24x128xbf16, #tpu.memory_space<vmem>>, vector<1x24x128xbf16>
    %64 = vector.shape_cast %63 : vector<1x24x128xbf16> to vector<24x128xbf16>
    %cst_61 = arith.constant dense<0.000000e+00> : vector<128x128xf32>
    %65 = tpu.matmul %62, %64, %cst_61 {dimension_numbers = #tpu.dot_dimension_numbers<[1], [0], [0], [1], [0, 0, 1, 1], [], []>} : vector<128x24xbf16>, vector<24x128xbf16>, vector<128x128xf32> -> vector<128x128xf32>
    %66 = arith.addf %60, %65 : vector<128x128xf32>
    %c0_62 = arith.constant 0 : index
    %c432 = arith.constant 432 : index
    %c0_63 = arith.constant 0 : index
    %67 = vector.load %arg1[%c0_62, %c432, %c0_63] : memref<1x608x24xbf16, #tpu.memory_space<vmem>>, vector<1x128x24xbf16>
    %68 = vector.shape_cast %67 : vector<1x128x24xbf16> to vector<128x24xbf16>
    %c1_64 = arith.constant 1 : index
    %c0_65 = arith.constant 0 : index
    %c0_66 = arith.constant 0 : index
    %69 = vector.load %arg2[%c1_64, %c0_65, %c0_66] : memref<7x24x128xbf16, #tpu.memory_space<vmem>>, vector<1x24x128xbf16>
    %70 = vector.shape_cast %69 : vector<1x24x128xbf16> to vector<24x128xbf16>
    %cst_67 = arith.constant dense<0.000000e+00> : vector<128x128xf32>
    %71 = tpu.matmul %68, %70, %cst_67 {dimension_numbers = #tpu.dot_dimension_numbers<[1], [0], [0], [1], [0, 0, 1, 1], [], []>} : vector<128x24xbf16>, vector<24x128xbf16>, vector<128x128xf32> -> vector<128x128xf32>
    %72 = arith.addf %66, %71 : vector<128x128xf32>
    %c0_68 = arith.constant 0 : index
    %c144 = arith.constant 144 : index
    %c0_69 = arith.constant 0 : index
    %73 = vector.load %arg1[%c0_68, %c144, %c0_69] : memref<1x608x24xbf16, #tpu.memory_space<vmem>>, vector<1x128x24xbf16>
    %74 = vector.shape_cast %73 : vector<1x128x24xbf16> to vector<128x24xbf16>
    %c2_70 = arith.constant 2 : index
    %c0_71 = arith.constant 0 : index
    %c0_72 = arith.constant 0 : index
    %75 = vector.load %arg2[%c2_70, %c0_71, %c0_72] : memref<7x24x128xbf16, #tpu.memory_space<vmem>>, vector<1x24x128xbf16>
    %76 = vector.shape_cast %75 : vector<1x24x128xbf16> to vector<24x128xbf16>
    %cst_73 = arith.constant dense<0.000000e+00> : vector<128x128xf32>
    %77 = tpu.matmul %74, %76, %cst_73 {dimension_numbers = #tpu.dot_dimension_numbers<[1], [0], [0], [1], [0, 0, 1, 1], [], []>} : vector<128x24xbf16>, vector<24x128xbf16>, vector<128x128xf32> -> vector<128x128xf32>
    %78 = arith.addf %72, %77 : vector<128x128xf32>
    %c0_74 = arith.constant 0 : index
    %c448 = arith.constant 448 : index
    %c0_75 = arith.constant 0 : index
    %79 = vector.load %arg1[%c0_74, %c448, %c0_75] : memref<1x608x24xbf16, #tpu.memory_space<vmem>>, vector<1x128x24xbf16>
    %80 = vector.shape_cast %79 : vector<1x128x24xbf16> to vector<128x24xbf16>
    %c3_76 = arith.constant 3 : index
    %c0_77 = arith.constant 0 : index
    %c0_78 = arith.constant 0 : index
    %81 = vector.load %arg2[%c3_76, %c0_77, %c0_78] : memref<7x24x128xbf16, #tpu.memory_space<vmem>>, vector<1x24x128xbf16>
    %82 = vector.shape_cast %81 : vector<1x24x128xbf16> to vector<24x128xbf16>
    %cst_79 = arith.constant dense<0.000000e+00> : vector<128x128xf32>
    %83 = tpu.matmul %80, %82, %cst_79 {dimension_numbers = #tpu.dot_dimension_numbers<[1], [0], [0], [1], [0, 0, 1, 1], [], []>} : vector<128x24xbf16>, vector<24x128xbf16>, vector<128x128xf32> -> vector<128x128xf32>
    %84 = arith.addf %78, %83 : vector<128x128xf32>
    %c0_80 = arith.constant 0 : index
    %c160 = arith.constant 160 : index
    %c0_81 = arith.constant 0 : index
    %85 = vector.load %arg1[%c0_80, %c160, %c0_81] : memref<1x608x24xbf16, #tpu.memory_space<vmem>>, vector<1x128x24xbf16>
    %86 = vector.shape_cast %85 : vector<1x128x24xbf16> to vector<128x24xbf16>
    %c4_82 = arith.constant 4 : index
    %c0_83 = arith.constant 0 : index
    %c0_84 = arith.constant 0 : index
    %87 = vector.load %arg2[%c4_82, %c0_83, %c0_84] : memref<7x24x128xbf16, #tpu.memory_space<vmem>>, vector<1x24x128xbf16>
    %88 = vector.shape_cast %87 : vector<1x24x128xbf16> to vector<24x128xbf16>
    %cst_85 = arith.constant dense<0.000000e+00> : vector<128x128xf32>
    %89 = tpu.matmul %86, %88, %cst_85 {dimension_numbers = #tpu.dot_dimension_numbers<[1], [0], [0], [1], [0, 0, 1, 1], [], []>} : vector<128x24xbf16>, vector<24x128xbf16>, vector<128x128xf32> -> vector<128x128xf32>
    %90 = arith.addf %84, %89 : vector<128x128xf32>
    %c0_86 = arith.constant 0 : index
    %c464 = arith.constant 464 : index
    %c0_87 = arith.constant 0 : index
    %91 = vector.load %arg1[%c0_86, %c464, %c0_87] : memref<1x608x24xbf16, #tpu.memory_space<vmem>>, vector<1x128x24xbf16>
    %92 = vector.shape_cast %91 : vector<1x128x24xbf16> to vector<128x24xbf16>
    %c5_88 = arith.constant 5 : index
    %c0_89 = arith.constant 0 : index
    %c0_90 = arith.constant 0 : index
    %93 = vector.load %arg2[%c5_88, %c0_89, %c0_90] : memref<7x24x128xbf16, #tpu.memory_space<vmem>>, vector<1x24x128xbf16>
    %94 = vector.shape_cast %93 : vector<1x24x128xbf16> to vector<24x128xbf16>
    %cst_91 = arith.constant dense<0.000000e+00> : vector<128x128xf32>
    %95 = tpu.matmul %92, %94, %cst_91 {dimension_numbers = #tpu.dot_dimension_numbers<[1], [0], [0], [1], [0, 0, 1, 1], [], []>} : vector<128x24xbf16>, vector<24x128xbf16>, vector<128x128xf32> -> vector<128x128xf32>
    %96 = arith.addf %90, %95 : vector<128x128xf32>
    %c0_92 = arith.constant 0 : index
    %c176 = arith.constant 176 : index
    %c0_93 = arith.constant 0 : index
    %97 = vector.load %arg1[%c0_92, %c176, %c0_93] : memref<1x608x24xbf16, #tpu.memory_space<vmem>>, vector<1x128x24xbf16>
    %98 = vector.shape_cast %97 : vector<1x128x24xbf16> to vector<128x24xbf16>
    %c6_94 = arith.constant 6 : index
    %c0_95 = arith.constant 0 : index
    %c0_96 = arith.constant 0 : index
    %99 = vector.load %arg2[%c6_94, %c0_95, %c0_96] : memref<7x24x128xbf16, #tpu.memory_space<vmem>>, vector<1x24x128xbf16>
    %100 = vector.shape_cast %99 : vector<1x24x128xbf16> to vector<24x128xbf16>
    %cst_97 = arith.constant dense<0.000000e+00> : vector<128x128xf32>
    %101 = tpu.matmul %98, %100, %cst_97 {dimension_numbers = #tpu.dot_dimension_numbers<[1], [0], [0], [1], [0, 0, 1, 1], [], []>} : vector<128x24xbf16>, vector<24x128xbf16>, vector<128x128xf32> -> vector<128x128xf32>
    %102 = arith.addf %96, %101 : vector<128x128xf32>
    %103 = vector.broadcast %8 : vector<1x128xf32> to vector<128x128xf32>
    %104 = arith.mulf %102, %103 : vector<128x128xf32>
    %105 = vector.broadcast %9 : vector<1x128xf32> to vector<128x128xf32>
    %106 = arith.addf %104, %105 : vector<128x128xf32>
    %cst_98 = arith.constant 0.000000e+00 : f32
    %107 = vector.broadcast %cst_98 : f32 to vector<128x128xf32>
    %108 = arith.maximumf %106, %107 : vector<128x128xf32>
    %c128_99 = arith.constant 128 : index
    %c0_100 = arith.constant 0 : index
    %109 = vector.load %arg12[%c128_99, %c0_100] : memref<256x128xf32, #tpu.memory_space<vmem>>, vector<128x128xf32>
    tpu.vector_store %arg12[%c128_99, %c0_100], %108 {strides = array<i32>} : memref<256x128xf32, #tpu.memory_space<vmem>>, vector<128x128xf32>,
    %c0_101 = arith.constant 0 : index
    %c0_102 = arith.constant 0 : index
    %110 = vector.load %arg10[%c0_101, %c0_102] : memref<8x1xf32, #tpu.memory_space<vmem>>, vector<8x1xf32>
    %c0_103 = arith.constant 0 : index
    %c0_104 = arith.constant 0 : index
    %111 = vector.load %arg12[%c0_103, %c0_104] : memref<256x128xf32, #tpu.memory_space<vmem>>, vector<16x128xf32>
    %c16_105 = arith.constant 16 : index
    %c0_106 = arith.constant 0 : index
    %112 = vector.load %arg12[%c16_105, %c0_106] : memref<256x128xf32, #tpu.memory_space<vmem>>, vector<16x128xf32>
    %113 = arith.maximumf %111, %112 : vector<16x128xf32>
    %114 = vector.extract_strided_slice %113 {offsets = [0, 0], sizes = [8, 128], strides = [1, 1]} : vector<16x128xf32> to vector<8x128xf32>
    %115 = vector.extract_strided_slice %113 {offsets = [8, 0], sizes = [8, 128], strides = [1, 1]} : vector<16x128xf32> to vector<8x128xf32>
    %116 = arith.maximumf %114, %115 : vector<8x128xf32>
    %117 = vector.extract_strided_slice %113 {offsets = [7, 0], sizes = [8, 128], strides = [1, 1]} : vector<16x128xf32> to vector<8x128xf32>
    %118 = vector.broadcast %110 : vector<8x1xf32> to vector<8x128xf32>
    %119 = arith.mulf %117, %118 : vector<8x128xf32>
    %120 = arith.maximumf %116, %119 : vector<8x128xf32>
    %c11 = arith.constant 11 : index
    %c0_107 = arith.constant 0 : index
    %121 = vector.load %arg13[%c11, %c0_107] : memref<104x128xf32, #tpu.memory_space<vmem>>, vector<8x128xf32>
    tpu.vector_store %arg13[%c11, %c0_107], %120 {strides = array<i32>} : memref<104x128xf32, #tpu.memory_space<vmem>>, vector<8x128xf32>,
    %c32_108 = arith.constant 32 : index
    %c0_109 = arith.constant 0 : index
    %122 = vector.load %arg12[%c32_108, %c0_109] : memref<256x128xf32, #tpu.memory_space<vmem>>, vector<16x128xf32>
    %c48_110 = arith.constant 48 : index
    %c0_111 = arith.constant 0 : index
    %123 = vector.load %arg12[%c48_110, %c0_111] : memref<256x128xf32, #tpu.memory_space<vmem>>, vector<16x128xf32>
    %124 = arith.maximumf %122, %123 : vector<16x128xf32>
    %c16_112 = arith.constant 16 : index
    %c0_113 = arith.constant 0 : index
    %125 = vector.load %arg12[%c16_112, %c0_113] : memref<256x128xf32, #tpu.memory_space<vmem>>, vector<16x128xf32>
    %126 = arith.maximumf %124, %125 : vector<16x128xf32>
    %127 = vector.extract_strided_slice %126 {offsets = [0, 0], sizes = [8, 128], strides = [1, 1]} : vector<16x128xf32> to vector<8x128xf32>
    %128 = vector.extract_strided_slice %126 {offsets = [8, 0], sizes = [8, 128], strides = [1, 1]} : vector<16x128xf32> to vector<8x128xf32>
    %129 = arith.maximumf %127, %128 : vector<8x128xf32>
    %130 = vector.extract_strided_slice %126 {offsets = [7, 0], sizes = [8, 128], strides = [1, 1]} : vector<16x128xf32> to vector<8x128xf32>
    %131 = vector.broadcast %110 : vector<8x1xf32> to vector<8x128xf32>
    %132 = arith.mulf %130, %131 : vector<8x128xf32>
    %133 = arith.maximumf %129, %132 : vector<8x128xf32>
    %c21 = arith.constant 21 : index
    %c0_114 = arith.constant 0 : index
    %134 = vector.load %arg13[%c21, %c0_114] : memref<104x128xf32, #tpu.memory_space<vmem>>, vector<8x128xf32>
    tpu.vector_store %arg13[%c21, %c0_114], %133 {strides = array<i32>} : memref<104x128xf32, #tpu.memory_space<vmem>>, vector<8x128xf32>,
    %c64 = arith.constant 64 : index
    %c0_115 = arith.constant 0 : index
    %135 = vector.load %arg12[%c64, %c0_115] : memref<256x128xf32, #tpu.memory_space<vmem>>, vector<16x128xf32>
    %c80 = arith.constant 80 : index
    %c0_116 = arith.constant 0 : index
    %136 = vector.load %arg12[%c80, %c0_116] : memref<256x128xf32, #tpu.memory_space<vmem>>, vector<16x128xf32>
    %137 = arith.maximumf %135, %136 : vector<16x128xf32>
    %c48_117 = arith.constant 48 : index
    %c0_118 = arith.constant 0 : index
    %138 = vector.load %arg12[%c48_117, %c0_118] : memref<256x128xf32, #tpu.memory_space<vmem>>, vector<16x128xf32>
    %139 = arith.maximumf %137, %138 : vector<16x128xf32>
    %140 = vector.extract_strided_slice %139 {offsets = [0, 0], sizes = [8, 128], strides = [1, 1]} : vector<16x128xf32> to vector<8x128xf32>
    %141 = vector.extract_strided_slice %139 {offsets = [8, 0], sizes = [8, 128], strides = [1, 1]} : vector<16x128xf32> to vector<8x128xf32>
    %142 = arith.maximumf %140, %141 : vector<8x128xf32>
    %143 = vector.extract_strided_slice %139 {offsets = [7, 0], sizes = [8, 128], strides = [1, 1]} : vector<16x128xf32> to vector<8x128xf32>
    %144 = vector.broadcast %110 : vector<8x1xf32> to vector<8x128xf32>
    %145 = arith.mulf %143, %144 : vector<8x128xf32>
    %146 = arith.maximumf %142, %145 : vector<8x128xf32>
    %c31 = arith.constant 31 : index
    %c0_119 = arith.constant 0 : index
    %147 = vector.load %arg13[%c31, %c0_119] : memref<104x128xf32, #tpu.memory_space<vmem>>, vector<8x128xf32>
    tpu.vector_store %arg13[%c31, %c0_119], %146 {strides = array<i32>} : memref<104x128xf32, #tpu.memory_space<vmem>>, vector<8x128xf32>,
    %c96 = arith.constant 96 : index
    %c0_120 = arith.constant 0 : index
    %148 = vector.load %arg12[%c96, %c0_120] : memref<256x128xf32, #tpu.memory_space<vmem>>, vector<16x128xf32>
    %c112 = arith.constant 112 : index
    %c0_121 = arith.constant 0 : index
    %149 = vector.load %arg12[%c112, %c0_121] : memref<256x128xf32, #tpu.memory_space<vmem>>, vector<16x128xf32>
    %150 = arith.maximumf %148, %149 : vector<16x128xf32>
    %c80_122 = arith.constant 80 : index
    %c0_123 = arith.constant 0 : index
    %151 = vector.load %arg12[%c80_122, %c0_123] : memref<256x128xf32, #tpu.memory_space<vmem>>, vector<16x128xf32>
    %152 = arith.maximumf %150, %151 : vector<16x128xf32>
    %153 = vector.extract_strided_slice %152 {offsets = [0, 0], sizes = [8, 128], strides = [1, 1]} : vector<16x128xf32> to vector<8x128xf32>
    %154 = vector.extract_strided_slice %152 {offsets = [8, 0], sizes = [8, 128], strides = [1, 1]} : vector<16x128xf32> to vector<8x128xf32>
    %155 = arith.maximumf %153, %154 : vector<8x128xf32>
    %156 = vector.extract_strided_slice %152 {offsets = [7, 0], sizes = [8, 128], strides = [1, 1]} : vector<16x128xf32> to vector<8x128xf32>
    %157 = vector.broadcast %110 : vector<8x1xf32> to vector<8x128xf32>
    %158 = arith.mulf %156, %157 : vector<8x128xf32>
    %159 = arith.maximumf %155, %158 : vector<8x128xf32>
    %c41 = arith.constant 41 : index
    %c0_124 = arith.constant 0 : index
    %160 = vector.load %arg13[%c41, %c0_124] : memref<104x128xf32, #tpu.memory_space<vmem>>, vector<8x128xf32>
    tpu.vector_store %arg13[%c41, %c0_124], %159 {strides = array<i32>} : memref<104x128xf32, #tpu.memory_space<vmem>>, vector<8x128xf32>,
    %c128_125 = arith.constant 128 : index
    %c0_126 = arith.constant 0 : index
    %161 = vector.load %arg12[%c128_125, %c0_126] : memref<256x128xf32, #tpu.memory_space<vmem>>, vector<16x128xf32>
    %c144_127 = arith.constant 144 : index
    %c0_128 = arith.constant 0 : index
    %162 = vector.load %arg12[%c144_127, %c0_128] : memref<256x128xf32, #tpu.memory_space<vmem>>, vector<16x128xf32>
    %163 = arith.maximumf %161, %162 : vector<16x128xf32>
    %c112_129 = arith.constant 112 : index
    %c0_130 = arith.constant 0 : index
    %164 = vector.load %arg12[%c112_129, %c0_130] : memref<256x128xf32, #tpu.memory_space<vmem>>, vector<16x128xf32>
    %165 = arith.maximumf %163, %164 : vector<16x128xf32>
    %166 = vector.extract_strided_slice %165 {offsets = [0, 0], sizes = [8, 128], strides = [1, 1]} : vector<16x128xf32> to vector<8x128xf32>
    %167 = vector.extract_strided_slice %165 {offsets = [8, 0], sizes = [8, 128], strides = [1, 1]} : vector<16x128xf32> to vector<8x128xf32>
    %168 = arith.maximumf %166, %167 : vector<8x128xf32>
    %169 = vector.extract_strided_slice %165 {offsets = [7, 0], sizes = [8, 128], strides = [1, 1]} : vector<16x128xf32> to vector<8x128xf32>
    %170 = vector.broadcast %110 : vector<8x1xf32> to vector<8x128xf32>
    %171 = arith.mulf %169, %170 : vector<8x128xf32>
    %172 = arith.maximumf %168, %171 : vector<8x128xf32>
    %c51 = arith.constant 51 : index
    %c0_131 = arith.constant 0 : index
    %173 = vector.load %arg13[%c51, %c0_131] : memref<104x128xf32, #tpu.memory_space<vmem>>, vector<8x128xf32>
    tpu.vector_store %arg13[%c51, %c0_131], %172 {strides = array<i32>} : memref<104x128xf32, #tpu.memory_space<vmem>>, vector<8x128xf32>,
    %c160_132 = arith.constant 160 : index
    %c0_133 = arith.constant 0 : index
    %174 = vector.load %arg12[%c160_132, %c0_133] : memref<256x128xf32, #tpu.memory_space<vmem>>, vector<16x128xf32>
    %c176_134 = arith.constant 176 : index
    %c0_135 = arith.constant 0 : index
    %175 = vector.load %arg12[%c176_134, %c0_135] : memref<256x128xf32, #tpu.memory_space<vmem>>, vector<16x128xf32>
    %176 = arith.maximumf %174, %175 : vector<16x128xf32>
    %c144_136 = arith.constant 144 : index
    %c0_137 = arith.constant 0 : index
    %177 = vector.load %arg12[%c144_136, %c0_137] : memref<256x128xf32, #tpu.memory_space<vmem>>, vector<16x128xf32>
    %178 = arith.maximumf %176, %177 : vector<16x128xf32>
    %179 = vector.extract_strided_slice %178 {offsets = [0, 0], sizes = [8, 128], strides = [1, 1]} : vector<16x128xf32> to vector<8x128xf32>
    %180 = vector.extract_strided_slice %178 {offsets = [8, 0], sizes = [8, 128], strides = [1, 1]} : vector<16x128xf32> to vector<8x128xf32>
    %181 = arith.maximumf %179, %180 : vector<8x128xf32>
    %182 = vector.extract_strided_slice %178 {offsets = [7, 0], sizes = [8, 128], strides = [1, 1]} : vector<16x128xf32> to vector<8x128xf32>
    %183 = vector.broadcast %110 : vector<8x1xf32> to vector<8x128xf32>
    %184 = arith.mulf %182, %183 : vector<8x128xf32>
    %185 = arith.maximumf %181, %184 : vector<8x128xf32>
    %c61 = arith.constant 61 : index
    %c0_138 = arith.constant 0 : index
    %186 = vector.load %arg13[%c61, %c0_138] : memref<104x128xf32, #tpu.memory_space<vmem>>, vector<8x128xf32>
    tpu.vector_store %arg13[%c61, %c0_138], %185 {strides = array<i32>} : memref<104x128xf32, #tpu.memory_space<vmem>>, vector<8x128xf32>,
    %c192 = arith.constant 192 : index
    %c0_139 = arith.constant 0 : index
    %187 = vector.load %arg12[%c192, %c0_139] : memref<256x128xf32, #tpu.memory_space<vmem>>, vector<16x128xf32>
    %c208 = arith.constant 208 : index
    %c0_140 = arith.constant 0 : index
    %188 = vector.load %arg12[%c208, %c0_140] : memref<256x128xf32, #tpu.memory_space<vmem>>, vector<16x128xf32>
    %189 = arith.maximumf %187, %188 : vector<16x128xf32>
    %c176_141 = arith.constant 176 : index
    %c0_142 = arith.constant 0 : index
    %190 = vector.load %arg12[%c176_141, %c0_142] : memref<256x128xf32, #tpu.memory_space<vmem>>, vector<16x128xf32>
    %191 = arith.maximumf %189, %190 : vector<16x128xf32>
    %192 = vector.extract_strided_slice %191 {offsets = [0, 0], sizes = [8, 128], strides = [1, 1]} : vector<16x128xf32> to vector<8x128xf32>
    %193 = vector.extract_strided_slice %191 {offsets = [8, 0], sizes = [8, 128], strides = [1, 1]} : vector<16x128xf32> to vector<8x128xf32>
    %194 = arith.maximumf %192, %193 : vector<8x128xf32>
    %195 = vector.extract_strided_slice %191 {offsets = [7, 0], sizes = [8, 128], strides = [1, 1]} : vector<16x128xf32> to vector<8x128xf32>
    %196 = vector.broadcast %110 : vector<8x1xf32> to vector<8x128xf32>
    %197 = arith.mulf %195, %196 : vector<8x128xf32>
    %198 = arith.maximumf %194, %197 : vector<8x128xf32>
    %c71 = arith.constant 71 : index
    %c0_143 = arith.constant 0 : index
    %199 = vector.load %arg13[%c71, %c0_143] : memref<104x128xf32, #tpu.memory_space<vmem>>, vector<8x128xf32>
    tpu.vector_store %arg13[%c71, %c0_143], %198 {strides = array<i32>} : memref<104x128xf32, #tpu.memory_space<vmem>>, vector<8x128xf32>,
    %c224 = arith.constant 224 : index
    %c0_144 = arith.constant 0 : index
    %200 = vector.load %arg12[%c224, %c0_144] : memref<256x128xf32, #tpu.memory_space<vmem>>, vector<16x128xf32>
    %c240 = arith.constant 240 : index
    %c0_145 = arith.constant 0 : index
    %201 = vector.load %arg12[%c240, %c0_145] : memref<256x128xf32, #tpu.memory_space<vmem>>, vector<16x128xf32>
    %202 = arith.maximumf %200, %201 : vector<16x128xf32>
    %c208_146 = arith.constant 208 : index
    %c0_147 = arith.constant 0 : index
    %203 = vector.load %arg12[%c208_146, %c0_147] : memref<256x128xf32, #tpu.memory_space<vmem>>, vector<16x128xf32>
    %204 = arith.maximumf %202, %203 : vector<16x128xf32>
    %205 = vector.extract_strided_slice %204 {offsets = [0, 0], sizes = [8, 128], strides = [1, 1]} : vector<16x128xf32> to vector<8x128xf32>
    %206 = vector.extract_strided_slice %204 {offsets = [8, 0], sizes = [8, 128], strides = [1, 1]} : vector<16x128xf32> to vector<8x128xf32>
    %207 = arith.maximumf %205, %206 : vector<8x128xf32>
    %208 = vector.extract_strided_slice %204 {offsets = [7, 0], sizes = [8, 128], strides = [1, 1]} : vector<16x128xf32> to vector<8x128xf32>
    %209 = vector.broadcast %110 : vector<8x1xf32> to vector<8x128xf32>
    %210 = arith.mulf %208, %209 : vector<8x128xf32>
    %211 = arith.maximumf %207, %210 : vector<8x128xf32>
    %c81 = arith.constant 81 : index
    %c0_148 = arith.constant 0 : index
    %212 = vector.load %arg13[%c81, %c0_148] : memref<104x128xf32, #tpu.memory_space<vmem>>, vector<8x128xf32>
    tpu.vector_store %arg13[%c81, %c0_148], %211 {strides = array<i32>} : memref<104x128xf32, #tpu.memory_space<vmem>>, vector<8x128xf32>,
    %c0_149 = arith.constant 0 : index
    %c0_150 = arith.constant 0 : index
    %213 = vector.load %arg8[%c0_149, %c0_150] : memref<80x1xf32, #tpu.memory_space<vmem>>, vector<80x1xf32>
    %c1_151 = arith.constant 1 : index
    %c0_152 = arith.constant 0 : index
    %214 = vector.load %arg6[%c1_151, %c0_152] : memref<6x128xf32, #tpu.memory_space<vmem>>, vector<1x128xf32>
    %c1_153 = arith.constant 1 : index
    %c0_154 = arith.constant 0 : index
    %215 = vector.load %arg7[%c1_153, %c0_154] : memref<6x128xf32, #tpu.memory_space<vmem>>, vector<1x128xf32>
    %cst_155 = arith.constant 0.000000e+00 : f32
    %216 = vector.broadcast %cst_155 : f32 to vector<80x128xf32>
    %c0_156 = arith.constant 0 : index
    %c0_157 = arith.constant 0 : index
    %217 = vector.load %arg13[%c0_156, %c0_157] : memref<104x128xf32, #tpu.memory_space<vmem>>, vector<80x128xf32>
    %218 = arith.truncf %217 : vector<80x128xf32> to vector<80x128xbf16>
    %c0_158 = arith.constant 0 : index
    %c0_159 = arith.constant 0 : index
    %c0_160 = arith.constant 0 : index
    %219 = vector.load %arg3[%c0_158, %c0_159, %c0_160] : memref<36x128x128xbf16, #tpu.memory_space<vmem>>, vector<1x128x128xbf16>
    %220 = vector.shape_cast %219 : vector<1x128x128xbf16> to vector<128x128xbf16>
    %cst_161 = arith.constant dense<0.000000e+00> : vector<80x128xf32>
    %221 = tpu.matmul %218, %220, %cst_161 {dimension_numbers = #tpu.dot_dimension_numbers<[1], [0], [0], [1], [0, 0, 1, 1], [], []>} : vector<80x128xbf16>, vector<128x128xbf16>, vector<80x128xf32> -> vector<80x128xf32>
    %222 = arith.addf %216, %221 : vector<80x128xf32>
    %c1_162 = arith.constant 1 : index
    %c0_163 = arith.constant 0 : index
    %223 = vector.load %arg13[%c1_162, %c0_163] : memref<104x128xf32, #tpu.memory_space<vmem>>, vector<80x128xf32>
    %224 = arith.truncf %223 : vector<80x128xf32> to vector<80x128xbf16>
    %c1_164 = arith.constant 1 : index
    %c0_165 = arith.constant 0 : index
    %c0_166 = arith.constant 0 : index
    %225 = vector.load %arg3[%c1_164, %c0_165, %c0_166] : memref<36x128x128xbf16, #tpu.memory_space<vmem>>, vector<1x128x128xbf16>
    %226 = vector.shape_cast %225 : vector<1x128x128xbf16> to vector<128x128xbf16>
    %cst_167 = arith.constant dense<0.000000e+00> : vector<80x128xf32>
    %227 = tpu.matmul %224, %226, %cst_167 {dimension_numbers = #tpu.dot_dimension_numbers<[1], [0], [0], [1], [0, 0, 1, 1], [], []>} : vector<80x128xbf16>, vector<128x128xbf16>, vector<80x128xf32> -> vector<80x128xf32>
    %228 = arith.addf %222, %227 : vector<80x128xf32>
    %c2_168 = arith.constant 2 : index
    %c0_169 = arith.constant 0 : index
    %229 = vector.load %arg13[%c2_168, %c0_169] : memref<104x128xf32, #tpu.memory_space<vmem>>, vector<80x128xf32>
    %230 = arith.truncf %229 : vector<80x128xf32> to vector<80x128xbf16>
    %c2_170 = arith.constant 2 : index
    %c0_171 = arith.constant 0 : index
    %c0_172 = arith.constant 0 : index
    %231 = vector.load %arg3[%c2_170, %c0_171, %c0_172] : memref<36x128x128xbf16, #tpu.memory_space<vmem>>, vector<1x128x128xbf16>
    %232 = vector.shape_cast %231 : vector<1x128x128xbf16> to vector<128x128xbf16>
    %cst_173 = arith.constant dense<0.000000e+00> : vector<80x128xf32>
    %233 = tpu.matmul %230, %232, %cst_173 {dimension_numbers = #tpu.dot_dimension_numbers<[1], [0], [0], [1], [0, 0, 1, 1], [], []>} : vector<80x128xbf16>, vector<128x128xbf16>, vector<80x128xf32> -> vector<80x128xf32>
    %234 = arith.addf %228, %233 : vector<80x128xf32>
    %c10 = arith.constant 10 : index
    %c0_174 = arith.constant 0 : index
    %235 = vector.load %arg13[%c10, %c0_174] : memref<104x128xf32, #tpu.memory_space<vmem>>, vector<80x128xf32>
    %236 = arith.truncf %235 : vector<80x128xf32> to vector<80x128xbf16>
    %c3_175 = arith.constant 3 : index
    %c0_176 = arith.constant 0 : index
    %c0_177 = arith.constant 0 : index
    %237 = vector.load %arg3[%c3_175, %c0_176, %c0_177] : memref<36x128x128xbf16, #tpu.memory_space<vmem>>, vector<1x128x128xbf16>
    %238 = vector.shape_cast %237 : vector<1x128x128xbf16> to vector<128x128xbf16>
    %cst_178 = arith.constant dense<0.000000e+00> : vector<80x128xf32>
    %239 = tpu.matmul %236, %238, %cst_178 {dimension_numbers = #tpu.dot_dimension_numbers<[1], [0], [0], [1], [0, 0, 1, 1], [], []>} : vector<80x128xbf16>, vector<128x128xbf16>, vector<80x128xf32> -> vector<80x128xf32>
    %240 = arith.addf %234, %239 : vector<80x128xf32>
    %c11_179 = arith.constant 11 : index
    %c0_180 = arith.constant 0 : index
    %241 = vector.load %arg13[%c11_179, %c0_180] : memref<104x128xf32, #tpu.memory_space<vmem>>, vector<80x128xf32>
    %242 = arith.truncf %241 : vector<80x128xf32> to vector<80x128xbf16>
    %c4_181 = arith.constant 4 : index
    %c0_182 = arith.constant 0 : index
    %c0_183 = arith.constant 0 : index
    %243 = vector.load %arg3[%c4_181, %c0_182, %c0_183] : memref<36x128x128xbf16, #tpu.memory_space<vmem>>, vector<1x128x128xbf16>
    %244 = vector.shape_cast %243 : vector<1x128x128xbf16> to vector<128x128xbf16>
    %cst_184 = arith.constant dense<0.000000e+00> : vector<80x128xf32>
    %245 = tpu.matmul %242, %244, %cst_184 {dimension_numbers = #tpu.dot_dimension_numbers<[1], [0], [0], [1], [0, 0, 1, 1], [], []>} : vector<80x128xbf16>, vector<128x128xbf16>, vector<80x128xf32> -> vector<80x128xf32>
    %246 = arith.addf %240, %245 : vector<80x128xf32>
    %c12 = arith.constant 12 : index
    %c0_185 = arith.constant 0 : index
    %247 = vector.load %arg13[%c12, %c0_185] : memref<104x128xf32, #tpu.memory_space<vmem>>, vector<80x128xf32>
    %248 = arith.truncf %247 : vector<80x128xf32> to vector<80x128xbf16>
    %c5_186 = arith.constant 5 : index
    %c0_187 = arith.constant 0 : index
    %c0_188 = arith.constant 0 : index
    %249 = vector.load %arg3[%c5_186, %c0_187, %c0_188] : memref<36x128x128xbf16, #tpu.memory_space<vmem>>, vector<1x128x128xbf16>
    %250 = vector.shape_cast %249 : vector<1x128x128xbf16> to vector<128x128xbf16>
    %cst_189 = arith.constant dense<0.000000e+00> : vector<80x128xf32>
    %251 = tpu.matmul %248, %250, %cst_189 {dimension_numbers = #tpu.dot_dimension_numbers<[1], [0], [0], [1], [0, 0, 1, 1], [], []>} : vector<80x128xbf16>, vector<128x128xbf16>, vector<80x128xf32> -> vector<80x128xf32>
    %252 = arith.addf %246, %251 : vector<80x128xf32>
    %c20 = arith.constant 20 : index
    %c0_190 = arith.constant 0 : index
    %253 = vector.load %arg13[%c20, %c0_190] : memref<104x128xf32, #tpu.memory_space<vmem>>, vector<80x128xf32>
    %254 = arith.truncf %253 : vector<80x128xf32> to vector<80x128xbf16>
    %c6_191 = arith.constant 6 : index
    %c0_192 = arith.constant 0 : index
    %c0_193 = arith.constant 0 : index
    %255 = vector.load %arg3[%c6_191, %c0_192, %c0_193] : memref<36x128x128xbf16, #tpu.memory_space<vmem>>, vector<1x128x128xbf16>
    %256 = vector.shape_cast %255 : vector<1x128x128xbf16> to vector<128x128xbf16>
    %cst_194 = arith.constant dense<0.000000e+00> : vector<80x128xf32>
    %257 = tpu.matmul %254, %256, %cst_194 {dimension_numbers = #tpu.dot_dimension_numbers<[1], [0], [0], [1], [0, 0, 1, 1], [], []>} : vector<80x128xbf16>, vector<128x128xbf16>, vector<80x128xf32> -> vector<80x128xf32>
    %258 = arith.addf %252, %257 : vector<80x128xf32>
    %c21_195 = arith.constant 21 : index
    %c0_196 = arith.constant 0 : index
    %259 = vector.load %arg13[%c21_195, %c0_196] : memref<104x128xf32, #tpu.memory_space<vmem>>, vector<80x128xf32>
    %260 = arith.truncf %259 : vector<80x128xf32> to vector<80x128xbf16>
    %c7 = arith.constant 7 : index
    %c0_197 = arith.constant 0 : index
    %c0_198 = arith.constant 0 : index
    %261 = vector.load %arg3[%c7, %c0_197, %c0_198] : memref<36x128x128xbf16, #tpu.memory_space<vmem>>, vector<1x128x128xbf16>
    %262 = vector.shape_cast %261 : vector<1x128x128xbf16> to vector<128x128xbf16>
    %cst_199 = arith.constant dense<0.000000e+00> : vector<80x128xf32>
    %263 = tpu.matmul %260, %262, %cst_199 {dimension_numbers = #tpu.dot_dimension_numbers<[1], [0], [0], [1], [0, 0, 1, 1], [], []>} : vector<80x128xbf16>, vector<128x128xbf16>, vector<80x128xf32> -> vector<80x128xf32>
    %264 = arith.addf %258, %263 : vector<80x128xf32>
    %c22 = arith.constant 22 : index
    %c0_200 = arith.constant 0 : index
    %265 = vector.load %arg13[%c22, %c0_200] : memref<104x128xf32, #tpu.memory_space<vmem>>, vector<80x128xf32>
    %266 = arith.truncf %265 : vector<80x128xf32> to vector<80x128xbf16>
    %c8 = arith.constant 8 : index
    %c0_201 = arith.constant 0 : index
    %c0_202 = arith.constant 0 : index
    %267 = vector.load %arg3[%c8, %c0_201, %c0_202] : memref<36x128x128xbf16, #tpu.memory_space<vmem>>, vector<1x128x128xbf16>
    %268 = vector.shape_cast %267 : vector<1x128x128xbf16> to vector<128x128xbf16>
    %cst_203 = arith.constant dense<0.000000e+00> : vector<80x128xf32>
    %269 = tpu.matmul %266, %268, %cst_203 {dimension_numbers = #tpu.dot_dimension_numbers<[1], [0], [0], [1], [0, 0, 1, 1], [], []>} : vector<80x128xbf16>, vector<128x128xbf16>, vector<80x128xf32> -> vector<80x128xf32>
    %270 = arith.addf %264, %269 : vector<80x128xf32>
    %271 = vector.broadcast %214 : vector<1x128xf32> to vector<80x128xf32>
    %272 = arith.mulf %270, %271 : vector<80x128xf32>
    %273 = vector.broadcast %215 : vector<1x128xf32> to vector<80x128xf32>
    %274 = arith.addf %272, %273 : vector<80x128xf32>
    %cst_204 = arith.constant 0.000000e+00 : f32
    %275 = vector.broadcast %cst_204 : f32 to vector<80x128xf32>
    %276 = arith.maximumf %274, %275 : vector<80x128xf32>
    %277 = vector.broadcast %213 : vector<80x1xf32> to vector<80x128xf32>
    %278 = arith.mulf %276, %277 : vector<80x128xf32>
    %c11_205 = arith.constant 11 : index
    %c0_206 = arith.constant 0 : index
    %279 = vector.load %arg14[%c11_205, %c0_206] : memref<104x128xf32, #tpu.memory_space<vmem>>, vector<80x128xf32>
    tpu.vector_store %arg14[%c11_205, %c0_206], %278 {strides = array<i32>} : memref<104x128xf32, #tpu.memory_space<vmem>>, vector<80x128xf32>,
    %c2_207 = arith.constant 2 : index
    %c0_208 = arith.constant 0 : index
    %280 = vector.load %arg6[%c2_207, %c0_208] : memref<6x128xf32, #tpu.memory_space<vmem>>, vector<1x128xf32>
    %c2_209 = arith.constant 2 : index
    %c0_210 = arith.constant 0 : index
    %281 = vector.load %arg7[%c2_209, %c0_210] : memref<6x128xf32, #tpu.memory_space<vmem>>, vector<1x128xf32>
    %cst_211 = arith.constant 0.000000e+00 : f32
    %282 = vector.broadcast %cst_211 : f32 to vector<80x128xf32>
    %c0_212 = arith.constant 0 : index
    %c0_213 = arith.constant 0 : index
    %283 = vector.load %arg14[%c0_212, %c0_213] : memref<104x128xf32, #tpu.memory_space<vmem>>, vector<80x128xf32>
    %284 = arith.truncf %283 : vector<80x128xf32> to vector<80x128xbf16>
    %c9 = arith.constant 9 : index
    %c0_214 = arith.constant 0 : index
    %c0_215 = arith.constant 0 : index
    %285 = vector.load %arg3[%c9, %c0_214, %c0_215] : memref<36x128x128xbf16, #tpu.memory_space<vmem>>, vector<1x128x128xbf16>
    %286 = vector.shape_cast %285 : vector<1x128x128xbf16> to vector<128x128xbf16>
    %cst_216 = arith.constant dense<0.000000e+00> : vector<80x128xf32>
    %287 = tpu.matmul %284, %286, %cst_216 {dimension_numbers = #tpu.dot_dimension_numbers<[1], [0], [0], [1], [0, 0, 1, 1], [], []>} : vector<80x128xbf16>, vector<128x128xbf16>, vector<80x128xf32> -> vector<80x128xf32>
    %288 = arith.addf %282, %287 : vector<80x128xf32>
    %c1_217 = arith.constant 1 : index
    %c0_218 = arith.constant 0 : index
    %289 = vector.load %arg14[%c1_217, %c0_218] : memref<104x128xf32, #tpu.memory_space<vmem>>, vector<80x128xf32>
    %290 = arith.truncf %289 : vector<80x128xf32> to vector<80x128xbf16>
    %c10_219 = arith.constant 10 : index
    %c0_220 = arith.constant 0 : index
    %c0_221 = arith.constant 0 : index
    %291 = vector.load %arg3[%c10_219, %c0_220, %c0_221] : memref<36x128x128xbf16, #tpu.memory_space<vmem>>, vector<1x128x128xbf16>
    %292 = vector.shape_cast %291 : vector<1x128x128xbf16> to vector<128x128xbf16>
    %cst_222 = arith.constant dense<0.000000e+00> : vector<80x128xf32>
    %293 = tpu.matmul %290, %292, %cst_222 {dimension_numbers = #tpu.dot_dimension_numbers<[1], [0], [0], [1], [0, 0, 1, 1], [], []>} : vector<80x128xbf16>, vector<128x128xbf16>, vector<80x128xf32> -> vector<80x128xf32>
    %294 = arith.addf %288, %293 : vector<80x128xf32>
    %c2_223 = arith.constant 2 : index
    %c0_224 = arith.constant 0 : index
    %295 = vector.load %arg14[%c2_223, %c0_224] : memref<104x128xf32, #tpu.memory_space<vmem>>, vector<80x128xf32>
    %296 = arith.truncf %295 : vector<80x128xf32> to vector<80x128xbf16>
    %c11_225 = arith.constant 11 : index
    %c0_226 = arith.constant 0 : index
    %c0_227 = arith.constant 0 : index
    %297 = vector.load %arg3[%c11_225, %c0_226, %c0_227] : memref<36x128x128xbf16, #tpu.memory_space<vmem>>, vector<1x128x128xbf16>
    %298 = vector.shape_cast %297 : vector<1x128x128xbf16> to vector<128x128xbf16>
    %cst_228 = arith.constant dense<0.000000e+00> : vector<80x128xf32>
    %299 = tpu.matmul %296, %298, %cst_228 {dimension_numbers = #tpu.dot_dimension_numbers<[1], [0], [0], [1], [0, 0, 1, 1], [], []>} : vector<80x128xbf16>, vector<128x128xbf16>, vector<80x128xf32> -> vector<80x128xf32>
    %300 = arith.addf %294, %299 : vector<80x128xf32>
    %c10_229 = arith.constant 10 : index
    %c0_230 = arith.constant 0 : index
    %301 = vector.load %arg14[%c10_229, %c0_230] : memref<104x128xf32, #tpu.memory_space<vmem>>, vector<80x128xf32>
    %302 = arith.truncf %301 : vector<80x128xf32> to vector<80x128xbf16>
    %c12_231 = arith.constant 12 : index
    %c0_232 = arith.constant 0 : index
    %c0_233 = arith.constant 0 : index
    %303 = vector.load %arg3[%c12_231, %c0_232, %c0_233] : memref<36x128x128xbf16, #tpu.memory_space<vmem>>, vector<1x128x128xbf16>
    %304 = vector.shape_cast %303 : vector<1x128x128xbf16> to vector<128x128xbf16>
    %cst_234 = arith.constant dense<0.000000e+00> : vector<80x128xf32>
    %305 = tpu.matmul %302, %304, %cst_234 {dimension_numbers = #tpu.dot_dimension_numbers<[1], [0], [0], [1], [0, 0, 1, 1], [], []>} : vector<80x128xbf16>, vector<128x128xbf16>, vector<80x128xf32> -> vector<80x128xf32>
    %306 = arith.addf %300, %305 : vector<80x128xf32>
    %c11_235 = arith.constant 11 : index
    %c0_236 = arith.constant 0 : index
    %307 = vector.load %arg14[%c11_235, %c0_236] : memref<104x128xf32, #tpu.memory_space<vmem>>, vector<80x128xf32>
    %308 = arith.truncf %307 : vector<80x128xf32> to vector<80x128xbf16>
    %c13 = arith.constant 13 : index
    %c0_237 = arith.constant 0 : index
    %c0_238 = arith.constant 0 : index
    %309 = vector.load %arg3[%c13, %c0_237, %c0_238] : memref<36x128x128xbf16, #tpu.memory_space<vmem>>, vector<1x128x128xbf16>
    %310 = vector.shape_cast %309 : vector<1x128x128xbf16> to vector<128x128xbf16>
    %cst_239 = arith.constant dense<0.000000e+00> : vector<80x128xf32>
    %311 = tpu.matmul %308, %310, %cst_239 {dimension_numbers = #tpu.dot_dimension_numbers<[1], [0], [0], [1], [0, 0, 1, 1], [], []>} : vector<80x128xbf16>, vector<128x128xbf16>, vector<80x128xf32> -> vector<80x128xf32>
    %312 = arith.addf %306, %311 : vector<80x128xf32>
    %c12_240 = arith.constant 12 : index
    %c0_241 = arith.constant 0 : index
    %313 = vector.load %arg14[%c12_240, %c0_241] : memref<104x128xf32, #tpu.memory_space<vmem>>, vector<80x128xf32>
    %314 = arith.truncf %313 : vector<80x128xf32> to vector<80x128xbf16>
    %c14 = arith.constant 14 : index
    %c0_242 = arith.constant 0 : index
    %c0_243 = arith.constant 0 : index
    %315 = vector.load %arg3[%c14, %c0_242, %c0_243] : memref<36x128x128xbf16, #tpu.memory_space<vmem>>, vector<1x128x128xbf16>
    %316 = vector.shape_cast %315 : vector<1x128x128xbf16> to vector<128x128xbf16>
    %cst_244 = arith.constant dense<0.000000e+00> : vector<80x128xf32>
    %317 = tpu.matmul %314, %316, %cst_244 {dimension_numbers = #tpu.dot_dimension_numbers<[1], [0], [0], [1], [0, 0, 1, 1], [], []>} : vector<80x128xbf16>, vector<128x128xbf16>, vector<80x128xf32> -> vector<80x128xf32>
    %318 = arith.addf %312, %317 : vector<80x128xf32>
    %c20_245 = arith.constant 20 : index
    %c0_246 = arith.constant 0 : index
    %319 = vector.load %arg14[%c20_245, %c0_246] : memref<104x128xf32, #tpu.memory_space<vmem>>, vector<80x128xf32>
    %320 = arith.truncf %319 : vector<80x128xf32> to vector<80x128xbf16>
    %c15 = arith.constant 15 : index
    %c0_247 = arith.constant 0 : index
    %c0_248 = arith.constant 0 : index
    %321 = vector.load %arg3[%c15, %c0_247, %c0_248] : memref<36x128x128xbf16, #tpu.memory_space<vmem>>, vector<1x128x128xbf16>
    %322 = vector.shape_cast %321 : vector<1x128x128xbf16> to vector<128x128xbf16>
    %cst_249 = arith.constant dense<0.000000e+00> : vector<80x128xf32>
    %323 = tpu.matmul %320, %322, %cst_249 {dimension_numbers = #tpu.dot_dimension_numbers<[1], [0], [0], [1], [0, 0, 1, 1], [], []>} : vector<80x128xbf16>, vector<128x128xbf16>, vector<80x128xf32> -> vector<80x128xf32>
    %324 = arith.addf %318, %323 : vector<80x128xf32>
    %c21_250 = arith.constant 21 : index
    %c0_251 = arith.constant 0 : index
    %325 = vector.load %arg14[%c21_250, %c0_251] : memref<104x128xf32, #tpu.memory_space<vmem>>, vector<80x128xf32>
    %326 = arith.truncf %325 : vector<80x128xf32> to vector<80x128xbf16>
    %c16_252 = arith.constant 16 : index
    %c0_253 = arith.constant 0 : index
    %c0_254 = arith.constant 0 : index
    %327 = vector.load %arg3[%c16_252, %c0_253, %c0_254] : memref<36x128x128xbf16, #tpu.memory_space<vmem>>, vector<1x128x128xbf16>
    %328 = vector.shape_cast %327 : vector<1x128x128xbf16> to vector<128x128xbf16>
    %cst_255 = arith.constant dense<0.000000e+00> : vector<80x128xf32>
    %329 = tpu.matmul %326, %328, %cst_255 {dimension_numbers = #tpu.dot_dimension_numbers<[1], [0], [0], [1], [0, 0, 1, 1], [], []>} : vector<80x128xbf16>, vector<128x128xbf16>, vector<80x128xf32> -> vector<80x128xf32>
    %330 = arith.addf %324, %329 : vector<80x128xf32>
    %c22_256 = arith.constant 22 : index
    %c0_257 = arith.constant 0 : index
    %331 = vector.load %arg14[%c22_256, %c0_257] : memref<104x128xf32, #tpu.memory_space<vmem>>, vector<80x128xf32>
    %332 = arith.truncf %331 : vector<80x128xf32> to vector<80x128xbf16>
    %c17 = arith.constant 17 : index
    %c0_258 = arith.constant 0 : index
    %c0_259 = arith.constant 0 : index
    %333 = vector.load %arg3[%c17, %c0_258, %c0_259] : memref<36x128x128xbf16, #tpu.memory_space<vmem>>, vector<1x128x128xbf16>
    %334 = vector.shape_cast %333 : vector<1x128x128xbf16> to vector<128x128xbf16>
    %cst_260 = arith.constant dense<0.000000e+00> : vector<80x128xf32>
    %335 = tpu.matmul %332, %334, %cst_260 {dimension_numbers = #tpu.dot_dimension_numbers<[1], [0], [0], [1], [0, 0, 1, 1], [], []>} : vector<80x128xbf16>, vector<128x128xbf16>, vector<80x128xf32> -> vector<80x128xf32>
    %336 = arith.addf %330, %335 : vector<80x128xf32>
    %c11_261 = arith.constant 11 : index
    %c0_262 = arith.constant 0 : index
    %337 = vector.load %arg13[%c11_261, %c0_262] : memref<104x128xf32, #tpu.memory_space<vmem>>, vector<80x128xf32>
    %338 = vector.broadcast %280 : vector<1x128xf32> to vector<80x128xf32>
    %339 = arith.mulf %336, %338 : vector<80x128xf32>
    %340 = vector.broadcast %281 : vector<1x128xf32> to vector<80x128xf32>
    %341 = arith.addf %339, %340 : vector<80x128xf32>
    %342 = arith.addf %341, %337 : vector<80x128xf32>
    %cst_263 = arith.constant 0.000000e+00 : f32
    %343 = vector.broadcast %cst_263 : f32 to vector<80x128xf32>
    %344 = arith.maximumf %342, %343 : vector<80x128xf32>
    %345 = vector.broadcast %213 : vector<80x1xf32> to vector<80x128xf32>
    %346 = arith.mulf %344, %345 : vector<80x128xf32>
    %c11_264 = arith.constant 11 : index
    %c0_265 = arith.constant 0 : index
    %347 = vector.load %arg15[%c11_264, %c0_265] : memref<104x128xf32, #tpu.memory_space<vmem>>, vector<80x128xf32>
    tpu.vector_store %arg15[%c11_264, %c0_265], %346 {strides = array<i32>} : memref<104x128xf32, #tpu.memory_space<vmem>>, vector<80x128xf32>,
    %c0_266 = arith.constant 0 : index
    %c0_267 = arith.constant 0 : index
    %348 = vector.load %arg5[%c0_266, %c0_267] : memref<160x104xbf16, #tpu.memory_space<vmem>>, vector<160x104xbf16>
    %c0_268 = arith.constant 0 : index
    %c0_269 = arith.constant 0 : index
    %349 = vector.load %arg15[%c0_268, %c0_269] : memref<104x128xf32, #tpu.memory_space<vmem>>, vector<104x128xf32>
    %350 = arith.truncf %349 : vector<104x128xf32> to vector<104x128xbf16>
    %cst_270 = arith.constant dense<0.000000e+00> : vector<160x128xf32>
    %351 = tpu.matmul %348, %350, %cst_270 {dimension_numbers = #tpu.dot_dimension_numbers<[1], [0], [0], [1], [0, 0, 1, 1], [], []>} : vector<160x104xbf16>, vector<104x128xbf16>, vector<160x128xf32> -> vector<160x128xf32>
    %c0_271 = arith.constant 0 : index
    %c0_272 = arith.constant 0 : index
    %352 = vector.load %arg16[%c0_271, %c0_272] : memref<160x128xf32, #tpu.memory_space<vmem>>, vector<160x128xf32>
    tpu.vector_store %arg16[%c0_271, %c0_272], %351 {strides = array<i32>} : memref<160x128xf32, #tpu.memory_space<vmem>>, vector<160x128xf32>,
    %c0_273 = arith.constant 0 : index
    %c0_274 = arith.constant 0 : index
    %353 = vector.load %arg9[%c0_273, %c0_274] : memref<24x1xf32, #tpu.memory_space<vmem>>, vector<24x1xf32>
    %c3_275 = arith.constant 3 : index
    %c0_276 = arith.constant 0 : index
    %354 = vector.load %arg6[%c3_275, %c0_276] : memref<6x128xf32, #tpu.memory_space<vmem>>, vector<1x128xf32>
    %c3_277 = arith.constant 3 : index
    %c0_278 = arith.constant 0 : index
    %355 = vector.load %arg7[%c3_277, %c0_278] : memref<6x128xf32, #tpu.memory_space<vmem>>, vector<1x128xf32>
    %cst_279 = arith.constant 0.000000e+00 : f32
    %356 = vector.broadcast %cst_279 : f32 to vector<24x128xf32>
    %c0_280 = arith.constant 0 : index
    %c0_281 = arith.constant 0 : index
    %357 = vector.load %arg16[%c0_280, %c0_281] : memref<160x128xf32, #tpu.memory_space<vmem>>, vector<24x128xf32>
    %358 = arith.truncf %357 : vector<24x128xf32> to vector<24x128xbf16>
    %c18 = arith.constant 18 : index
    %c0_282 = arith.constant 0 : index
    %c0_283 = arith.constant 0 : index
    %359 = vector.load %arg3[%c18, %c0_282, %c0_283] : memref<36x128x128xbf16, #tpu.memory_space<vmem>>, vector<1x128x128xbf16>
    %360 = vector.shape_cast %359 : vector<1x128x128xbf16> to vector<128x128xbf16>
    %cst_284 = arith.constant dense<0.000000e+00> : vector<24x128xf32>
    %361 = tpu.matmul %358, %360, %cst_284 {dimension_numbers = #tpu.dot_dimension_numbers<[1], [0], [0], [1], [0, 0, 1, 1], [], []>} : vector<24x128xbf16>, vector<128x128xbf16>, vector<24x128xf32> -> vector<24x128xf32>
    %362 = arith.addf %356, %361 : vector<24x128xf32>
    %c32_285 = arith.constant 32 : index
    %c0_286 = arith.constant 0 : index
    %363 = vector.load %arg16[%c32_285, %c0_286] : memref<160x128xf32, #tpu.memory_space<vmem>>, vector<24x128xf32>
    %364 = arith.truncf %363 : vector<24x128xf32> to vector<24x128xbf16>
    %c19 = arith.constant 19 : index
    %c0_287 = arith.constant 0 : index
    %c0_288 = arith.constant 0 : index
    %365 = vector.load %arg3[%c19, %c0_287, %c0_288] : memref<36x128x128xbf16, #tpu.memory_space<vmem>>, vector<1x128x128xbf16>
    %366 = vector.shape_cast %365 : vector<1x128x128xbf16> to vector<128x128xbf16>
    %cst_289 = arith.constant dense<0.000000e+00> : vector<24x128xf32>
    %367 = tpu.matmul %364, %366, %cst_289 {dimension_numbers = #tpu.dot_dimension_numbers<[1], [0], [0], [1], [0, 0, 1, 1], [], []>} : vector<24x128xbf16>, vector<128x128xbf16>, vector<24x128xf32> -> vector<24x128xf32>
    %368 = arith.addf %362, %367 : vector<24x128xf32>
    %c1_290 = arith.constant 1 : index
    %c0_291 = arith.constant 0 : index
    %369 = vector.load %arg16[%c1_290, %c0_291] : memref<160x128xf32, #tpu.memory_space<vmem>>, vector<24x128xf32>
    %370 = arith.truncf %369 : vector<24x128xf32> to vector<24x128xbf16>
    %c20_292 = arith.constant 20 : index
    %c0_293 = arith.constant 0 : index
    %c0_294 = arith.constant 0 : index
    %371 = vector.load %arg3[%c20_292, %c0_293, %c0_294] : memref<36x128x128xbf16, #tpu.memory_space<vmem>>, vector<1x128x128xbf16>
    %372 = vector.shape_cast %371 : vector<1x128x128xbf16> to vector<128x128xbf16>
    %cst_295 = arith.constant dense<0.000000e+00> : vector<24x128xf32>
    %373 = tpu.matmul %370, %372, %cst_295 {dimension_numbers = #tpu.dot_dimension_numbers<[1], [0], [0], [1], [0, 0, 1, 1], [], []>} : vector<24x128xbf16>, vector<128x128xbf16>, vector<24x128xf32> -> vector<24x128xf32>
    %374 = arith.addf %368, %373 : vector<24x128xf32>
    %c64_296 = arith.constant 64 : index
    %c0_297 = arith.constant 0 : index
    %375 = vector.load %arg16[%c64_296, %c0_297] : memref<160x128xf32, #tpu.memory_space<vmem>>, vector<24x128xf32>
    %376 = arith.truncf %375 : vector<24x128xf32> to vector<24x128xbf16>
    %c21_298 = arith.constant 21 : index
    %c0_299 = arith.constant 0 : index
    %c0_300 = arith.constant 0 : index
    %377 = vector.load %arg3[%c21_298, %c0_299, %c0_300] : memref<36x128x128xbf16, #tpu.memory_space<vmem>>, vector<1x128x128xbf16>
    %378 = vector.shape_cast %377 : vector<1x128x128xbf16> to vector<128x128xbf16>
    %cst_301 = arith.constant dense<0.000000e+00> : vector<24x128xf32>
    %379 = tpu.matmul %376, %378, %cst_301 {dimension_numbers = #tpu.dot_dimension_numbers<[1], [0], [0], [1], [0, 0, 1, 1], [], []>} : vector<24x128xbf16>, vector<128x128xbf16>, vector<24x128xf32> -> vector<24x128xf32>
    %380 = arith.addf %374, %379 : vector<24x128xf32>
    %c96_302 = arith.constant 96 : index
    %c0_303 = arith.constant 0 : index
    %381 = vector.load %arg16[%c96_302, %c0_303] : memref<160x128xf32, #tpu.memory_space<vmem>>, vector<24x128xf32>
    %382 = arith.truncf %381 : vector<24x128xf32> to vector<24x128xbf16>
    %c22_304 = arith.constant 22 : index
    %c0_305 = arith.constant 0 : index
    %c0_306 = arith.constant 0 : index
    %383 = vector.load %arg3[%c22_304, %c0_305, %c0_306] : memref<36x128x128xbf16, #tpu.memory_space<vmem>>, vector<1x128x128xbf16>
    %384 = vector.shape_cast %383 : vector<1x128x128xbf16> to vector<128x128xbf16>
    %cst_307 = arith.constant dense<0.000000e+00> : vector<24x128xf32>
    %385 = tpu.matmul %382, %384, %cst_307 {dimension_numbers = #tpu.dot_dimension_numbers<[1], [0], [0], [1], [0, 0, 1, 1], [], []>} : vector<24x128xbf16>, vector<128x128xbf16>, vector<24x128xf32> -> vector<24x128xf32>
    %386 = arith.addf %380, %385 : vector<24x128xf32>
    %c65 = arith.constant 65 : index
    %c0_308 = arith.constant 0 : index
    %387 = vector.load %arg16[%c65, %c0_308] : memref<160x128xf32, #tpu.memory_space<vmem>>, vector<24x128xf32>
    %388 = arith.truncf %387 : vector<24x128xf32> to vector<24x128xbf16>
    %c23 = arith.constant 23 : index
    %c0_309 = arith.constant 0 : index
    %c0_310 = arith.constant 0 : index
    %389 = vector.load %arg3[%c23, %c0_309, %c0_310] : memref<36x128x128xbf16, #tpu.memory_space<vmem>>, vector<1x128x128xbf16>
    %390 = vector.shape_cast %389 : vector<1x128x128xbf16> to vector<128x128xbf16>
    %cst_311 = arith.constant dense<0.000000e+00> : vector<24x128xf32>
    %391 = tpu.matmul %388, %390, %cst_311 {dimension_numbers = #tpu.dot_dimension_numbers<[1], [0], [0], [1], [0, 0, 1, 1], [], []>} : vector<24x128xbf16>, vector<128x128xbf16>, vector<24x128xf32> -> vector<24x128xf32>
    %392 = arith.addf %386, %391 : vector<24x128xf32>
    %c6_312 = arith.constant 6 : index
    %c0_313 = arith.constant 0 : index
    %393 = vector.load %arg16[%c6_312, %c0_313] : memref<160x128xf32, #tpu.memory_space<vmem>>, vector<24x128xf32>
    %394 = arith.truncf %393 : vector<24x128xf32> to vector<24x128xbf16>
    %c24 = arith.constant 24 : index
    %c0_314 = arith.constant 0 : index
    %c0_315 = arith.constant 0 : index
    %395 = vector.load %arg3[%c24, %c0_314, %c0_315] : memref<36x128x128xbf16, #tpu.memory_space<vmem>>, vector<1x128x128xbf16>
    %396 = vector.shape_cast %395 : vector<1x128x128xbf16> to vector<128x128xbf16>
    %cst_316 = arith.constant dense<0.000000e+00> : vector<24x128xf32>
    %397 = tpu.matmul %394, %396, %cst_316 {dimension_numbers = #tpu.dot_dimension_numbers<[1], [0], [0], [1], [0, 0, 1, 1], [], []>} : vector<24x128xbf16>, vector<128x128xbf16>, vector<24x128xf32> -> vector<24x128xf32>
    %398 = arith.addf %392, %397 : vector<24x128xf32>
    %c38 = arith.constant 38 : index
    %c0_317 = arith.constant 0 : index
    %399 = vector.load %arg16[%c38, %c0_317] : memref<160x128xf32, #tpu.memory_space<vmem>>, vector<24x128xf32>
    %400 = arith.truncf %399 : vector<24x128xf32> to vector<24x128xbf16>
    %c25 = arith.constant 25 : index
    %c0_318 = arith.constant 0 : index
    %c0_319 = arith.constant 0 : index
    %401 = vector.load %arg3[%c25, %c0_318, %c0_319] : memref<36x128x128xbf16, #tpu.memory_space<vmem>>, vector<1x128x128xbf16>
    %402 = vector.shape_cast %401 : vector<1x128x128xbf16> to vector<128x128xbf16>
    %cst_320 = arith.constant dense<0.000000e+00> : vector<24x128xf32>
    %403 = tpu.matmul %400, %402, %cst_320 {dimension_numbers = #tpu.dot_dimension_numbers<[1], [0], [0], [1], [0, 0, 1, 1], [], []>} : vector<24x128xbf16>, vector<128x128xbf16>, vector<24x128xf32> -> vector<24x128xf32>
    %404 = arith.addf %398, %403 : vector<24x128xf32>
    %c7_321 = arith.constant 7 : index
    %c0_322 = arith.constant 0 : index
    %405 = vector.load %arg16[%c7_321, %c0_322] : memref<160x128xf32, #tpu.memory_space<vmem>>, vector<24x128xf32>
    %406 = arith.truncf %405 : vector<24x128xf32> to vector<24x128xbf16>
    %c26 = arith.constant 26 : index
    %c0_323 = arith.constant 0 : index
    %c0_324 = arith.constant 0 : index
    %407 = vector.load %arg3[%c26, %c0_323, %c0_324] : memref<36x128x128xbf16, #tpu.memory_space<vmem>>, vector<1x128x128xbf16>
    %408 = vector.shape_cast %407 : vector<1x128x128xbf16> to vector<128x128xbf16>
    %cst_325 = arith.constant dense<0.000000e+00> : vector<24x128xf32>
    %409 = tpu.matmul %406, %408, %cst_325 {dimension_numbers = #tpu.dot_dimension_numbers<[1], [0], [0], [1], [0, 0, 1, 1], [], []>} : vector<24x128xbf16>, vector<128x128xbf16>, vector<24x128xf32> -> vector<24x128xf32>
    %410 = arith.addf %404, %409 : vector<24x128xf32>
    %411 = vector.broadcast %354 : vector<1x128xf32> to vector<24x128xf32>
    %412 = arith.mulf %410, %411 : vector<24x128xf32>
    %413 = vector.broadcast %355 : vector<1x128xf32> to vector<24x128xf32>
    %414 = arith.addf %412, %413 : vector<24x128xf32>
    %cst_326 = arith.constant 0.000000e+00 : f32
    %415 = vector.broadcast %cst_326 : f32 to vector<24x128xf32>
    %416 = arith.maximumf %414, %415 : vector<24x128xf32>
    %417 = vector.broadcast %353 : vector<24x1xf32> to vector<24x128xf32>
    %418 = arith.mulf %416, %417 : vector<24x128xf32>
    %c7_327 = arith.constant 7 : index
    %c0_328 = arith.constant 0 : index
    %419 = vector.load %arg17[%c7_327, %c0_328] : memref<48x128xf32, #tpu.memory_space<vmem>>, vector<24x128xf32>
    tpu.vector_store %arg17[%c7_327, %c0_328], %418 {strides = array<i32>} : memref<48x128xf32, #tpu.memory_space<vmem>>, vector<24x128xf32>,
    %c4_329 = arith.constant 4 : index
    %c0_330 = arith.constant 0 : index
    %420 = vector.load %arg6[%c4_329, %c0_330] : memref<6x128xf32, #tpu.memory_space<vmem>>, vector<1x128xf32>
    %c4_331 = arith.constant 4 : index
    %c0_332 = arith.constant 0 : index
    %421 = vector.load %arg7[%c4_331, %c0_332] : memref<6x128xf32, #tpu.memory_space<vmem>>, vector<1x128xf32>
    %cst_333 = arith.constant 0.000000e+00 : f32
    %422 = vector.broadcast %cst_333 : f32 to vector<24x128xf32>
    %c0_334 = arith.constant 0 : index
    %c0_335 = arith.constant 0 : index
    %423 = vector.load %arg17[%c0_334, %c0_335] : memref<48x128xf32, #tpu.memory_space<vmem>>, vector<24x128xf32>
    %424 = arith.truncf %423 : vector<24x128xf32> to vector<24x128xbf16>
    %c27 = arith.constant 27 : index
    %c0_336 = arith.constant 0 : index
    %c0_337 = arith.constant 0 : index
    %425 = vector.load %arg3[%c27, %c0_336, %c0_337] : memref<36x128x128xbf16, #tpu.memory_space<vmem>>, vector<1x128x128xbf16>
    %426 = vector.shape_cast %425 : vector<1x128x128xbf16> to vector<128x128xbf16>
    %cst_338 = arith.constant dense<0.000000e+00> : vector<24x128xf32>
    %427 = tpu.matmul %424, %426, %cst_338 {dimension_numbers = #tpu.dot_dimension_numbers<[1], [0], [0], [1], [0, 0, 1, 1], [], []>} : vector<24x128xbf16>, vector<128x128xbf16>, vector<24x128xf32> -> vector<24x128xf32>
    %428 = arith.addf %422, %427 : vector<24x128xf32>
    %c1_339 = arith.constant 1 : index
    %c0_340 = arith.constant 0 : index
    %429 = vector.load %arg17[%c1_339, %c0_340] : memref<48x128xf32, #tpu.memory_space<vmem>>, vector<24x128xf32>
    %430 = arith.truncf %429 : vector<24x128xf32> to vector<24x128xbf16>
    %c28 = arith.constant 28 : index
    %c0_341 = arith.constant 0 : index
    %c0_342 = arith.constant 0 : index
    %431 = vector.load %arg3[%c28, %c0_341, %c0_342] : memref<36x128x128xbf16, #tpu.memory_space<vmem>>, vector<1x128x128xbf16>
    %432 = vector.shape_cast %431 : vector<1x128x128xbf16> to vector<128x128xbf16>
    %cst_343 = arith.constant dense<0.000000e+00> : vector<24x128xf32>
    %433 = tpu.matmul %430, %432, %cst_343 {dimension_numbers = #tpu.dot_dimension_numbers<[1], [0], [0], [1], [0, 0, 1, 1], [], []>} : vector<24x128xbf16>, vector<128x128xbf16>, vector<24x128xf32> -> vector<24x128xf32>
    %434 = arith.addf %428, %433 : vector<24x128xf32>
    %c2_344 = arith.constant 2 : index
    %c0_345 = arith.constant 0 : index
    %435 = vector.load %arg17[%c2_344, %c0_345] : memref<48x128xf32, #tpu.memory_space<vmem>>, vector<24x128xf32>
    %436 = arith.truncf %435 : vector<24x128xf32> to vector<24x128xbf16>
    %c29 = arith.constant 29 : index
    %c0_346 = arith.constant 0 : index
    %c0_347 = arith.constant 0 : index
    %437 = vector.load %arg3[%c29, %c0_346, %c0_347] : memref<36x128x128xbf16, #tpu.memory_space<vmem>>, vector<1x128x128xbf16>
    %438 = vector.shape_cast %437 : vector<1x128x128xbf16> to vector<128x128xbf16>
    %cst_348 = arith.constant dense<0.000000e+00> : vector<24x128xf32>
    %439 = tpu.matmul %436, %438, %cst_348 {dimension_numbers = #tpu.dot_dimension_numbers<[1], [0], [0], [1], [0, 0, 1, 1], [], []>} : vector<24x128xbf16>, vector<128x128xbf16>, vector<24x128xf32> -> vector<24x128xf32>
    %440 = arith.addf %434, %439 : vector<24x128xf32>
    %c6_349 = arith.constant 6 : index
    %c0_350 = arith.constant 0 : index
    %441 = vector.load %arg17[%c6_349, %c0_350] : memref<48x128xf32, #tpu.memory_space<vmem>>, vector<24x128xf32>
    %442 = arith.truncf %441 : vector<24x128xf32> to vector<24x128xbf16>
    %c30 = arith.constant 30 : index
    %c0_351 = arith.constant 0 : index
    %c0_352 = arith.constant 0 : index
    %443 = vector.load %arg3[%c30, %c0_351, %c0_352] : memref<36x128x128xbf16, #tpu.memory_space<vmem>>, vector<1x128x128xbf16>
    %444 = vector.shape_cast %443 : vector<1x128x128xbf16> to vector<128x128xbf16>
    %cst_353 = arith.constant dense<0.000000e+00> : vector<24x128xf32>
    %445 = tpu.matmul %442, %444, %cst_353 {dimension_numbers = #tpu.dot_dimension_numbers<[1], [0], [0], [1], [0, 0, 1, 1], [], []>} : vector<24x128xbf16>, vector<128x128xbf16>, vector<24x128xf32> -> vector<24x128xf32>
    %446 = arith.addf %440, %445 : vector<24x128xf32>
    %c7_354 = arith.constant 7 : index
    %c0_355 = arith.constant 0 : index
    %447 = vector.load %arg17[%c7_354, %c0_355] : memref<48x128xf32, #tpu.memory_space<vmem>>, vector<24x128xf32>
    %448 = arith.truncf %447 : vector<24x128xf32> to vector<24x128xbf16>
    %c31_356 = arith.constant 31 : index
    %c0_357 = arith.constant 0 : index
    %c0_358 = arith.constant 0 : index
    %449 = vector.load %arg3[%c31_356, %c0_357, %c0_358] : memref<36x128x128xbf16, #tpu.memory_space<vmem>>, vector<1x128x128xbf16>
    %450 = vector.shape_cast %449 : vector<1x128x128xbf16> to vector<128x128xbf16>
    %cst_359 = arith.constant dense<0.000000e+00> : vector<24x128xf32>
    %451 = tpu.matmul %448, %450, %cst_359 {dimension_numbers = #tpu.dot_dimension_numbers<[1], [0], [0], [1], [0, 0, 1, 1], [], []>} : vector<24x128xbf16>, vector<128x128xbf16>, vector<24x128xf32> -> vector<24x128xf32>
    %452 = arith.addf %446, %451 : vector<24x128xf32>
    %c8_360 = arith.constant 8 : index
    %c0_361 = arith.constant 0 : index
    %453 = vector.load %arg17[%c8_360, %c0_361] : memref<48x128xf32, #tpu.memory_space<vmem>>, vector<24x128xf32>
    %454 = arith.truncf %453 : vector<24x128xf32> to vector<24x128xbf16>
    %c32_362 = arith.constant 32 : index
    %c0_363 = arith.constant 0 : index
    %c0_364 = arith.constant 0 : index
    %455 = vector.load %arg3[%c32_362, %c0_363, %c0_364] : memref<36x128x128xbf16, #tpu.memory_space<vmem>>, vector<1x128x128xbf16>
    %456 = vector.shape_cast %455 : vector<1x128x128xbf16> to vector<128x128xbf16>
    %cst_365 = arith.constant dense<0.000000e+00> : vector<24x128xf32>
    %457 = tpu.matmul %454, %456, %cst_365 {dimension_numbers = #tpu.dot_dimension_numbers<[1], [0], [0], [1], [0, 0, 1, 1], [], []>} : vector<24x128xbf16>, vector<128x128xbf16>, vector<24x128xf32> -> vector<24x128xf32>
    %458 = arith.addf %452, %457 : vector<24x128xf32>
    %c12_366 = arith.constant 12 : index
    %c0_367 = arith.constant 0 : index
    %459 = vector.load %arg17[%c12_366, %c0_367] : memref<48x128xf32, #tpu.memory_space<vmem>>, vector<24x128xf32>
    %460 = arith.truncf %459 : vector<24x128xf32> to vector<24x128xbf16>
    %c33 = arith.constant 33 : index
    %c0_368 = arith.constant 0 : index
    %c0_369 = arith.constant 0 : index
    %461 = vector.load %arg3[%c33, %c0_368, %c0_369] : memref<36x128x128xbf16, #tpu.memory_space<vmem>>, vector<1x128x128xbf16>
    %462 = vector.shape_cast %461 : vector<1x128x128xbf16> to vector<128x128xbf16>
    %cst_370 = arith.constant dense<0.000000e+00> : vector<24x128xf32>
    %463 = tpu.matmul %460, %462, %cst_370 {dimension_numbers = #tpu.dot_dimension_numbers<[1], [0], [0], [1], [0, 0, 1, 1], [], []>} : vector<24x128xbf16>, vector<128x128xbf16>, vector<24x128xf32> -> vector<24x128xf32>
    %464 = arith.addf %458, %463 : vector<24x128xf32>
    %c13_371 = arith.constant 13 : index
    %c0_372 = arith.constant 0 : index
    %465 = vector.load %arg17[%c13_371, %c0_372] : memref<48x128xf32, #tpu.memory_space<vmem>>, vector<24x128xf32>
    %466 = arith.truncf %465 : vector<24x128xf32> to vector<24x128xbf16>
    %c34 = arith.constant 34 : index
    %c0_373 = arith.constant 0 : index
    %c0_374 = arith.constant 0 : index
    %467 = vector.load %arg3[%c34, %c0_373, %c0_374] : memref<36x128x128xbf16, #tpu.memory_space<vmem>>, vector<1x128x128xbf16>
    %468 = vector.shape_cast %467 : vector<1x128x128xbf16> to vector<128x128xbf16>
    %cst_375 = arith.constant dense<0.000000e+00> : vector<24x128xf32>
    %469 = tpu.matmul %466, %468, %cst_375 {dimension_numbers = #tpu.dot_dimension_numbers<[1], [0], [0], [1], [0, 0, 1, 1], [], []>} : vector<24x128xbf16>, vector<128x128xbf16>, vector<24x128xf32> -> vector<24x128xf32>
    %470 = arith.addf %464, %469 : vector<24x128xf32>
    %c14_376 = arith.constant 14 : index
    %c0_377 = arith.constant 0 : index
    %471 = vector.load %arg17[%c14_376, %c0_377] : memref<48x128xf32, #tpu.memory_space<vmem>>, vector<24x128xf32>
    %472 = arith.truncf %471 : vector<24x128xf32> to vector<24x128xbf16>
    %c35 = arith.constant 35 : index
    %c0_378 = arith.constant 0 : index
    %c0_379 = arith.constant 0 : index
    %473 = vector.load %arg3[%c35, %c0_378, %c0_379] : memref<36x128x128xbf16, #tpu.memory_space<vmem>>, vector<1x128x128xbf16>
    %474 = vector.shape_cast %473 : vector<1x128x128xbf16> to vector<128x128xbf16>
    %cst_380 = arith.constant dense<0.000000e+00> : vector<24x128xf32>
    %475 = tpu.matmul %472, %474, %cst_380 {dimension_numbers = #tpu.dot_dimension_numbers<[1], [0], [0], [1], [0, 0, 1, 1], [], []>} : vector<24x128xbf16>, vector<128x128xbf16>, vector<24x128xf32> -> vector<24x128xf32>
    %476 = arith.addf %470, %475 : vector<24x128xf32>
    %477 = vector.broadcast %420 : vector<1x128xf32> to vector<24x128xf32>
    %478 = arith.mulf %476, %477 : vector<24x128xf32>
    %479 = vector.broadcast %421 : vector<1x128xf32> to vector<24x128xf32>
    %480 = arith.addf %478, %479 : vector<24x128xf32>
    %c5_381 = arith.constant 5 : index
    %c0_382 = arith.constant 0 : index
    %481 = vector.load %arg6[%c5_381, %c0_382] : memref<6x128xf32, #tpu.memory_space<vmem>>, vector<1x128xf32>
    %c5_383 = arith.constant 5 : index
    %c0_384 = arith.constant 0 : index
    %482 = vector.load %arg7[%c5_383, %c0_384] : memref<6x128xf32, #tpu.memory_space<vmem>>, vector<1x128xf32>
    %c128_385 = arith.constant 128 : index
    %c0_386 = arith.constant 0 : index
    %483 = vector.load %arg16[%c128_385, %c0_386] : memref<160x128xf32, #tpu.memory_space<vmem>>, vector<24x128xf32>
    %484 = arith.truncf %483 : vector<24x128xf32> to vector<24x128xbf16>
    %c0_387 = arith.constant 0 : index
    %c0_388 = arith.constant 0 : index
    %485 = vector.load %arg4[%c0_387, %c0_388] : memref<128x128xbf16, #tpu.memory_space<vmem>>, vector<128x128xbf16>
    %cst_389 = arith.constant dense<0.000000e+00> : vector<24x128xf32>
    %486 = tpu.matmul %484, %485, %cst_389 {dimension_numbers = #tpu.dot_dimension_numbers<[1], [0], [0], [1], [0, 0, 1, 1], [], []>} : vector<24x128xbf16>, vector<128x128xbf16>, vector<24x128xf32> -> vector<24x128xf32>
    %487 = vector.broadcast %481 : vector<1x128xf32> to vector<24x128xf32>
    %488 = arith.mulf %486, %487 : vector<24x128xf32>
    %489 = vector.broadcast %482 : vector<1x128xf32> to vector<24x128xf32>
    %490 = arith.addf %488, %489 : vector<24x128xf32>
    %491 = arith.addf %480, %490 : vector<24x128xf32>
    %cst_390 = arith.constant 0.000000e+00 : f32
    %492 = vector.broadcast %cst_390 : f32 to vector<24x128xf32>
    %493 = arith.maximumf %491, %492 : vector<24x128xf32>
    %cst_391 = arith.constant 6.250000e-02 : f32
    %494 = vector.broadcast %cst_391 : f32 to vector<24x1xf32>
    %495 = arith.mulf %353, %494 : vector<24x1xf32>
    %496 = vector.broadcast %495 : vector<24x1xf32> to vector<24x128xf32>
    %497 = arith.mulf %493, %496 : vector<24x128xf32>
    %cst_392 = arith.constant dense<0.000000e+00> : vector<128xf32>
    %498 = vector.multi_reduction <add>, %497, %cst_392 [0] : vector<24x128xf32> to vector<128xf32>
    %499 = vector.shape_cast %498 : vector<128xf32> to vector<1x128xf32>
    %c0_393 = arith.constant 0 : index
    %c0_394 = arith.constant 0 : index
    %c0_395 = arith.constant 0 : index
    %500 = vector.load %arg11[%c0_393, %c0_394, %c0_395] : memref<1x1x128xf32, #tpu.memory_space<vmem>>, vector<1x1x128xf32>
    %501 = vector.shape_cast %500 : vector<1x1x128xf32> to vector<1x128xf32>
    %502 = vector.shape_cast %499 : vector<1x128xf32> to vector<1x1x128xf32>
    tpu.vector_store %arg11[%c0_393, %c0_394, %c0_395], %502 {strides = array<i32>} : memref<1x1x128xf32, #tpu.memory_space<vmem>>, vector<1x1x128xf32>,
    return
  }
  func.func @transform_0(%arg0: i32) -> (i32, i32, i32) {
    %c0_i32 = arith.constant 0 : i32
    %c0_i32_0 = arith.constant 0 : i32
    %c0_i32_1 = arith.constant 0 : i32
    return %arg0, %c0_i32, %c0_i32_0 : i32, i32, i32
  }
  func.func @transform_1(%arg0: i32) -> (i32, i32, i32) {
    %c0_i32 = arith.constant 0 : i32
    %c0_i32_0 = arith.constant 0 : i32
    %c0_i32_1 = arith.constant 0 : i32
    %c0_i32_2 = arith.constant 0 : i32
    return %c0_i32, %c0_i32_0, %c0_i32_1 : i32, i32, i32
  }
  func.func @transform_2(%arg0: i32) -> (i32, i32, i32) {
    %c0_i32 = arith.constant 0 : i32
    %c0_i32_0 = arith.constant 0 : i32
    %c0_i32_1 = arith.constant 0 : i32
    %c0_i32_2 = arith.constant 0 : i32
    return %c0_i32, %c0_i32_0, %c0_i32_1 : i32, i32, i32
  }
  func.func @transform_3(%arg0: i32) -> (i32, i32) {
    %c0_i32 = arith.constant 0 : i32
    %c0_i32_0 = arith.constant 0 : i32
    %c0_i32_1 = arith.constant 0 : i32
    return %c0_i32, %c0_i32_0 : i32, i32
  }
  func.func @transform_4(%arg0: i32) -> (i32, i32) {
    %c0_i32 = arith.constant 0 : i32
    %c0_i32_0 = arith.constant 0 : i32
    %c0_i32_1 = arith.constant 0 : i32
    return %c0_i32, %c0_i32_0 : i32, i32
  }
  func.func @transform_5(%arg0: i32) -> (i32, i32) {
    %c0_i32 = arith.constant 0 : i32
    %c0_i32_0 = arith.constant 0 : i32
    %c0_i32_1 = arith.constant 0 : i32
    return %c0_i32, %c0_i32_0 : i32, i32
  }
  func.func @transform_6(%arg0: i32) -> (i32, i32) {
    %c0_i32 = arith.constant 0 : i32
    %c0_i32_0 = arith.constant 0 : i32
    %c0_i32_1 = arith.constant 0 : i32
    return %c0_i32, %c0_i32_0 : i32, i32
  }
  func.func @transform_7(%arg0: i32) -> (i32, i32) {
    %c0_i32 = arith.constant 0 : i32
    %c0_i32_0 = arith.constant 0 : i32
    %c0_i32_1 = arith.constant 0 : i32
    return %c0_i32, %c0_i32_0 : i32, i32
  }
  func.func @transform_8(%arg0: i32) -> (i32, i32) {
    %c0_i32 = arith.constant 0 : i32
    %c0_i32_0 = arith.constant 0 : i32
    %c0_i32_1 = arith.constant 0 : i32
    return %c0_i32, %c0_i32_0 : i32, i32
  }
  func.func @transform_9(%arg0: i32) -> (i32, i32) {
    %c0_i32 = arith.constant 0 : i32
    %c0_i32_0 = arith.constant 0 : i32
    %c0_i32_1 = arith.constant 0 : i32
    return %c0_i32, %c0_i32_0 : i32, i32
  }
  func.func @transform_10(%arg0: i32) -> (i32, i32, i32) {
    %c0_i32 = arith.constant 0 : i32
    %c0_i32_0 = arith.constant 0 : i32
    %c0_i32_1 = arith.constant 0 : i32
    return %arg0, %c0_i32, %c0_i32_0 : i32, i32, i32
  }
}

</mosaic_0001>

<bundles_post_ra>
// kernel: _lambda_.1
= control target key start
LH: loop header
LB: loop body
LE: loop exit
PB: predicated region body
PF: predicated region fallthrough
CT: control target
= control target key end

     0   :  { %s12790_s0 = inlined_call_operand.vmem [shape: bf16[2,608,24], index: 0, kind: input, shape index: {}]   ;;  %s12791_s1 = inlined_call_operand.vmem [shape: bf16[7,24,128], index: 1, kind: input, shape index: {}]   ;;  %s12792_s2 = inlined_call_operand.vmem [shape: bf16[36,128,128], index: 2, kind: input, shape index: {}]   ;;  %s12793_s3 = inlined_call_operand.vmem [shape: bf16[128,128], index: 3, kind: input, shape index: {}]   ;;  %s12794_s4 = inlined_call_operand.vmem [shape: bf16[160,104], index: 4, kind: input, shape index: {}]   ;;  %s12795_s5 = inlined_call_operand.vmem [shape: f32[6,128], index: 5, kind: input, shape index: {}]   ;;  %s12796_s6 = inlined_call_operand.vmem [shape: f32[6,128], index: 6, kind: input, shape index: {}]   ;;  %s12797_s7 = inlined_call_operand.vmem [shape: f32[80,1], index: 7, kind: input, shape index: {}]   ;;  %s12798_s8 = inlined_call_operand.vmem [shape: f32[24,1], index: 8, kind: input, shape index: {}]   ;;  %s12799_s9 = inlined_call_operand.vmem [shape: f32[8,1], index: 9, kind: input, shape index: {}]   ;;  %s12800_s10 = inlined_call_operand.hbm [shape: f32[2,1,128], index: 10, kind: output, shape index: {}]  }
   0x1   :  { %12804 = sst [smem:[#allocation21_spill]] %s12790_s0 }
   0x2   :  { %15 = vsyncpa [#allocation9], 0 }
   0x3   :  { %17 = vsyncpa [#allocation9 + $0x1], 0  ;;  %s10414_s13 = smov 0   ;;  %s10416_s14 = smov 0  }
   0x4   :  { %s10418_s15 = smov 0   ;;  %s10420_s16 = smov 0  }
   0x5 LB: > { %s10435_s17 = sadd.s32 4294967295, %s10355_s16   ;;  %s7347_s18 = sadd.s32 4294967294, %s10355_s16   ;;  %s10355_s16 = sphi %s10420_s16, %s12835_s16   ;;  %s10351_s15 = sphi %s10418_s15, %s12834_s15   ;;  %s10347_s14 = sphi %s10416_s14, %s12833_s14   ;;  %s10343_s13 = sphi %s10414_s13, %s12832_s13  }
   0x6   : > { %s10439_s19 = sadd.s32 1, %s10355_s16   ;;  %s245_s20 = sadd.s32 1, %s10351_s15 }
   0x7   : > { %s242_s21 = ssub.s32 %s10355_s16, %s10439_s19  ;;  %p255_p0 = scmp.ne.s32.totalorder %s10351_s15, %s10347_s14 }
   0x8   : > { %p243_p1 = scmp.eq.s32.totalorder %s242_s21, 0  ;;  %p256_p2 = scmp.eq.s32.totalorder %s10435_s17, 1 }
   0x9   : > { %p261_p3 = scmp.ne.s32.totalorder %s10347_s14, %s10343_s13  ;;  %p262_p4 = scmp.eq.s32.totalorder %s7347_s18, 1 }
   0xa   : > { %s10450_s22 = scalar_select %p243_p1, %s10351_s15, %s245_s20  }
   0xb   : > { %p10452_p5 = por %p256_p2, %p255_p0  ;;  %p10456_p6 = por %p262_p4, %p261_p3 }
   0xc   : > { %p7350_p7 = scmp.ge.s32.totalorder %s10355_s16, 1  ;;  %p315_p8 = scmp.lt.s32.totalorder %s10355_s16, 3 }
   0xe   : > { %p316_p9 = pnand %p7350_p7, %p315_p8 }
  0x10   : > { %319 = sbr.rel (%p316_p9) target bundleno = 1990 (0x7c6), region = 60 }
  0x15   : > { %v7354_v0 = vld [vmem:[%s12791_s1 + $0x14] sm:$0xf]  ;;  %v423_v1 = vld [vmem:[%s12791_s1 + $0x8] sm:$0xf]  ;;  %v7445_v4 = vld [vmem:[%s12791_s1 + $0x20] sm:$0xf] }
  0x16   : > { %v489_v2 = vunpack.c.l.b16 %v7354_v0  ;;  %v616_v3 = vunpack.c.l.b16 %v423_v1  ;;  %v7492_v5 = vld [vmem:[%s12791_s1 + $0x2c] sm:$0xf]  ;;  %p352_p10 = scmp.lt.s32.totalorder %s10435_s17, 1  ;;  %vm518_vm0 = vcmask 1043456   ;;  %v761_v6 = vunpack.c.l.b16 %v7445_v4  ;;  %v9808_v13 = vld [vmem:[%s12791_s1] sm:$0xff]  ;;  %v9826_v16 = vld [vmem:[%s12791_s1 + $0x18] sm:$0xff] }
  0x17   : > { %v922_v7 = vunpack.c.l.b16 %v7492_v5  ;;  %v9817_v12 = vld [vmem:[%s12791_s1 + $0xc] sm:$0xff]  ;;  %v9835_v17 = vld [vmem:[%s12791_s1 + $0x24] sm:$0xff]  ;;  %s12807_s0 = sld [smem:[#allocation21_spill]]  ;;  %vm493_vm1 = vcmask 195584   ;;  %v7539_v24 = vld [vmem:[%s12791_s1 + $0x38] sm:$0xf] }
  0x18   : > { %v491_v8 = vpack.c.b16 %v489_v2, %v489_v2  ;;  %v618_v9 = vpack.c.b16 %v616_v3, %v616_v3  ;;  %s353_s18 = scalar_select %p352_p10, %s10435_s17, 1  ;;  %v763_v10 = vpack.c.b16 %v761_v6, %v761_v6  ;;  %v7586_v25 = vld [vmem:[%s12791_s1 + $0x44] sm:$0xf]  ;;  %v1083_v26 = vunpack.c.l.b16 %v7539_v24  ;;  %v9844_v48 = vld [vmem:[%s12791_s1 + $0x30] sm:$0xff]  ;;  %v9853_v49 = vld [vmem:[%s12791_s1 + $0x3c] sm:$0xff] }
  0x19   : > { %v924_v11 = vpack.c.b16 %v922_v7, %v922_v7  ;;  %v1244_v27 = vunpack.c.l.b16 %v7586_v25  ;;  %v7633_v54 = vld [vmem:[%s12791_s1 + $0x50] sm:$0xf]  ;;  %v7680_v55 = vld [vmem:[%s12791_s1 + $0x14] sm:$0xf]  ;;  %v9862_v0 = vld [vmem:[%s12791_s1 + $0x48] sm:$0xff]  ;;  %vm2737_vm2 = vcmask 1040384  }
  0x1a   : > { %v520_v14 = vsel %vm518_vm0, %v491_v8, 0  ;;  %v645_v15 = vsel %vm518_vm0, %v618_v9, 0  ;;  %s10232_s11 = smul.u32 304, %s353_s18  ;;  %v790_v18 = vsel %vm518_vm0, %v763_v10, 0  ;;  %v1085_v28 = vpack.c.b16 %v1083_v26, %v1083_v26  ;;  %v9880_v1 = vld [vmem:[%s12791_s1 + $0xc] sm:$0xff]  ;;  %s350_s28 = sand.u32 1, %s10347_s14  }
  0x1b   : > { %528 = vmatpush.bf16.msra.mxu0 %v520_v14  ;;  %653 = vmatpush.bf16.msra.mxu1 %v645_v15  ;;  %v951_v19 = vsel %vm518_vm0, %v924_v11, 0  ;;  %v1246_v29 = vpack.c.b16 %v1244_v27, %v1244_v27  ;;  %v1405_v56 = vunpack.c.l.b16 %v7633_v54  ;;  %v1650_v57 = vunpack.c.l.b16 %v7680_v55  ;;  %s7280_s18 = scalar_lea.sflag [#allocation9], %s350_s28 }
  0x1c   : > { %798 = vmatpush.bf16.msra.mxu2 %v790_v18  ;;  %959 = vmatpush.bf16.msra.mxu3 %v951_v19  ;;  %v1112_v30 = vsel %vm518_vm0, %v1085_v28, 0  ;;  %vm5360_vm3 = vcmask 850944  }
  0x1d   : > { %s10495_s21 = scalar_lea.vmem %s12807_s0, %s10232_s11  ;;  %v1273_v31 = vsel %vm518_vm0, %v1246_v29, 0  ;;  %v1407_v58 = vpack.c.b16 %v1405_v56, %v1405_v56  ;;  %v1652_v59 = vpack.c.b16 %v1650_v57, %v1650_v57  ;;  %s7288_s11 = scalar_lea.hbm %s12800_s10, %s10435_s17 }
  0x1e   : > { %v9809_v20 = vld [vmem:[%s10495_s21 + $0x98] sm:$0xff]  ;;  %v9800_v21 = vld [vmem:[%s10495_s21] sm:$0xff]  ;;  %v9818_v22 = vld [vmem:[%s10495_s21 + $0x8] sm:$0xff]  ;;  %s7292_s20 = sshll.u32 %s7288_s11, 4  ;;  %s10313_s17 = scalar_lea.hbm %s12800_s10, 2  ;;  %s7293_s20 = int_to_ptr.hbm [resolvable:$true] %s7292_s20 }
  0x1f   : > { %529 = vmatpush.bf16.msra.mxu0 %v9817_v12  ;;  %654 = vmatpush.bf16.msra.mxu1 %v9808_v13  ;;  %v9827_v23 = vld [vmem:[%s10495_s21 + $0xa0] sm:$0xff]  ;;  %v9801_v33 = vld [vmem:[%s10495_s21 + $0x8] sm:$0xff]  ;;  %v9819_v34 = vld [vmem:[%s10495_s21 + $0x10] sm:$0xff]  ;;  %v1434_v60 = vsel %vm518_vm0, %v1407_v58, 0  ;;  %v1679_v61 = vsel %vm518_vm0, %v1652_v59, 0  ;;  %s10307_s25 = sshra.s32 %s7293_s20, 4  ;;  %s10308_s25 = int_to_ptr.hbm [resolvable:$true] %s10307_s25 }
  0x20   : > { %799 = vmatpush.bf16.msra.mxu2 %v9826_v16  ;;  %960 = vmatpush.bf16.msra.mxu3 %v9835_v17  ;;  %v9810_v32 = vld [vmem:[%s10495_s21 + $0xa0] sm:$0xff]  ;;  %v9828_v35 = vld [vmem:[%s10495_s21 + $0xa8] sm:$0xff]  ;;  %v9802_v37 = vld [vmem:[%s10495_s21 + $0x10] sm:$0xff]  ;;  %s10309_s26 = scalar_lea.hbm %s10308_s25, 1  ;;  %p10314_p0 = scmp.lt.s32.totalorder %s10308_s25, %s12800_s10 }
  0x21   : > { %v9811_v36 = vld [vmem:[%s10495_s21 + $0xa8] sm:$0xff]  ;;  %v9820_v38 = vld [vmem:[%s10495_s21 + $0x18] sm:$0xff]  ;;  %v9829_v39 = vld [vmem:[%s10495_s21 + $0xb0] sm:$0xff]  ;;  %p10310_p11 = scmp.ne.s32.totalorder %s10308_s25, %s10309_s26  ;;  %p10315_p1 = scmp.lt.s32.totalorder %s10313_s17, %s10309_s26 }
  0x22   : > { %7391 = vmatmul.msk.bf16.vlgmr.msra.gmra.mxu0 %vm493_vm1, %v9809_v20  ;;  %7435 = vmatmul.msk.bf16.vlgmr.msra.gmra.mxu1 %vm493_vm1, %v9800_v21  ;;  %v9812_v40 = vld [vmem:[%s10495_s21 + $0xb0] sm:$0xff]  ;;  %v9803_v41 = vld [vmem:[%s10495_s21 + $0x18] sm:$0xff]  ;;  %v9821_v42 = vld [vmem:[%s10495_s21 + $0x20] sm:$0xff] }
  0x23   : > { %7482 = vmatmul.msk.bf16.vlgmr.msra.gmra.mxu2 %vm493_vm1, %v9818_v22  ;;  %7529 = vmatmul.msk.bf16.vlgmr.msra.gmra.mxu3 %vm493_vm1, %v9827_v23  ;;  %v9830_v43 = vld [vmem:[%s10495_s21 + $0xb8] sm:$0xff]  ;;  %v9804_v45 = vld [vmem:[%s10495_s21 + $0x20] sm:$0xff]  ;;  %v9822_v46 = vld [vmem:[%s10495_s21 + $0x28] sm:$0xff]  ;;  %v10357_v23 = vmov 0   ;;  %p10311_p12 = pnand %p10310_p11, %p10452_p5  ;;  %p10316_p2 = por %p10315_p1, %p10314_p0 }
  0x24   : > { %1120 = vmatpush.bf16.msrb.mxu0 %v1112_v30  ;;  %1281 = vmatpush.bf16.msrb.mxu1 %v1273_v31  ;;  %v9813_v44 = vld [vmem:[%s10495_s21 + $0xb8] sm:$0xff]  ;;  %v9831_v47 = vld [vmem:[%s10495_s21 + $0xc0] sm:$0xff]  ;;  %v9805_v51 = vld [vmem:[%s10495_s21 + $0x28] sm:$0xff] }
  0x25   : > { %v9814_v50 = vld [vmem:[%s10495_s21 + $0xc0] sm:$0xff]  ;;  %v9823_v52 = vld [vmem:[%s10495_s21 + $0x30] sm:$0xff]  ;;  %v9832_v53 = vld [vmem:[%s10495_s21 + $0xc8] sm:$0xff]  ;;  %1442 = vmatpush.bf16.msrb.mxu2 %v1434_v60  ;;  %1687 = vmatpush.bf16.msrb.mxu3 %v1679_v61  ;;  %p10312_p13 = pneg %p10311_p12 }
  0x26   : > { %v9815_v62 = vld [vmem:[%s10495_s21 + $0xc8] sm:$0xff]  ;;  %v9806_v63 = vld [vmem:[%s10495_s21 + $0x30] sm:$0xff]  ;;  %v9824_v2 = vld [vmem:[%s10495_s21 + $0x38] sm:$0xff]  ;;  %10274 = vset.pattern.permute.xlu0 %v10357_v23  ;;  %10275 = vset.pattern.permute.xlu1 %v10357_v23 }
  0x27   : > { %v9833_v3 = vld [vmem:[%s10495_s21 + $0xd0] sm:$0xff]  ;;  %v9807_v5 = vld [vmem:[%s10495_s21 + $0x38] sm:$0xff]  ;;  %v9825_v6 = vld [vmem:[%s10495_s21 + $0x40] sm:$0xff]  ;;  %10276 = vset.pattern.permute.xlu2 %v10357_v23  ;;  %p10317_p3 = pnand %p10316_p2, %p10312_p13 }
  0x28   : > { %1121 = vmatpush.bf16.msrb.mxu0 %v9844_v48  ;;  %1282 = vmatpush.bf16.msrb.mxu1 %v9853_v49  ;;  %v9816_v4 = vld [vmem:[%s10495_s21 + $0xd0] sm:$0xff]  ;;  %v9834_v7 = vld [vmem:[%s10495_s21 + $0xd8] sm:$0xff]  ;;  %v9845_v9 = vld [vmem:[%s10495_s21 + $0xa8] sm:$0xff] }
  0x29   : > { %1443 = vmatpush.bf16.msrb.mxu2 %v9862_v0  ;;  %1688 = vmatpush.bf16.msrb.mxu3 %v9880_v1  ;;  %v9836_v8 = vld [vmem:[%s10495_s21 + $0x10] sm:$0xff]  ;;  %v9854_v12 = vld [vmem:[%s10495_s21 + $0x18] sm:$0xff]  ;;  %v2719_v22 = vld [vmem:[%s12799_s9] sm:$0xff] }
  0x2a   : > { %v9872_v13 = vld [vmem:[%s10495_s21 + $0xd8] sm:$0xff]  ;;  %2729 = vperm.xlu0 %10274, %v2719_v22   ;;  %v9846_v27 = vld [vmem:[%s10495_s21 + $0xb0] sm:$0xff]  ;;  %v9855_v31 = vld [vmem:[%s10495_s21 + $0x20] sm:$0xff] }
  0x2b   : > { %v9837_v26 = vld [vmem:[%s10495_s21 + $0x18] sm:$0xff]  ;;  %v9856_v57 = vld [vmem:[%s10495_s21 + $0x28] sm:$0xff] }
  0x2c   : > { %v9874_v58 = vld [vmem:[%s10495_s21 + $0xe8] sm:$0xff] }
  0x32   : > { %7392 = vmatmul.msk.bf16.gmra.mxu0 %vm493_vm1, %v9810_v32  ;;  %7436 = vmatmul.msk.bf16.gmra.mxu1 %vm493_vm1, %v9801_v33  ;;  %v9873_v32 = vld [vmem:[%s10495_s21 + $0xe0] sm:$0xff] }
  0x33   : > { %7483 = vmatmul.msk.bf16.gmra.mxu2 %vm493_vm1, %v9819_v34  ;;  %7530 = vmatmul.msk.bf16.gmra.mxu3 %vm493_vm1, %v9828_v35  ;;  %v1585_v35 = vld [vmem:[%s12791_s1 + $0x8] sm:$0xf] }
  0x42   : > { %7393 = vmatmul.msk.bf16.gmra.mxu0 %vm493_vm1, %v9811_v36  ;;  %7437 = vmatmul.msk.bf16.gmra.mxu1 %vm493_vm1, %v9802_v37  ;;  %v7771_v36 = vld [vmem:[%s12791_s1 + $0x20] sm:$0xf]  ;;  %v1775_v37 = vunpack.c.l.b16 %v1585_v35 }
  0x43   : > { %7484 = vmatmul.msk.bf16.gmra.mxu2 %vm493_vm1, %v9820_v38  ;;  %7531 = vmatmul.msk.bf16.gmra.mxu3 %vm493_vm1, %v9829_v39  ;;  %v1919_v38 = vunpack.c.l.b16 %v7771_v36 }
  0x44   : > { %v1777_v39 = vpack.c.b16 %v1775_v37, %v1775_v37 }
  0x52   : > { %7394 = vmatmul.msk.bf16.gmra.mxu0 %vm493_vm1, %v9812_v40  ;;  %7438 = vmatmul.msk.bf16.gmra.mxu1 %vm493_vm1, %v9803_v41  ;;  %v1921_v40 = vpack.c.b16 %v1919_v38, %v1919_v38 }
  0x53   : > { %7485 = vmatmul.msk.bf16.gmra.mxu2 %vm493_vm1, %v9821_v42  ;;  %7532 = vmatmul.msk.bf16.gmra.mxu3 %vm493_vm1, %v9830_v43  ;;  %v1804_v43 = vsel %vm518_vm0, %v1777_v39, 0 }
  0x54   : > { %1812 = vmatpush.bf16.msra.mxu0 %v1804_v43 }
  0x62   : > { %7395 = vmatmul.msk.bf16.gmra.mxu0 %vm493_vm1, %v9813_v44  ;;  %7439 = vmatmul.msk.bf16.gmra.mxu1 %vm493_vm1, %v9804_v45  ;;  %v1948_v44 = vsel %vm518_vm0, %v1921_v40, 0 }
  0x63   : > { %7486 = vmatmul.msk.bf16.gmra.mxu2 %vm493_vm1, %v9822_v46  ;;  %7533 = vmatmul.msk.bf16.gmra.mxu3 %vm493_vm1, %v9831_v47 }
  0x64   : > { %1956 = vmatpush.bf16.msra.mxu1 %v1948_v44  ;;  %v9841_v44 = vld [vmem:[%s10495_s21 + $0x38] sm:$0xff] }
  0x72   : > { %7396 = vmatmul.msk.bf16.gmra.mxu0 %vm493_vm1, %v9814_v50  ;;  %7440 = vmatmul.msk.bf16.gmra.mxu1 %vm493_vm1, %v9805_v51 }
  0x73   : > { %7487 = vmatmul.msk.bf16.gmra.mxu2 %vm493_vm1, %v9823_v52  ;;  %7534 = vmatmul.msk.bf16.gmra.mxu3 %vm493_vm1, %v9832_v53  ;;  %v9838_v52 = vld [vmem:[%s10495_s21 + $0x20] sm:$0xff]  ;;  %v9847_v53 = vld [vmem:[%s10495_s21 + $0xb8] sm:$0xff] }
  0x82   : > { %7397 = vmatmul.msk.bf16.gmra.mxu0 %vm493_vm1, %v9815_v62  ;;  %7441 = vmatmul.msk.bf16.gmra.mxu1 %vm493_vm1, %v9806_v63 }
  0x83   : > { %7488 = vmatmul.msk.bf16.gmra.mxu2 %vm493_vm1, %v9824_v2  ;;  %7535 = vmatmul.msk.bf16.gmra.mxu3 %vm493_vm1, %v9833_v3 }
  0x92   : > { %7398 = vmatmul.msk.bf16.gmra.mxu0 %vm493_vm1, %v9816_v4  ;;  %7442 = vmatmul.msk.bf16.gmra.mxu1 %vm493_vm1, %v9807_v5 }
  0x93   : > { %7489 = vmatmul.msk.bf16.gmra.mxu2 %vm493_vm1, %v9825_v6  ;;  %7536 = vmatmul.msk.bf16.gmra.mxu3 %vm493_vm1, %v9834_v7  ;;  %v9839_v6 = vld [vmem:[%s10495_s21 + $0x28] sm:$0xff]  ;;  %v9848_v7 = vld [vmem:[%s10495_s21 + $0xc0] sm:$0xff] }
  0x9f   : > { %v531_v10 = vpop.f32.mrf.mxu0  ;;  %v656_v11 = vpop.f32.mrf.mxu1 }
  0xa0   : > { %v657_v14 = vadd.f32 %v656_v11, %v531_v10  ;;  %v9857_v11 = vld [vmem:[%s10495_s21 + $0x30] sm:$0xff] }
  0xa2   : > { %7576 = vmatmul.msk.bf16.vlgmr.msrb.gmra.mxu0 %vm493_vm1, %v9836_v8  ;;  %7623 = vmatmul.msk.bf16.vlgmr.msrb.gmra.mxu1 %vm493_vm1, %v9845_v9 }
  0xa3   : > { %7670 = vmatmul.msk.bf16.vlgmr.msrb.gmra.mxu2 %vm493_vm1, %v9854_v12  ;;  %7717 = vmatmul.msk.bf16.vlgmr.msrb.gmra.mxu3 %vm493_vm1, %v9872_v13  ;;  %v9875_v12 = vld [vmem:[%s10495_s21 + $0xf0] sm:$0xff] }
  0xa6   : > { %v801_v15 = vpop.f32.mrf.mxu2  ;;  %v962_v16 = vpop.f32.mrf.mxu3 }
  0xa7   : > { %v841_v17 = vadd.f32 %v801_v15, %v657_v14  ;;  %v533_v18 = vpop.f32.mrf.mxu0  ;;  %v658_v19 = vpop.f32.mrf.mxu1 }
  0xa8   : > { %v659_v20 = vadd.f32 %v658_v19, %v533_v18 }
  0xa9   : > { %v10597_v21 = vadd.f32 %v962_v16, %v841_v17 }
  0xae   : > { %v803_v24 = vpop.f32.mrf.mxu2  ;;  %v964_v25 = vpop.f32.mrf.mxu3 }
  0xaf   : > { %v842_v28 = vadd.f32 %v803_v24, %v659_v20  ;;  %v536_v29 = vpop.f32.mrf.mxu0  ;;  %v661_v30 = vpop.f32.mrf.mxu1 }
  0xb0   : > { %v662_v33 = vadd.f32 %v661_v30, %v536_v29  ;;  %v9858_v30 = vld [vmem:[%s10495_s21 + $0x38] sm:$0xff] }
  0xb1   : > { %v10606_v34 = vadd.f32 %v964_v25, %v842_v28  ;;  %v9840_v25 = vld [vmem:[%s10495_s21 + $0x30] sm:$0xff] }
  0xb2   : > { %7577 = vmatmul.msk.bf16.gmra.mxu0 %vm493_vm1, %v9837_v26  ;;  %7624 = vmatmul.msk.bf16.gmra.mxu1 %vm493_vm1, %v9846_v27  ;;  %v9849_v26 = vld [vmem:[%s10495_s21 + $0xc8] sm:$0xff] }
  0xb3   : > { %7671 = vmatmul.msk.bf16.gmra.mxu2 %vm493_vm1, %v9855_v31  ;;  %7718 = vmatmul.msk.bf16.gmra.mxu3 %vm493_vm1, %v9873_v32  ;;  %v9876_v31 = vld [vmem:[%s10495_s21 + $0xf8] sm:$0xff] }
  0xb6   : > { %v806_v41 = vpop.f32.mrf.mxu2  ;;  %v967_v42 = vpop.f32.mrf.mxu3 }
  0xb7   : > { %v843_v45 = vadd.f32 %v806_v41, %v662_v33  ;;  %v538_v46 = vpop.f32.mrf.mxu0  ;;  %v663_v47 = vpop.f32.mrf.mxu1 }
  0xb8   : > { %v664_v48 = vadd.f32 %v663_v47, %v538_v46 }
  0xb9   : > { %v10620_v49 = vadd.f32 %v967_v42, %v843_v45  ;;  %v9850_v45 = vld [vmem:[%s10495_s21 + $0xd0] sm:$0xff] }
  0xbe   : > { %v808_v50 = vpop.f32.mrf.mxu2  ;;  %v969_v51 = vpop.f32.mrf.mxu3 }
  0xbf   : > { %v844_v54 = vadd.f32 %v808_v50, %v664_v48  ;;  %v541_v55 = vpop.f32.mrf.mxu0  ;;  %v666_v56 = vpop.f32.mrf.mxu1  ;;  %v9859_v50 = vld [vmem:[%s10495_s21 + $0x40] sm:$0xff] }
  0xc0   : > { %v667_v59 = vadd.f32 %v666_v56, %v541_v55  ;;  %v9889_v55 = vld [vmem:[%s12791_s1 + $0x18] sm:$0xff] }
  0xc1   : > { %v10626_v60 = vadd.f32 %v969_v51, %v844_v54  ;;  %v9877_v51 = vld [vmem:[%s10495_s21 + $0x100] sm:$0xff]  ;;  %1957 = vmatpush.bf16.msra.mxu1 %v9889_v55 }
  0xc2   : > { %7578 = vmatmul.msk.bf16.gmra.mxu0 %vm493_vm1, %v9838_v52  ;;  %7625 = vmatmul.msk.bf16.gmra.mxu1 %vm493_vm1, %v9847_v53  ;;  %v9871_v54 = vld [vmem:[%s12791_s1] sm:$0xff] }
  0xc3   : > { %7672 = vmatmul.msk.bf16.gmra.mxu2 %vm493_vm1, %v9856_v57  ;;  %7719 = vmatmul.msk.bf16.gmra.mxu3 %vm493_vm1, %v9874_v58  ;;  %v7818_v58 = vld [vmem:[%s12791_s1 + $0x2c] sm:$0xf] }
  0xc4   : > { %1813 = vmatpush.bf16.msra.mxu0 %v9871_v54 }
  0xc6   : > { %v811_v61 = vpop.f32.mrf.mxu2  ;;  %v972_v62 = vpop.f32.mrf.mxu3 }
  0xc7   : > { %v845_v63 = vadd.f32 %v811_v61, %v667_v59  ;;  %v543_v0 = vpop.f32.mrf.mxu0  ;;  %v668_v1 = vpop.f32.mrf.mxu1  ;;  %v7865_v59 = vld [vmem:[%s12791_s1 + $0x38] sm:$0xf] }
  0xc8   : > { %v669_v2 = vadd.f32 %v668_v1, %v543_v0  ;;  %v2079_v0 = vunpack.c.l.b16 %v7818_v58  ;;  %v2239_v1 = vunpack.c.l.b16 %v7865_v59  ;;  %v9881_v58 = vld [vmem:[%s10495_s21 + $0x48] sm:$0xff] }
  0xc9   : > { %v10632_v3 = vadd.f32 %v972_v62, %v845_v63 }
  0xce   : > { %v813_v4 = vpop.f32.mrf.mxu2  ;;  %v974_v5 = vpop.f32.mrf.mxu3 }
  0xcf   : > { %v846_v8 = vadd.f32 %v813_v4, %v669_v2  ;;  %v546_v9 = vpop.f32.mrf.mxu0  ;;  %v671_v10 = vpop.f32.mrf.mxu1 }
  0xd0   : > { %v672_v13 = vadd.f32 %v671_v10, %v546_v9  ;;  %v9842_v9 = vld [vmem:[%s10495_s21 + $0x40] sm:$0xff] }
  0xd1   : > { %v10638_v14 = vadd.f32 %v974_v5, %v846_v8  ;;  %v2081_v5 = vpack.c.b16 %v2079_v0, %v2079_v0  ;;  %v9899_v0 = vld [vmem:[%s10495_s21 + $0x50] sm:$0xff] }
  0xd2   : > { %7579 = vmatmul.msk.bf16.gmra.mxu0 %vm493_vm1, %v9839_v6  ;;  %7626 = vmatmul.msk.bf16.gmra.mxu1 %vm493_vm1, %v9848_v7  ;;  %v2241_v6 = vpack.c.b16 %v2239_v1, %v2239_v1  ;;  %v10358_v1 = vmov 0.0  }
  0xd3   : > { %7673 = vmatmul.msk.bf16.gmra.mxu2 %vm493_vm1, %v9857_v11  ;;  %7720 = vmatmul.msk.bf16.gmra.mxu3 %vm493_vm1, %v9875_v12  ;;  %v2108_v7 = vsel %vm518_vm0, %v2081_v5, 0  ;;  %v9851_v12 = vld [vmem:[%s10495_s21 + $0xd8] sm:$0xff]  ;;  %359 = vst [vmem:[#allocation3 + $0x8] sm:$0xff] %v10358_v1 }
  0xd4   : > { %v2268_v8 = vsel %vm518_vm0, %v2241_v6, 0  ;;  %2116 = vmatpush.bf16.msra.mxu2 %v2108_v7  ;;  %360 = vst [vmem:[#allocation3 + $0x10] sm:$0xff] %v10358_v1 }
  0xd5   : > { %2276 = vmatpush.bf16.msra.mxu3 %v2268_v8  ;;  %358 = vst [vmem:[#allocation3] sm:$0xff] %v10358_v1 }
  0xd6   : > { %v816_v15 = vpop.f32.mrf.mxu2  ;;  %v977_v16 = vpop.f32.mrf.mxu3  ;;  %361 = vst [vmem:[#allocation3 + $0x18] sm:$0xff] %v10358_v1 }
  0xd7   : > { %v847_v17 = vadd.f32 %v816_v15, %v672_v13  ;;  %v548_v18 = vpop.f32.mrf.mxu0  ;;  %v673_v19 = vpop.f32.mrf.mxu1  ;;  %v9898_v13 = vld [vmem:[%s12791_s1 + $0x24] sm:$0xff]  ;;  %v9907_v15 = vld [vmem:[%s12791_s1 + $0x30] sm:$0xff]  ;;  %362 = vst [vmem:[#allocation3 + $0x20] sm:$0xff] %v10358_v1 }
  0xd8   : > { %v674_v20 = vadd.f32 %v673_v19, %v548_v18  ;;  %v9860_v19 = vld [vmem:[%s10495_s21 + $0x48] sm:$0xff]  ;;  %2117 = vmatpush.bf16.msra.mxu2 %v9898_v13  ;;  %363 = vst [vmem:[#allocation3 + $0x28] sm:$0xff] %v10358_v1  ;;  %v9882_v13 = vld [vmem:[%s10495_s21 + $0x50] sm:$0xff] }
  0xd9   : > { %v10644_v22 = vadd.f32 %v977_v16, %v847_v17  ;;  %2277 = vmatpush.bf16.msra.mxu3 %v9907_v15  ;;  %364 = vst [vmem:[#allocation3 + $0x30] sm:$0xff] %v10358_v1 }
  0xda   : > { %365 = vst [vmem:[#allocation3 + $0x38] sm:$0xff] %v10358_v1 }
  0xdb   : > { %366 = vst [vmem:[#allocation3 + $0x40] sm:$0xff] %v10358_v1 }
  0xdc   : > { %367 = vst [vmem:[#allocation3 + $0x48] sm:$0xff] %v10358_v1 }
  0xdd   : > { %368 = vst [vmem:[#allocation3 + $0x50] sm:$0xff] %v10358_v1 }
  0xde   : > { %v818_v23 = vpop.f32.mrf.mxu2  ;;  %v979_v24 = vpop.f32.mrf.mxu3  ;;  %369 = vst [vmem:[#allocation3 + $0x58] sm:$0xff] %v10358_v1 }
  0xdf   : > { %v848_v27 = vadd.f32 %v818_v23, %v674_v20  ;;  %v551_v28 = vpop.f32.mrf.mxu0  ;;  %v676_v29 = vpop.f32.mrf.mxu1  ;;  %v9878_v20 = vld [vmem:[%s10495_s21 + $0x108] sm:$0xff]  ;;  %370 = vst [vmem:[#allocation3 + $0x60] sm:$0xff] %v10358_v1 }
  0xe0   : > { %v677_v32 = vadd.f32 %v676_v29, %v551_v28  ;;  %371 = vst [vmem:[#allocation4] sm:$0xff] %v10358_v1 }
  0xe1   : > { %v10650_v33 = vadd.f32 %v979_v24, %v848_v27  ;;  %372 = vst [vmem:[#allocation4 + $0x8] sm:$0xff] %v10358_v1 }
  0xe2   : > { %7580 = vmatmul.msk.bf16.gmra.mxu0 %vm493_vm1, %v9840_v25  ;;  %7627 = vmatmul.msk.bf16.gmra.mxu1 %vm493_vm1, %v9849_v26  ;;  %373 = vst [vmem:[#allocation4 + $0x10] sm:$0xff] %v10358_v1 }
  0xe3   : > { %7674 = vmatmul.msk.bf16.gmra.mxu2 %vm493_vm1, %v9858_v30  ;;  %7721 = vmatmul.msk.bf16.gmra.mxu3 %vm493_vm1, %v9876_v31  ;;  %374 = vst [vmem:[#allocation4 + $0x18] sm:$0xff] %v10358_v1 }
  0xe4   : > { %375 = vst [vmem:[#allocation4 + $0x20] sm:$0xff] %v10358_v1 }
  0xe5   : > { %376 = vst [vmem:[#allocation4 + $0x28] sm:$0xff] %v10358_v1 }
  0xe6   : > { %v821_v35 = vpop.f32.mrf.mxu2  ;;  %v982_v36 = vpop.f32.mrf.mxu3  ;;  %377 = vst [vmem:[#allocation4 + $0x30] sm:$0xff] %v10358_v1 }
  0xe7   : > { %v849_v37 = vadd.f32 %v821_v35, %v677_v32  ;;  %v553_v38 = vpop.f32.mrf.mxu0  ;;  %v678_v39 = vpop.f32.mrf.mxu1  ;;  %378 = vst [vmem:[#allocation4 + $0x38] sm:$0xff] %v10358_v1 }
  0xe8   : > { %v679_v40 = vadd.f32 %v678_v39, %v553_v38  ;;  %379 = vst [vmem:[#allocation4 + $0x40] sm:$0xff] %v10358_v1 }
  0xe9   : > { %v10656_v41 = vadd.f32 %v982_v36, %v849_v37  ;;  %v9843_v36 = vld [vmem:[%s10495_s21 + $0x48] sm:$0xff]  ;;  %v9852_v37 = vld [vmem:[%s10495_s21 + $0xe0] sm:$0xff]  ;;  %380 = vst [vmem:[#allocation4 + $0x48] sm:$0xff] %v10358_v1 }
  0xea   : > { %381 = vst [vmem:[#allocation4 + $0x50] sm:$0xff] %v10358_v1 }
  0xeb   : > { %382 = vst [vmem:[#allocation4 + $0x58] sm:$0xff] %v10358_v1 }
  0xec   : > { %383 = vst [vmem:[#allocation4 + $0x60] sm:$0xff] %v10358_v1 }
  0xed   : > { %385 = vst [vmem:[#allocation5 + $0x8] sm:$0xff] %v10358_v1 }
  0xee   : > { %v823_v42 = vpop.f32.mrf.mxu2  ;;  %v984_v43 = vpop.f32.mrf.mxu3  ;;  %386 = vst [vmem:[#allocation5 + $0x10] sm:$0xff] %v10358_v1 }
  0xef   : > { %v850_v46 = vadd.f32 %v823_v42, %v679_v40  ;;  %v556_v47 = vpop.f32.mrf.mxu0  ;;  %v681_v48 = vpop.f32.mrf.mxu1  ;;  %v9861_v42 = vld [vmem:[%s10495_s21 + $0x50] sm:$0xff]  ;;  %387 = vst [vmem:[#allocation5 + $0x18] sm:$0xff] %v10358_v1 }
  0xf0   : > { %v682_v52 = vadd.f32 %v681_v48, %v556_v47  ;;  %388 = vst [vmem:[#allocation5 + $0x20] sm:$0xff] %v10358_v1 }
  0xf1   : > { %v10662_v53 = vadd.f32 %v984_v43, %v850_v46  ;;  %v9879_v43 = vld [vmem:[%s10495_s21 + $0x110] sm:$0xff]  ;;  %389 = vst [vmem:[#allocation5 + $0x28] sm:$0xff] %v10358_v1 }
  0xf2   : > { %7581 = vmatmul.msk.bf16.gmra.mxu0 %vm493_vm1, %v9841_v44  ;;  %7628 = vmatmul.msk.bf16.gmra.mxu1 %vm493_vm1, %v9850_v45  ;;  %390 = vst [vmem:[#allocation5 + $0x30] sm:$0xff] %v10358_v1 }
  0xf3   : > { %7675 = vmatmul.msk.bf16.gmra.mxu2 %vm493_vm1, %v9859_v50  ;;  %7722 = vmatmul.msk.bf16.gmra.mxu3 %vm493_vm1, %v9877_v51  ;;  %391 = vst [vmem:[#allocation5 + $0x38] sm:$0xff] %v10358_v1 }
  0xf4   : > { %392 = vst [vmem:[#allocation5 + $0x40] sm:$0xff] %v10358_v1 }
  0xf5   : > { %393 = vst [vmem:[#allocation5 + $0x48] sm:$0xff] %v10358_v1 }
  0xf6   : > { %v826_v56 = vpop.f32.mrf.mxu2  ;;  %v987_v57 = vpop.f32.mrf.mxu3  ;;  %394 = vst [vmem:[#allocation5 + $0x50] sm:$0xff] %v10358_v1 }
  0xf7   : > { %v851_v61 = vadd.f32 %v826_v56, %v682_v52  ;;  %v558_v62 = vpop.f32.mrf.mxu0  ;;  %v683_v63 = vpop.f32.mrf.mxu1  ;;  %395 = vst [vmem:[#allocation5 + $0x58] sm:$0xff] %v10358_v1 }
  0xf8   : > { %v684_v2 = vadd.f32 %v683_v63, %v558_v62  ;;  %v9890_v63 = vld [vmem:[%s10495_s21 + $0xe0] sm:$0xff]  ;;  %397 = vst [vmem:[#allocation7] sm:$0xff] %v10358_v1 }
  0xf9   : > { %v10680_v4 = vadd.f32 %v987_v57, %v851_v61  ;;  %v9863_v57 = vld [vmem:[%s10495_s21 + $0x40] sm:$0xff]  ;;  %398 = vst [vmem:[#allocation7 + $0x8] sm:$0xff] %v10358_v1 }
  0xfa   : > { %399 = vst [vmem:[#allocation7 + $0x10] sm:$0xff] %v10358_v1 }
  0xfb   : > { %400 = vst [vmem:[#allocation7 + $0x18] sm:$0xff] %v10358_v1 }
  0xfc   : > { %401 = vst [vmem:[#allocation7 + $0x20] sm:$0xff] %v10358_v1 }
  0xfe   : > { %v828_v10 = vpop.f32.mrf.mxu2  ;;  %v989_v11 = vpop.f32.mrf.mxu3 }
  0xff   : > { %v852_v16 = vadd.f32 %v828_v10, %v684_v2  ;;  %v561_v17 = vpop.f32.mrf.mxu0  ;;  %v686_v18 = vpop.f32.mrf.mxu1 }
 0x100   : > { %v687_v23 = vadd.f32 %v686_v18, %v561_v17  ;;  %v9891_v18 = vld [vmem:[%s10495_s21 + $0xe8] sm:$0xff] }
 0x101   : > { %v10694_v24 = vadd.f32 %v989_v11, %v852_v16 }
 0x102   : > { %7582 = vmatmul.msk.bf16.gmra.mxu0 %vm493_vm1, %v9842_v9  ;;  %7629 = vmatmul.msk.bf16.gmra.mxu1 %vm493_vm1, %v9851_v12  ;;  %v9864_v12 = vld [vmem:[%s10495_s21 + $0x48] sm:$0xff] }
 0x103   : > { %7676 = vmatmul.msk.bf16.gmra.mxu2 %vm493_vm1, %v9860_v19  ;;  %7723 = vmatmul.msk.bf16.gmra.mxu3 %vm493_vm1, %v9878_v20  ;;  %v9900_v19 = vld [vmem:[%s10495_s21 + $0x58] sm:$0xff]  ;;  %v10753_v20 = vld [vmem:[%s12795_s5] ss:$0 sm:$0xff] }
 0x106   : > { %v831_v25 = vpop.f32.mrf.mxu2  ;;  %v992_v26 = vpop.f32.mrf.mxu3 }
 0x107   : > { %v853_v27 = vadd.f32 %v831_v25, %v687_v23  ;;  %v563_v28 = vpop.f32.mrf.mxu0  ;;  %v688_v29 = vpop.f32.mrf.mxu1 }
 0x108   : > { %v689_v30 = vadd.f32 %v688_v29, %v563_v28  ;;  %v7959_v28 = vld [vmem:[%s12791_s1 + $0x50] sm:$0xf] }
 0x109   : > { %v10700_v31 = vadd.f32 %v992_v26, %v853_v27 }
 0x10e   : > { %v833_v32 = vpop.f32.mrf.mxu2  ;;  %v994_v35 = vpop.f32.mrf.mxu3 }
 0x10f   : > { %v854_v38 = vadd.f32 %v833_v32, %v689_v30  ;;  %v566_v39 = vpop.f32.mrf.mxu0  ;;  %v691_v40 = vpop.f32.mrf.mxu1 }
 0x110   : > { %v692_v44 = vadd.f32 %v691_v40, %v566_v39 }
 0x111   : > { %v10706_v45 = vadd.f32 %v994_v35, %v854_v38  ;;  %v2559_v35 = vunpack.c.l.b16 %v7959_v28 }
 0x112   : > { %7583 = vmatmul.msk.bf16.gmra.mxu0 %vm493_vm1, %v9843_v36  ;;  %7630 = vmatmul.msk.bf16.gmra.mxu1 %vm493_vm1, %v9852_v37 }
 0x113   : > { %7677 = vmatmul.msk.bf16.gmra.mxu2 %vm493_vm1, %v9861_v42  ;;  %7724 = vmatmul.msk.bf16.gmra.mxu3 %vm493_vm1, %v9879_v43  ;;  %v2561_v42 = vpack.c.b16 %v2559_v35, %v2559_v35 }
 0x116   : > { %v836_v46 = vpop.f32.mrf.mxu2  ;;  %v997_v47 = vpop.f32.mrf.mxu3 }
 0x117   : > { %v855_v48 = vadd.f32 %v836_v46, %v692_v44  ;;  %v568_v50 = vpop.f32.mrf.mxu0  ;;  %v693_v51 = vpop.f32.mrf.mxu1 }
 0x118   : > { %v694_v52 = vadd.f32 %v693_v51, %v568_v50  ;;  %v2588_v50 = vsel %vm518_vm0, %v2561_v42, 0 }
 0x119   : > { %v10712_v54 = vadd.f32 %v997_v47, %v855_v48  ;;  %2596 = vmatpush.bf16.msrb.mxu1 %v2588_v50 }
 0x11e   : > { %v838_v55 = vpop.f32.mrf.mxu2  ;;  %v999_v56 = vpop.f32.mrf.mxu3 }
 0x11f   : > { %v856_v59 = vadd.f32 %v838_v55, %v694_v52  ;;  %v1123_v61 = vpop.f32.mrf.mxu0  ;;  %v1284_v62 = vpop.f32.mrf.mxu1 }
 0x120   : > { %v1163_v9 = vadd.f32 %v1123_v61, %v10597_v21  ;;  %v9883_v61 = vld [vmem:[%s10495_s21 + $0x58] sm:$0xff] }
 0x121   : > { %v10719_v2 = vadd.f32 %v999_v56, %v856_v59  ;;  %v9865_v59 = vld [vmem:[%s10495_s21 + $0x50] sm:$0xff] }
 0x122   : > { %7761 = vmatmul.msk.bf16.vlgmr.msra.gmra.mxu0 %vm493_vm1, %v9863_v57  ;;  %7808 = vmatmul.msk.bf16.vlgmr.msra.gmra.mxu1 %vm493_vm1, %v9881_v58  ;;  %v1324_v15 = vadd.f32 %v1284_v62, %v1163_v9  ;;  %v2730_v9 = vpop.permute.xlu0 %2729 }
 0x123   : > { %7855 = vmatmul.msk.bf16.vlgmr.msra.gmra.mxu2 %vm493_vm1, %v9890_v63  ;;  %7902 = vmatmul.msk.bf16.vlgmr.msra.gmra.mxu3 %vm493_vm1, %v9899_v0 }
 0x126   : > { %v1445_v5 = vpop.f32.mrf.mxu2  ;;  %v10730_v6 = vpop.f32.mrf.mxu3 }
 0x127   : > { %v1125_v7 = vpop.f32.mrf.mxu0  ;;  %v1286_v8 = vpop.f32.mrf.mxu1  ;;  %v1485_v21 = vadd.f32 %v1445_v5, %v1324_v15 }
 0x128   : > { %v1164_v25 = vadd.f32 %v1125_v7, %v10606_v34  ;;  %v7912_v34 = vld [vmem:[%s12791_s1 + $0x44] sm:$0xf]  ;;  %v9892_v7 = vld [vmem:[%s10495_s21 + $0xf0] sm:$0xff] }
 0x129   : > { %v1502_v26 = vmul.f32 %v10753_v20, %v1485_v21  ;;  %v2399_v32 = vunpack.c.l.b16 %v7912_v34 }
 0x12a   : > { %v1325_v36 = vadd.f32 %v1286_v8, %v1164_v25  ;;  %v9901_v8 = vld [vmem:[%s10495_s21 + $0x60] sm:$0xff] }
 0x12b   : > { %v2401_v40 = vpack.c.b16 %v2399_v32, %v2399_v32 }
 0x12d   : > { %v2428_v48 = vsel %vm518_vm0, %v2401_v40, 0  ;;  %v9884_v40 = vld [vmem:[%s10495_s21 + $0x60] sm:$0xff] }
 0x12e   : > { %v1447_v10 = vpop.f32.mrf.mxu2  ;;  %v10741_v11 = vpop.f32.mrf.mxu3  ;;  %2436 = vmatpush.bf16.msrb.mxu0 %v2428_v48 }
 0x12f   : > { %v1128_v16 = vpop.f32.mrf.mxu0  ;;  %v1289_v17 = vpop.f32.mrf.mxu1  ;;  %v1486_v44 = vadd.f32 %v1447_v10, %v1325_v36 }
 0x130   : > { %v1165_v23 = vadd.f32 %v1128_v16, %v10620_v49  ;;  %v10767_v49 = vld [vmem:[%s12796_s6] ss:$0 sm:$0xff] }
 0x131   : > { %v1519_v43 = vadd.f32 %v10767_v49, %v1502_v26 }
 0x132   : > { %7762 = vmatmul.msk.bf16.gmra.mxu0 %vm493_vm1, %v9864_v12  ;;  %7809 = vmatmul.msk.bf16.gmra.mxu1 %vm493_vm1, %v9882_v13  ;;  %v1326_v27 = vadd.f32 %v1289_v17, %v1165_v23  ;;  %v10814_v13 = vrot.slane %v2730_v9, 1 }
 0x133   : > { %7856 = vmatmul.msk.bf16.gmra.mxu2 %vm493_vm1, %v9891_v18  ;;  %7903 = vmatmul.msk.bf16.gmra.mxu3 %vm493_vm1, %v9900_v19  ;;  %v1535_v52 = vmax.f32 %v1519_v43, 0.0 }
 0x136   : > { %v1450_v29 = vpop.f32.mrf.mxu2  ;;  %v10778_v30 = vpop.f32.mrf.mxu3 }
 0x137   : > { %v1487_v37 = vadd.f32 %v1450_v29, %v1326_v27  ;;  %v1130_v38 = vpop.f32.mrf.mxu0  ;;  %v1291_v39 = vpop.f32.mrf.mxu1 }
 0x138   : > { %v1166_v47 = vadd.f32 %v1130_v38, %v10626_v60  ;;  %v1503_v60 = vmul.f32 %v10753_v20, %v1486_v44 }
 0x139   : > { %v1504_v46 = vmul.f32 %v10753_v20, %v1487_v37 }
 0x13a   : > { %v1327_v56 = vadd.f32 %v1291_v39, %v1166_v47  ;;  %v1520_v10 = vadd.f32 %v10767_v49, %v1503_v60  ;;  %v9866_v39 = vld [vmem:[%s10495_s21 + $0x58] sm:$0xff]  ;;  %v9902_v47 = vld [vmem:[%s10495_s21 + $0x68] sm:$0xff] }
 0x13b   : > { %v10790_v51 = vadd.f32 %v10767_v49, %v1504_v46  ;;  %v9893_v46 = vld [vmem:[%s10495_s21 + $0xf8] sm:$0xff] }
 0x13c   : > { %v1536_v16 = vmax.f32 %v1520_v10, 0.0 }
 0x13d   : > { %v1537_v55 = vmax.f32 %v10790_v51, 0.0 }
 0x13e   : > { %v1452_v57 = vpop.f32.mrf.mxu2  ;;  %v10798_v58 = vpop.f32.mrf.mxu3 }
 0x13f   : > { %v2724_v62 = vmax.f32 %v1535_v52, %v1537_v55  ;;  %v1488_v63 = vadd.f32 %v1452_v57, %v1327_v56  ;;  %v1133_v0 = vpop.f32.mrf.mxu0  ;;  %v1294_v5 = vpop.f32.mrf.mxu1 }
 0x140   : > { %v1167_v32 = vadd.f32 %v1133_v0, %v10632_v3 }
 0x141   : > { %v1505_v12 = vmul.f32 %v10753_v20, %v1488_v63  ;;  %v2733_v23 = vmul.f32 %v10814_v13, %v2724_v62 }
 0x142   : > { %7763 = vmatmul.msk.bf16.gmra.mxu0 %vm493_vm1, %v9865_v59  ;;  %7810 = vmatmul.msk.bf16.gmra.mxu1 %vm493_vm1, %v9883_v61  ;;  %v1328_v42 = vadd.f32 %v1294_v5, %v1167_v32 }
 0x143   : > { %v10817_v15 = vadd.f32 %v10767_v49, %v1505_v12  ;;  %7857 = vmatmul.msk.bf16.gmra.mxu2 %vm493_vm1, %v9892_v7  ;;  %7904 = vmatmul.msk.bf16.gmra.mxu3 %vm493_vm1, %v9901_v8  ;;  %v2738_v28 = vrot.slane %v2733_v23, 7  ;;  %v9885_v23 = vld [vmem:[%s10495_s21 + $0x68] sm:$0xff] }
 0x145   : > { %v1538_v17 = vmax.f32 %v10817_v15, 0.0 }
 0x146   : > { %v1455_v18 = vpop.f32.mrf.mxu2  ;;  %v10825_v19 = vpop.f32.mrf.mxu3 }
 0x147   : > { %v2725_v21 = vmax.f32 %v1536_v16, %v1538_v17  ;;  %v1135_v25 = vpop.f32.mrf.mxu0  ;;  %v1296_v26 = vpop.f32.mrf.mxu1  ;;  %v1489_v48 = vadd.f32 %v1455_v18, %v1328_v42 }
 0x148   : > { %v1168_v3 = vadd.f32 %v1135_v25, %v10638_v14 }
 0x149   : > { %v2726_v27 = vmax.f32 %v2724_v62, %v2725_v21  ;;  %v2734_v34 = vmul.f32 %v10814_v13, %v2725_v21  ;;  %v1506_v52 = vmul.f32 %v10753_v20, %v1489_v48  ;;  %v9867_v21 = vld [vmem:[%s10495_s21 + $0x60] sm:$0xff] }
 0x14a   : > { %v1329_v59 = vadd.f32 %v1296_v26, %v1168_v3 }
 0x14b   : > { %v2739_v29 = vrot.slane %v2734_v34, 7  ;;  %v1523_v63 = vadd.f32 %v10767_v49, %v1506_v52  ;;  %v9894_v34 = vld [vmem:[%s10495_s21 + $0x100] sm:$0xff]  ;;  %v9939_v52 = vld [vmem:[%s12792_s2 + $0x68] sm:$0xff] }
 0x14d   : > { %v2740_v35 = vsel %vm2737_vm2, %v2738_v28, %v2739_v29  ;;  %v1539_v8 = vmax.f32 %v1523_v63, 0.0  ;;  %v9903_v28 = vld [vmem:[%s10495_s21 + $0x70] sm:$0xff] }
 0x14e   : > { %v2742_v36 = vmax.f32 %v2726_v27, %v2740_v35  ;;  %v1457_v37 = vpop.f32.mrf.mxu2  ;;  %v10838_v38 = vpop.f32.mrf.mxu3 }
 0x14f   : > { %v1138_v43 = vpop.f32.mrf.mxu0  ;;  %v1299_v44 = vpop.f32.mrf.mxu1  ;;  %v1490_v0 = vadd.f32 %v1457_v37, %v1329_v59  ;;  %v9933_v37 = vld [vmem:[%s12792_s2 + $0x38] sm:$0xff] }
 0x150   : > { %2743 = vst [vmem:[#allocation3 + $0xb] sm:$0xff] %v2742_v36  ;;  %v1169_v50 = vadd.f32 %v1138_v43, %v10644_v22  ;;  %v9941_v36 = vld [vmem:[%s12792_s2 + $0x78] sm:$0xff]  ;;  %3096 = vmatpush.bf16.msrb.mxu3 %v9933_v37  ;;  %v9940_v43 = vld [vmem:[%s12792_s2 + $0x70] sm:$0xff] }
 0x151   : > { %v1507_v9 = vmul.f32 %v10753_v20, %v1490_v0  ;;  %3014 = vmatpush.bf16.msrb.mxu2 %v9941_v36  ;;  %v9886_v0 = vld [vmem:[%s10495_s21 + $0x70] sm:$0xff] }
 0x152   : > { %7764 = vmatmul.msk.bf16.gmra.mxu0 %vm493_vm1, %v9866_v39  ;;  %7811 = vmatmul.msk.bf16.gmra.mxu1 %vm493_vm1, %v9884_v40  ;;  %v1330_v60 = vadd.f32 %v1299_v44, %v1169_v50  ;;  %v9932_v44 = vld [vmem:[%s12792_s2 + $0x30] sm:$0xff] }
 0x153   : > { %7858 = vmatmul.msk.bf16.gmra.mxu2 %vm493_vm1, %v9893_v46  ;;  %7905 = vmatmul.msk.bf16.gmra.mxu3 %vm493_vm1, %v9902_v47  ;;  %v1524_v29 = vadd.f32 %v10767_v49, %v1507_v9  ;;  %v9928_v37 = vld [vmem:[%s12792_s2 + $0x10] sm:$0xff] }
 0x154   : > { %3097 = vmatpush.bf16.msrb.mxu3 %v9932_v44 }
 0x155   : > { %v1540_v51 = vmax.f32 %v1524_v29, 0.0  ;;  %3015 = vmatpush.bf16.msrb.mxu2 %v9940_v43  ;;  %v9916_v29 = vld [vmem:[%s12791_s1 + $0x3c] sm:$0xff] }
 0x156   : > { %v1460_v56 = vpop.f32.mrf.mxu2  ;;  %v10851_v57 = vpop.f32.mrf.mxu3  ;;  %2437 = vmatpush.bf16.msrb.mxu0 %v9916_v29 }
 0x157   : > { %v1491_v22 = vadd.f32 %v1460_v56, %v1330_v60  ;;  %v1140_v61 = vpop.f32.mrf.mxu0  ;;  %v1301_v62 = vpop.f32.mrf.mxu1  ;;  %v9931_v60 = vld [vmem:[%s12792_s2 + $0x28] sm:$0xff] }
 0x158   : > { %v1170_v5 = vadd.f32 %v1140_v61, %v10650_v33  ;;  %3098 = vmatpush.bf16.msrb.mxu3 %v9931_v60 }
 0x159   : > { %v1508_v14 = vmul.f32 %v10753_v20, %v1491_v22  ;;  %3016 = vmatpush.bf16.msrb.mxu2 %v9939_v52  ;;  %v9927_v52 = vld [vmem:[%s12792_s2 + $0x8] sm:$0xff] }
 0x15a   : > { %v1331_v12 = vadd.f32 %v1301_v62, %v1170_v5  ;;  %v9930_v5 = vld [vmem:[%s12792_s2 + $0x20] sm:$0xff] }
 0x15b   : > { %v10857_v7 = vadd.f32 %v10767_v49, %v1508_v14  ;;  %v9938_v14 = vld [vmem:[%s12792_s2 + $0x60] sm:$0xff] }
 0x15c   : > { %3099 = vmatpush.bf16.msrb.mxu3 %v9930_v5 }
 0x15d   : > { %v1541_v10 = vmax.f32 %v10857_v7, 0.0  ;;  %3017 = vmatpush.bf16.msrb.mxu2 %v9938_v14  ;;  %v9926_v14 = vld [vmem:[%s12792_s2] sm:$0xff] }
 0x15e   : > { %v1462_v16 = vpop.f32.mrf.mxu2  ;;  %v10861_v18 = vpop.f32.mrf.mxu3 }
 0x15f   : > { %v2748_v25 = vmax.f32 %v1539_v8, %v1541_v10  ;;  %v1492_v26 = vadd.f32 %v1462_v16, %v1331_v12  ;;  %v1143_v27 = vpop.f32.mrf.mxu0  ;;  %v1304_v33 = vpop.f32.mrf.mxu1  ;;  %v9895_v16 = vld [vmem:[%s10495_s21 + $0x108] sm:$0xff] }
 0x160   : > { %v1171_v22 = vadd.f32 %v1143_v27, %v10656_v41  ;;  %v9937_v27 = vld [vmem:[%s12792_s2 + $0x58] sm:$0xff] }
 0x161   : > { %v2752_v32 = vmax.f32 %v2748_v25, %v1537_v55  ;;  %v1509_v35 = vmul.f32 %v10753_v20, %v1492_v26  ;;  %3018 = vmatpush.bf16.msrb.mxu2 %v9937_v27 }
 0x162   : > { %7765 = vmatmul.msk.bf16.gmra.mxu0 %vm493_vm1, %v9867_v21  ;;  %7812 = vmatmul.msk.bf16.gmra.mxu1 %vm493_vm1, %v9885_v23  ;;  %v1332_v8 = vadd.f32 %v1304_v33, %v1171_v22  ;;  %v9904_v21 = vld [vmem:[%s10495_s21 + $0x78] sm:$0xff] }
 0x163   : > { %v10882_v39 = vadd.f32 %v10767_v49, %v1509_v35  ;;  %7859 = vmatmul.msk.bf16.gmra.mxu2 %vm493_vm1, %v9894_v34  ;;  %7906 = vmatmul.msk.bf16.gmra.mxu3 %vm493_vm1, %v9903_v28  ;;  %v2755_v50 = vmul.f32 %v2752_v32, %v10814_v13  ;;  %v9929_v33 = vld [vmem:[%s12792_s2 + $0x18] sm:$0xff] }
 0x164   : > { %3100 = vmatpush.bf16.msrb.mxu3 %v9929_v33 }
 0x165   : > { %v1542_v55 = vmax.f32 %v10882_v39, 0.0  ;;  %v2759_v61 = vrot.slane %v2755_v50, 7  ;;  %v9897_v39 = vld [vmem:[%s10495_s21 + $0x118] sm:$0xff] }
 0x166   : > { %v1465_v40 = vpop.f32.mrf.mxu2  ;;  %v10887_v42 = vpop.f32.mrf.mxu3 }
 0x167   : > { %v2749_v46 = vmax.f32 %v1540_v51, %v1542_v55  ;;  %v1145_v47 = vpop.f32.mrf.mxu0  ;;  %v1306_v48 = vpop.f32.mrf.mxu1  ;;  %v1493_v25 = vadd.f32 %v1465_v40, %v1332_v8 }
 0x168   : > { %v1172_v34 = vadd.f32 %v1145_v47, %v10662_v53  ;;  %v9936_v53 = vld [vmem:[%s12792_s2 + $0x50] sm:$0xff]  ;;  %3101 = vmatpush.bf16.msrb.mxu3 %v9928_v37 }
 0x169   : > { %v2753_v3 = vmax.f32 %v2749_v46, %v1538_v17  ;;  %v9868_v17 = vld [vmem:[%s10495_s21 + $0x68] sm:$0xff]  ;;  %3019 = vmatpush.bf16.msrb.mxu2 %v9936_v53 }
 0x16a   : > { %v1333_v51 = vadd.f32 %v1306_v48, %v1172_v34  ;;  %v9935_v48 = vld [vmem:[%s12792_s2 + $0x48] sm:$0xff] }
 0x16b   : > { %v2754_v56 = vmax.f32 %v2752_v32, %v2753_v3  ;;  %v2756_v59 = vmul.f32 %v2753_v3, %v10814_v13  ;;  %v9925_v32 = vld [vmem:[%s12791_s1 + $0x48] sm:$0xff] }
 0x16c   : > { %2597 = vmatpush.bf16.msrb.mxu1 %v9925_v32  ;;  %3102 = vmatpush.bf16.msrb.mxu3 %v9927_v52 }
 0x16d   : > { %v2760_v15 = vrot.slane %v2756_v59, 7  ;;  %3020 = vmatpush.bf16.msrb.mxu2 %v9935_v48 }
 0x16e   : > { %v1467_v62 = vpop.f32.mrf.mxu2  ;;  %v10909_v63 = vpop.f32.mrf.mxu3 }
 0x16f   : > { %v2761_v41 = vsel %vm2737_vm2, %v2759_v61, %v2760_v15  ;;  %v1148_v9 = vpop.f32.mrf.mxu0  ;;  %v1309_v12 = vpop.f32.mrf.mxu1  ;;  %v1494_v47 = vadd.f32 %v1467_v62, %v1333_v51  ;;  %v9869_v61 = vld [vmem:[%s10495_s21 + $0x70] sm:$0xff]  ;;  %v9887_v62 = vld [vmem:[%s10495_s21 + $0x78] sm:$0xff] }
 0x170   : > { %v2763_v23 = vmax.f32 %v2754_v56, %v2761_v41  ;;  %v1173_v26 = vadd.f32 %v1148_v9, %v10680_v4  ;;  %v1510_v4 = vmul.f32 %v10753_v20, %v1493_v25  ;;  %3103 = vmatpush.bf16.msrb.mxu3 %v9926_v14 }
 0x171   : > { %v1511_v59 = vmul.f32 %v10753_v20, %v1494_v47  ;;  %v9888_v47 = vld [vmem:[%s10495_s21 + $0x80] sm:$0xff] }
 0x172   : > { %2764 = vst [vmem:[#allocation3 + $0x15] sm:$0xff] %v2763_v23  ;;  %7766 = vmatmul.msk.bf16.gmra.mxu0 %vm493_vm1, %v9868_v17  ;;  %7813 = vmatmul.msk.bf16.gmra.mxu1 %vm493_vm1, %v9886_v0  ;;  %v1334_v28 = vadd.f32 %v1309_v12, %v1173_v26  ;;  %v1527_v46 = vadd.f32 %v10767_v49, %v1510_v4  ;;  %v9934_v0 = vld [vmem:[%s12792_s2 + $0x40] sm:$0xff]  ;;  %v9896_v12 = vld [vmem:[%s10495_s21 + $0x110] sm:$0xff] }
 0x173   : > { %7860 = vmatmul.msk.bf16.gmra.mxu2 %vm493_vm1, %v9895_v16  ;;  %7907 = vmatmul.msk.bf16.gmra.mxu3 %vm493_vm1, %v9904_v21  ;;  %v9905_v16 = vld [vmem:[%s10495_s21 + $0x80] sm:$0xff]  ;;  %v1528_v21 = vadd.f32 %v10767_v49, %v1511_v59 }
 0x174   : > { %v1543_v56 = vmax.f32 %v1527_v46, 0.0  ;;  %3021 = vmatpush.bf16.msrb.mxu2 %v9934_v0  ;;  %v9870_v46 = vld [vmem:[%s10495_s21 + $0x78] sm:$0xff] }
 0x175   : > { %v1544_v27 = vmax.f32 %v1528_v21, 0.0  ;;  %v2896_v21 = vld [vmem:[%s12797_s7 + $0x28] sm:$0xff] }
 0x176   : > { %v1470_v35 = vpop.f32.mrf.mxu2  ;;  %v10940_v36 = vpop.f32.mrf.mxu3 }
 0x177   : > { %v1495_v40 = vadd.f32 %v1470_v35, %v1334_v28  ;;  %v1150_v43 = vpop.f32.mrf.mxu0  ;;  %v1311_v44 = vpop.f32.mrf.mxu1 }
 0x178   : > { %v1174_v3 = vadd.f32 %v1150_v43, %v10694_v24 }
 0x179   : > { %v1512_v50 = vmul.f32 %v10753_v20, %v1495_v40 }
 0x17a   : > { %v1335_v22 = vadd.f32 %v1311_v44, %v1174_v3 }
 0x17b   : > { %v10958_v60 = vadd.f32 %v10767_v49, %v1512_v50 }
 0x17d   : > { %v1545_v24 = vmax.f32 %v10958_v60, 0.0 }
 0x17e   : > { %v1472_v15 = vpop.f32.mrf.mxu2  ;;  %v10963_v17 = vpop.f32.mrf.mxu3 }
 0x17f   : > { %v2769_v5 = vmax.f32 %v1543_v56, %v1545_v24  ;;  %v1496_v41 = vadd.f32 %v1472_v15, %v1335_v22  ;;  %v1153_v8 = vpop.f32.mrf.mxu0  ;;  %v1314_v9 = vpop.f32.mrf.mxu1  ;;  %v9906_v56 = vld [vmem:[%s10495_s21 + $0x88] sm:$0xff] }
 0x180   : > { %v1175_v37 = vadd.f32 %v1153_v8, %v10700_v31  ;;  %v2891_v31 = vld [vmem:[%s12797_s7] sm:$0xff] }
 0x181   : > { %v2773_v23 = vmax.f32 %v2769_v5, %v1541_v10  ;;  %v1513_v25 = vmul.f32 %v10753_v20, %v1496_v41  ;;  %4032 = vperm.xlu0 %10274, %v2891_v31  }
 0x182   : > { %7767 = vmatmul.msk.bf16.gmra.mxu0 %vm493_vm1, %v9869_v61  ;;  %7814 = vmatmul.msk.bf16.gmra.mxu1 %vm493_vm1, %v9887_v62  ;;  %v1336_v3 = vadd.f32 %v1314_v9, %v1175_v37  ;;  %v9908_v37 = vld [vmem:[%s10495_s21 + $0xe8] sm:$0xff] }
 0x183   : > { %v10983_v26 = vadd.f32 %v10767_v49, %v1513_v25  ;;  %7861 = vmatmul.msk.bf16.gmra.mxu2 %vm493_vm1, %v9896_v12  ;;  %7908 = vmatmul.msk.bf16.gmra.mxu3 %vm493_vm1, %v9905_v16  ;;  %v2776_v29 = vmul.f32 %v2773_v23, %v10814_v13  ;;  %v11025_v25 = vld [vmem:[#allocation3 + $0x14] sm:$0xff] }
 0x185   : > { %v1546_v33 = vmax.f32 %v10983_v26, 0.0  ;;  %v2780_v51 = vrot.slane %v2776_v29, 7  ;;  %v2934_v29 = vld [vmem:[#allocation3 + $0x1] sm:$0xff] }
 0x186   : > { %v1475_v7 = vpop.f32.mrf.mxu2  ;;  %v10988_v10 = vpop.f32.mrf.mxu3 }
 0x187   : > { %v2770_v34 = vmax.f32 %v1544_v27, %v1546_v33  ;;  %v1155_v4 = vpop.f32.mrf.mxu0  ;;  %v1316_v28 = vpop.f32.mrf.mxu1  ;;  %v1497_v59 = vadd.f32 %v1475_v7, %v1336_v3  ;;  %v3379_v7 = vld [vmem:[#allocation3 + $0x13] sm:$0xff] }
 0x188   : > { %v1176_v61 = vadd.f32 %v1155_v4, %v10706_v45 }
 0x189   : > { %v2774_v32 = vmax.f32 %v2770_v34, %v1542_v55  ;;  %v1514_v15 = vmul.f32 %v10753_v20, %v1497_v59  ;;  %4057 = vperm.xlu0 %10274, %v2896_v21   ;;  %v2899_v59 = vld [vmem:[%s12797_s7 + $0x40] sm:$0xff] }
 0x18a   : > { %v1337_v14 = vadd.f32 %v1316_v28, %v1176_v61  ;;  %v9918_v21 = vld [vmem:[%s10495_s21 + $0x60] sm:$0xff] }
 0x18b   : > { %v2775_v35 = vmax.f32 %v2773_v23, %v2774_v32  ;;  %v2777_v53 = vmul.f32 %v2774_v32, %v10814_v13  ;;  %v1531_v9 = vadd.f32 %v10767_v49, %v1514_v15  ;;  %v2935_v32 = vld [vmem:[#allocation3 + $0x9] sm:$0xff] }
 0x18d   : > { %v2781_v40 = vrot.slane %v2777_v53, 7  ;;  %v1547_v34 = vmax.f32 %v1531_v9, 0.0 }
 0x18e   : > { %v1477_v43 = vpop.f32.mrf.mxu2  ;;  %v10997_v44 = vpop.f32.mrf.mxu3 }
 0x18f   : > { %v2782_v50 = vsel %vm2737_vm2, %v2780_v51, %v2781_v40  ;;  %v1158_v48 = vpop.f32.mrf.mxu0  ;;  %v1319_v52 = vpop.f32.mrf.mxu1  ;;  %v1498_v12 = vadd.f32 %v1477_v43, %v1337_v14  ;;  %v9917_v51 = vld [vmem:[%s10495_s21 + $0x58] sm:$0xff]  ;;  %v2904_v40 = vld [vmem:[#allocation3 + $0x8] sm:$0xff] }
 0x190   : > { %v2784_v55 = vmax.f32 %v2775_v35, %v2782_v50  ;;  %v1177_v22 = vadd.f32 %v1158_v48, %v10712_v54  ;;  %v2944_v48 = vpack.c.bf16 %v2935_v32, %v2934_v29 }
 0x191   : > { %v1515_v4 = vmul.f32 %v10753_v20, %v1498_v12  ;;  %4072 = vperm.xlu0 %10274, %v2899_v59   ;;  %v9919_v59 = vld [vmem:[%s10495_s21 + $0x68] sm:$0xff] }
 0x192   : > { %2785 = vst [vmem:[#allocation3 + $0x1f] sm:$0xff] %v2784_v55  ;;  %7768 = vmatmul.msk.bf16.gmra.mxu0 %vm493_vm1, %v9870_v46  ;;  %7815 = vmatmul.msk.bf16.gmra.mxu1 %vm493_vm1, %v9888_v47  ;;  %v1338_v62 = vadd.f32 %v1319_v52, %v1177_v22  ;;  %v2913_v55 = vpack.c.bf16 %v2904_v40, %v10358_v1 }
 0x193   : > { %7862 = vmatmul.msk.bf16.gmra.mxu2 %vm493_vm1, %v9897_v39  ;;  %7909 = vmatmul.msk.bf16.gmra.mxu3 %vm493_vm1, %v9906_v56  ;;  %v1532_v52 = vadd.f32 %v10767_v49, %v1515_v4 }
 0x195   : > { %v1548_v60 = vmax.f32 %v1532_v52, 0.0 }
 0x196   : > { %v1480_v54 = vpop.f32.mrf.mxu2  ;;  %v11014_v0 = vpop.f32.mrf.mxu3 }
 0x197   : > { %v1499_v5 = vadd.f32 %v1480_v54, %v1338_v62  ;;  %v1160_v41 = vpop.f32.mrf.mxu0  ;;  %v1321_v8 = vpop.f32.mrf.mxu1 }
 0x198   : > { %v1178_v16 = vadd.f32 %v1160_v41, %v10719_v2 }
 0x199   : > { %v1516_v45 = vmul.f32 %v10753_v20, %v1499_v5  ;;  %v11027_v27 = vld [vmem:[#allocation3 + $0x1c] sm:$0xff]  ;;  %v5474_v5 = vld [vmem:[%s12798_s8 + $0x8] sm:$0xff] }
 0x19a   : > { %v1339_v28 = vadd.f32 %v1321_v8, %v1178_v16  ;;  %6309 = vperm.xlu0 %10274, %v5474_v5   ;;  %v2937_v26 = vld [vmem:[#allocation3 + $0x19] sm:$0xff] }
 0x19b   : > { %v11023_v23 = vadd.f32 %v10767_v49, %v1516_v45  ;;  %v9909_v45 = vld [vmem:[%s10495_s21 + $0xf0] sm:$0xff] }
 0x19d   : > { %v12802_v2 = vmax.f32 %v11023_v23, 0.0 }
 0x19e   : > { %v1482_v35 = vpop.f32.mrf.mxu2  ;;  %v11033_v53 = vpop.f32.mrf.mxu3 }
 0x19f   : > { %12808 = vst [vmem:[#allocation11_spill] sm:$0xff] %v11033_v53  ;;  %v2790_v43 = vmax.f32 %v1547_v34, %v12802_v2  ;;  %v1500_v46 = vadd.f32 %v1482_v35, %v1339_v28  ;;  %v1815_v47 = vpop.f32.mrf.mxu0  ;;  %v1959_v50 = vpop.f32.mrf.mxu1  ;;  %v2936_v35 = vld [vmem:[#allocation3 + $0x11] sm:$0xff] }
 0x1a0   : > { %v1816_v3 = vadd.f32 %v1815_v47, %v10730_v6  ;;  %v2945_v40 = vpack.c.bf16 %v2937_v26, %v2936_v35 }
 0x1a1   : > { %v2794_v39 = vmax.f32 %v2790_v43, %v1545_v24  ;;  %v1517_v56 = vmul.f32 %v10753_v20, %v1500_v46 }
 0x1a2   : > { %v11048_v22 = vadd.f32 %v1959_v50, %v1816_v3  ;;  %7949 = vmatmul.msk.bf16.vlgmr.msrb.gmra.mxu0 %vm493_vm1, %v9908_v37  ;;  %7996 = vmatmul.msk.bf16.vlgmr.msrb.gmra.mxu1 %vm493_vm1, %v9917_v51  ;;  %v2905_v37 = vld [vmem:[#allocation3 + $0x10] sm:$0xff]  ;;  %v7250_v51 = vmul.f32 0.0625, %v5474_v5 }
 0x1a3   : > { %v11053_v6 = vadd.f32 %v10767_v49, %v1517_v56  ;;  %3022 = vmatmul.bf16.vlgmr.msrb.gmra.mxu2 %v2944_v48  ;;  %3104 = vmatmul.bf16.vlgmr.msrb.gmra.mxu3 %v2913_v55  ;;  %v2797_v62 = vmul.f32 %v2794_v39, %v10814_v13  ;;  %v9910_v55 = vld [vmem:[%s10495_s21 + $0xf8] sm:$0xff] }
 0x1a4   : > { %7259 = vperm.xlu0 %10274, %v7250_v51  }
 0x1a5   : > { %v12801_v20 = vmax.f32 %v11053_v6, 0.0  ;;  %v2801_v9 = vrot.slane %v2797_v62, 7  ;;  %v2907_v62 = vld [vmem:[#allocation3 + $0x20] sm:$0xff] }
 0x1a6   : > { %v11056_v1 = vpop.f32.mrf.mxu2  ;;  %v11058_v24 = vpop.f32.mrf.mxu3 }
 0x1a7   : > { %v2791_v31 = vmax.f32 %v1548_v60, %v12801_v20  ;;  %v1817_v61 = vpop.f32.mrf.mxu0  ;;  %v1961_v15 = vpop.f32.mrf.mxu1 }
 0x1a8   : > { %v1818_v49 = vadd.f32 %v1817_v61, %v10741_v11 }
 0x1a9   : > { %v2795_v54 = vmax.f32 %v2791_v31, %v1546_v33  ;;  %v2906_v33 = vld [vmem:[#allocation3 + $0x18] sm:$0xff] }
 0x1aa   : > { %v11066_v14 = vadd.f32 %v1961_v15, %v1818_v49  ;;  %v2914_v43 = vpack.c.bf16 %v2906_v33, %v2905_v37  ;;  %v2938_v49 = vld [vmem:[#allocation3 + $0x21] sm:$0xff] }
 0x1ab   : > { %v2796_v41 = vmax.f32 %v2794_v39, %v2795_v54  ;;  %v2798_v8 = vmul.f32 %v2795_v54, %v10814_v13  ;;  %v9911_v33 = vld [vmem:[%s10495_s21 + $0x100] sm:$0xff] }
 0x1ad   : > { %v2802_v12 = vrot.slane %v2798_v8, 7 }
 0x1ae   : > { %v11073_v16 = vpop.f32.mrf.mxu2  ;;  %v11075_v11 = vpop.f32.mrf.mxu3 }
 0x1af   : > { %v2803_v34 = vsel %vm2737_vm2, %v2801_v9, %v2802_v12  ;;  %v1820_v4 = vpop.f32.mrf.mxu0  ;;  %v1964_v28 = vpop.f32.mrf.mxu1 }
 0x1b0   : > { %v2805_v29 = vmax.f32 %v2796_v41, %v2803_v34  ;;  %v1821_v32 = vadd.f32 %v1820_v4, %v10778_v30  ;;  %v9920_v34 = vld [vmem:[%s10495_s21 + $0x70] sm:$0xff] }
 0x1b2   : > { %2806 = vst [vmem:[#allocation3 + $0x29] sm:$0xff] %v2805_v29  ;;  %v11080_v46 = vadd.f32 %v1964_v28, %v1821_v32  ;;  %7950 = vmatmul.msk.bf16.gmra.mxu0 %vm493_vm1, %v9909_v45  ;;  %7997 = vmatmul.msk.bf16.gmra.mxu1 %vm493_vm1, %v9918_v21  ;;  %v2946_v54 = vpack.c.bf16 %v2805_v29, %v2938_v49 }
 0x1b3   : > { %3027 = vmatmul.bf16.gmra.mxu2 %v2945_v40  ;;  %3109 = vmatmul.bf16.gmra.mxu3 %v2914_v43 }
 0x1b6   : > { %v11084_v47 = vpop.f32.mrf.mxu2  ;;  %v11086_v30 = vpop.f32.mrf.mxu3 }
 0x1b7   : > { %v1822_v50 = vpop.f32.mrf.mxu0  ;;  %v1966_v3 = vpop.f32.mrf.mxu1 }
 0x1b8   : > { %v1823_v48 = vadd.f32 %v1822_v50, %v10798_v58 }
 0x1b9   : > { %v2908_v60 = vld [vmem:[#allocation3 + $0x28] sm:$0xff] }
 0x1ba   : > { %v11089_v52 = vadd.f32 %v1966_v3, %v1823_v48  ;;  %v2915_v5 = vpack.c.bf16 %v2908_v60, %v2907_v62  ;;  %v9921_v48 = vld [vmem:[%s10495_s21 + $0x78] sm:$0xff] }
 0x1be   : > { %v11091_v39 = vpop.f32.mrf.mxu2  ;;  %v11093_v56 = vpop.f32.mrf.mxu3 }
 0x1bf   : > { %v1825_v31 = vpop.f32.mrf.mxu0  ;;  %v1969_v61 = vpop.f32.mrf.mxu1 }
 0x1c0   : > { %v1826_v15 = vadd.f32 %v1825_v31, %v10825_v19 }
 0x1c2   : > { %v11098_v58 = vadd.f32 %v1969_v61, %v1826_v15  ;;  %7951 = vmatmul.msk.bf16.gmra.mxu0 %vm493_vm1, %v9910_v55  ;;  %7998 = vmatmul.msk.bf16.gmra.mxu1 %vm493_vm1, %v9919_v59  ;;  %v9973_v61 = vld [vmem:[%s12792_s2 + $0x178] sm:$0xff] }
 0x1c3   : > { %3032 = vmatmul.bf16.gmra.mxu2 %v2946_v54  ;;  %3114 = vmatmul.bf16.gmra.mxu3 %v2915_v5  ;;  %v9964_v54 = vld [vmem:[%s12792_s2 + $0x130] sm:$0xff] }
 0x1c4   : > { %3582 = vmatpush.bf16.msra.mxu1 %v9973_v61  ;;  %v9972_v5 = vld [vmem:[%s12792_s2 + $0x170] sm:$0xff] }
 0x1c6   : > { %v11102_v41 = vpop.f32.mrf.mxu2  ;;  %v11104_v8 = vpop.f32.mrf.mxu3 }
 0x1c7   : > { %v1827_v9 = vpop.f32.mrf.mxu0  ;;  %v1971_v19 = vpop.f32.mrf.mxu1 }
 0x1c8   : > { %v1828_v12 = vadd.f32 %v1827_v9, %v10838_v38  ;;  %3583 = vmatpush.bf16.msra.mxu1 %v9972_v5 }
 0x1ca   : > { %v11107_v45 = vadd.f32 %v1971_v19, %v1828_v12  ;;  %v9963_v12 = vld [vmem:[%s12792_s2 + $0x128] sm:$0xff] }
 0x1ce   : > { %v11109_v21 = vpop.f32.mrf.mxu2  ;;  %v11111_v26 = vpop.f32.mrf.mxu3 }
 0x1cf   : > { %v1830_v4 = vpop.f32.mrf.mxu0  ;;  %v1974_v28 = vpop.f32.mrf.mxu1 }
 0x1d0   : > { %v1831_v29 = vadd.f32 %v1830_v4, %v10851_v57  ;;  %v9912_v57 = vld [vmem:[%s10495_s21 + $0x108] sm:$0xff] }
 0x1d2   : > { %v11116_v32 = vadd.f32 %v1974_v28, %v1831_v29  ;;  %7952 = vmatmul.msk.bf16.gmra.mxu0 %vm493_vm1, %v9911_v33  ;;  %7999 = vmatmul.msk.bf16.gmra.mxu1 %vm493_vm1, %v9920_v34  ;;  %v9971_v33 = vld [vmem:[%s12792_s2 + $0x168] sm:$0xff]  ;;  %v9913_v28 = vld [vmem:[%s10495_s21 + $0x110] sm:$0xff] }
 0x1d3   : > { %3584 = vmatpush.bf16.msra.mxu1 %v9971_v33 }
 0x1d6   : > { %v11120_v38 = vpop.f32.mrf.mxu2  ;;  %v11122_v35 = vpop.f32.mrf.mxu3 }
 0x1d7   : > { %v1832_v37 = vpop.f32.mrf.mxu0  ;;  %v1976_v51 = vpop.f32.mrf.mxu1 }
 0x1d8   : > { %v1833_v40 = vadd.f32 %v1832_v37, %v10861_v18  ;;  %v9965_v18 = vld [vmem:[%s12792_s2 + $0x138] sm:$0xff] }
 0x1d9   : > { %3458 = vmatpush.bf16.msra.mxu0 %v9965_v18 }
 0x1da   : > { %v11125_v43 = vadd.f32 %v1976_v51, %v1833_v40  ;;  %v9962_v51 = vld [vmem:[%s12792_s2 + $0x120] sm:$0xff] }
 0x1db   : > { %v9970_v40 = vld [vmem:[%s12792_s2 + $0x160] sm:$0xff] }
 0x1dc   : > { %3585 = vmatpush.bf16.msra.mxu1 %v9970_v40  ;;  %v9966_v40 = vld [vmem:[%s12792_s2 + $0x140] sm:$0xff] }
 0x1dd   : > { %3459 = vmatpush.bf16.msra.mxu0 %v9964_v54 }
 0x1de   : > { %v11127_v50 = vpop.f32.mrf.mxu2  ;;  %v11129_v3 = vpop.f32.mrf.mxu3 }
 0x1df   : > { %v1835_v55 = vpop.f32.mrf.mxu0  ;;  %v1979_v59 = vpop.f32.mrf.mxu1 }
 0x1e0   : > { %v1836_v60 = vadd.f32 %v1835_v55, %v10887_v42  ;;  %v9961_v55 = vld [vmem:[%s12792_s2 + $0x118] sm:$0xff] }
 0x1e1   : > { %3460 = vmatpush.bf16.msra.mxu0 %v9963_v12  ;;  %v9967_v12 = vld [vmem:[%s12792_s2 + $0x148] sm:$0xff] }
 0x1e2   : > { %v11134_v31 = vadd.f32 %v1979_v59, %v1836_v60  ;;  %7953 = vmatmul.msk.bf16.gmra.mxu0 %vm493_vm1, %v9912_v57  ;;  %8000 = vmatmul.msk.bf16.gmra.mxu1 %vm493_vm1, %v9921_v48  ;;  %v9969_v59 = vld [vmem:[%s12792_s2 + $0x158] sm:$0xff] }
 0x1e3   : > { %3586 = vmatpush.bf16.msra.mxu1 %v9969_v59 }
 0x1e5   : > { %3461 = vmatpush.bf16.msra.mxu0 %v9962_v51  ;;  %v9958_v51 = vld [vmem:[%s12792_s2 + $0x100] sm:$0xff] }
 0x1e6   : > { %v11144_v15 = vpop.f32.mrf.mxu2  ;;  %v11146_v42 = vpop.f32.mrf.mxu3 }
 0x1e7   : > { %v1837_v49 = vpop.f32.mrf.mxu0  ;;  %v1981_v62 = vpop.f32.mrf.mxu1 }
 0x1e8   : > { %v1838_v9 = vadd.f32 %v1837_v49, %v10909_v63  ;;  %v9922_v63 = vld [vmem:[%s10495_s21 + $0x80] sm:$0xff]  ;;  %v9960_v49 = vld [vmem:[%s12792_s2 + $0x110] sm:$0xff] }
 0x1e9   : > { %3462 = vmatpush.bf16.msra.mxu0 %v9961_v55 }
 0x1ea   : > { %v11155_v19 = vadd.f32 %v1981_v62, %v1838_v9  ;;  %v9968_v62 = vld [vmem:[%s12792_s2 + $0x150] sm:$0xff]  ;;  %v9959_v9 = vld [vmem:[%s12792_s2 + $0x108] sm:$0xff] }
 0x1eb   : > { %3587 = vmatpush.bf16.msra.mxu1 %v9968_v62 }
 0x1ed   : > { %3463 = vmatpush.bf16.msra.mxu0 %v9960_v49 }
 0x1ee   : > { %v11163_v34 = vpop.f32.mrf.mxu2  ;;  %v11165_v4 = vpop.f32.mrf.mxu3 }
 0x1ef   : > { %v1840_v29 = vpop.f32.mrf.mxu0  ;;  %v1984_v37 = vpop.f32.mrf.mxu1  ;;  %3588 = vmatpush.bf16.msra.mxu1 %v9967_v12 }
 0x1f0   : > { %v1841_v57 = vadd.f32 %v1840_v29, %v10940_v36 }
 0x1f1   : > { %3464 = vmatpush.bf16.msra.mxu0 %v9959_v9  ;;  %v9924_v9 = vld [vmem:[%s10495_s21 + $0x90] sm:$0xff] }
 0x1f2   : > { %v11176_v48 = vadd.f32 %v1984_v37, %v1841_v57  ;;  %7954 = vmatmul.msk.bf16.gmra.mxu0 %vm493_vm1, %v9913_v28  ;;  %8001 = vmatmul.msk.bf16.gmra.mxu1 %vm493_vm1, %v9922_v63  ;;  %v9914_v63 = vld [vmem:[%s10495_s21 + $0x118] sm:$0xff] }
 0x1f3   : > { %3589 = vmatpush.bf16.msra.mxu1 %v9966_v40 }
 0x1f5   : > { %3465 = vmatpush.bf16.msra.mxu0 %v9958_v51 }
 0x1f6   : > { %v11186_v60 = vpop.f32.mrf.mxu2  ;;  %v11188_v36 = vpop.f32.mrf.mxu3 }
 0x1f7   : > { %v1842_v18 = vpop.f32.mrf.mxu0  ;;  %v1986_v61 = vpop.f32.mrf.mxu1 }
 0x1f8   : > { %v1843_v54 = vadd.f32 %v1842_v18, %v10963_v17  ;;  %v9923_v17 = vld [vmem:[%s10495_s21 + $0x88] sm:$0xff] }
 0x1fa   : > { %v11197_v5 = vadd.f32 %v1986_v61, %v1843_v54 }
 0x1fe   : > { %v11205_v33 = vpop.f32.mrf.mxu2  ;;  %v11207_v28 = vpop.f32.mrf.mxu3 }
 0x1ff   : > { %v1845_v29 = vpop.f32.mrf.mxu0  ;;  %v1989_v37 = vpop.f32.mrf.mxu1 }
 0x200   : > { %v1846_v57 = vadd.f32 %v1845_v29, %v10988_v10  ;;  %v9915_v10 = vld [vmem:[%s10495_s21 + $0x120] sm:$0xff]  ;;  %s351_s21 = scalar_lea.vmem [#allocation8], %s350_s28 }
 0x201   : > { %s7290_s12 = sshll.u32 %s351_s21, 4  ;;  %s7291_s12 = int_to_ptr.vmem [resolvable:$true] %s7290_s12 }
 0x202   : > { %v11218_v55 = vadd.f32 %v1989_v37, %v1846_v57  ;;  %7955 = vmatmul.msk.bf16.gmra.mxu0 %vm493_vm1, %v9914_v63  ;;  %8002 = vmatmul.msk.bf16.gmra.mxu1 %vm493_vm1, %v9923_v17 }
 0x206   : > { %v11222_v59 = vpop.f32.mrf.mxu2  ;;  %v11224_v18 = vpop.f32.mrf.mxu3 }
 0x207   : > { %v11226_v61 = vpop.f32.mrf.mxu0  ;;  %v11228_v49 = vpop.f32.mrf.mxu1 }
 0x20e   : > { %v11230_v62 = vpop.f32.mrf.mxu2  ;;  %v11232_v54 = vpop.f32.mrf.mxu3 }
 0x20f   : > { %12809 = vst [vmem:[#allocation12_spill] sm:$0xff] %v11232_v54  ;;  %v1850_v12 = vpop.f32.mrf.mxu0  ;;  %v1994_v29 = vpop.f32.mrf.mxu1  ;;  %v2159_v54 = vadd.f32 %v11056_v1, %v11048_v22  ;;  %v11263_v22 = vld [vmem:[#allocation3 + $0x24] sm:$0xff] }
 0x210   : > { %v1851_v63 = vadd.f32 %v1850_v12, %v11014_v0 }
 0x212   : > { %v11237_v37 = vadd.f32 %v1994_v29, %v1851_v63  ;;  %7956 = vmatmul.msk.bf16.gmra.mxu0 %vm493_vm1, %v9915_v10  ;;  %8003 = vmatmul.msk.bf16.gmra.mxu1 %vm493_vm1, %v9924_v9  ;;  %v3378_v29 = vld [vmem:[#allocation3 + $0xb] sm:$0xff] }
 0x213   : > { %v3502_v63 = vld [vmem:[#allocation3 + $0xc] sm:$0xff]  ;;  %v3388_v10 = vpack.c.bf16 %v3379_v7, %v3378_v29  ;;  %v2161_v7 = vadd.f32 %v11084_v47, %v11080_v46 }
 0x214   : > { %12810 = vst [vmem:[#allocation13_spill] sm:$0xff] %v11237_v37  ;;  %v3512_v9 = vpack.c.bf16 %v11025_v25, %v3502_v63  ;;  %v2160_v37 = vadd.f32 %v11073_v16, %v11066_v14  ;;  %v3381_v63 = vld [vmem:[#allocation3 + $0x23] sm:$0xff]  ;;  %v11274_v14 = vld [vmem:[%s12795_s5] ss:$0 sm:$0xff] }
 0x216   : > { %v11241_v17 = vpop.f32.mrf.mxu2  ;;  %v11243_v51 = vpop.f32.mrf.mxu3  ;;  %v2320_v1 = vadd.f32 %v11075_v11, %v2160_v37  ;;  %v3513_v11 = vpack.c.bf16 %v11263_v22, %v11027_v27 }
 0x217   : > { %12811 = vst [vmem:[#allocation14_spill] sm:$0xff] %v11241_v17  ;;  %v11245_v40 = vpop.f32.mrf.mxu0  ;;  %v11247_v57 = vpop.f32.mrf.mxu1 }
 0x218   : > { %12812 = vst [vmem:[#allocation15_spill] sm:$0xff] %v11243_v51  ;;  %v2319_v51 = vadd.f32 %v11058_v24, %v2159_v54  ;;  %v2321_v24 = vadd.f32 %v11086_v30, %v2161_v7  ;;  %v2162_v30 = vadd.f32 %v11091_v39, %v11089_v52 }
 0x219   : > { %12813 = vst [vmem:[#allocation16_spill] sm:$0xff] %v11245_v40 }
 0x21a   : > { %12814 = vst [vmem:[#allocation17_spill] sm:$0xff] %v11247_v57  ;;  %v2322_v7 = vadd.f32 %v11093_v56, %v2162_v30 }
 0x21e   : > { %v11249_v20 = vpop.f32.mrf.mxu2  ;;  %v11251_v2 = vpop.f32.mrf.mxu3 }
 0x21f   : > { %12815 = vst [vmem:[#allocation18_spill] sm:$0xff] %v11249_v20  ;;  %v2439_v0 = vpop.f32.mrf.mxu0  ;;  %v2599_v12 = vpop.f32.mrf.mxu1 }
 0x220   : > { %12816 = vst [vmem:[#allocation19_spill] sm:$0xff] %v11251_v2  ;;  %v2479_v17 = vadd.f32 %v2439_v0, %v2319_v51 }
 0x222   : > { %3466 = vmatmul.bf16.vlgmr.msra.gmra.mxu0 %v3388_v10  ;;  %3590 = vmatmul.bf16.vlgmr.msra.gmra.mxu1 %v3512_v9  ;;  %v2639_v29 = vadd.f32 %v2599_v12, %v2479_v17  ;;  %v11284_v17 = vld [vmem:[%s12796_s6] ss:$0 sm:$0xff] }
 0x224   : > { %v2655_v16 = vmul.f32 %v11274_v14, %v2639_v29 }
 0x226   : > { %v3023_v57 = vpop.f32.mrf.mxu2  ;;  %v3105_v40 = vpop.f32.mrf.mxu3  ;;  %v2671_v12 = vadd.f32 %v11284_v17, %v2655_v16 }
 0x227   : > { %v11257_v53 = vadd.f32 %v3105_v40, %v3023_v57  ;;  %v2441_v20 = vpop.f32.mrf.mxu0  ;;  %v2601_v2 = vpop.f32.mrf.mxu1  ;;  %v3380_v57 = vld [vmem:[#allocation3 + $0x1b] sm:$0xff] }
 0x228   : > { %v3389_v10 = vpack.c.bf16 %v3381_v63, %v3380_v57  ;;  %v2480_v46 = vadd.f32 %v2441_v20, %v2320_v1  ;;  %v2687_v57 = vmax.f32 %v2671_v12, 0.0 }
 0x22a   : > { %v2640_v9 = vadd.f32 %v2601_v2, %v2480_v46 }
 0x22e   : > { %v11267_v54 = vpop.f32.mrf.mxu2  ;;  %v11269_v40 = vpop.f32.mrf.mxu3 }
 0x22f   : > { %v2444_v51 = vpop.f32.mrf.mxu0  ;;  %v2604_v0 = vpop.f32.mrf.mxu1 }
 0x230   : > { %v2481_v47 = vadd.f32 %v2444_v51, %v2321_v24  ;;  %v2656_v51 = vmul.f32 %v11274_v14, %v2640_v9 }
 0x232   : > { %v2641_v37 = vadd.f32 %v2604_v0, %v2481_v47  ;;  %3471 = vmatmul.bf16.gmra.mxu0 %v3389_v10  ;;  %3595 = vmatmul.bf16.gmra.mxu1 %v3513_v11  ;;  %v2672_v56 = vadd.f32 %v11284_v17, %v2656_v51 }
 0x234   : > { %v2657_v20 = vmul.f32 %v11274_v14, %v2641_v37  ;;  %v2688_v9 = vmax.f32 %v2672_v56, 0.0 }
 0x236   : > { %v11290_v29 = vadd.f32 %v11284_v17, %v2657_v20  ;;  %v3028_v63 = vpop.f32.mrf.mxu2  ;;  %v3110_v52 = vpop.f32.mrf.mxu3  ;;  %v12818_v20 = vmax.f32 %v11023_v23, 0.0 }
 0x237   : > { %v11292_v39 = vadd.f32 %v3110_v52, %v3028_v63  ;;  %v2446_v1 = vpop.f32.mrf.mxu0  ;;  %v2606_v24 = vpop.f32.mrf.mxu1  ;;  %v2163_v52 = vadd.f32 %v11102_v41, %v11098_v58  ;;  %v2164_v41 = vadd.f32 %v11109_v21, %v11107_v45 }
 0x238   : > { %v12803_v0 = vmax.f32 %v11290_v29, 0.0  ;;  %v2482_v10 = vadd.f32 %v2446_v1, %v2322_v7 }
 0x23a   : > { %v2811_v2 = vmax.f32 %v2687_v57, %v12803_v0  ;;  %v2642_v16 = vadd.f32 %v2606_v24, %v2482_v10  ;;  %v12819_v57 = vmax.f32 %v11053_v6, 0.0  ;;  %v2323_v10 = vadd.f32 %v11104_v8, %v2163_v52  ;;  %v3382_v52 = vld [vmem:[#allocation3 + $0x2b] sm:$0xff] }
 0x23b   : > { %v2165_v6 = vadd.f32 %v11120_v38, %v11116_v32  ;;  %v2166_v32 = vadd.f32 %v11127_v50, %v11125_v43 }
 0x23c   : > { %v2658_v46 = vmul.f32 %v11274_v14, %v2642_v16  ;;  %v2815_v7 = vmax.f32 %v2811_v2, %v12818_v20 }
 0x23e   : > { %v11301_v47 = vadd.f32 %v11284_v17, %v2658_v46  ;;  %v11303_v11 = vpop.f32.mrf.mxu2  ;;  %v11305_v30 = vpop.f32.mrf.mxu3  ;;  %v2818_v24 = vmul.f32 %v2815_v7, %v10814_v13 }
 0x23f   : > { %12817 = vst [vmem:[#allocation20_spill] sm:$0xff] %v11305_v30  ;;  %v2449_v37 = vpop.f32.mrf.mxu0  ;;  %v2609_v12 = vpop.f32.mrf.mxu1 }
 0x240   : > { %v2690_v63 = vmax.f32 %v11301_v47, 0.0  ;;  %v2822_v20 = vrot.slane %v2818_v24, 7  ;;  %v2483_v58 = vadd.f32 %v2449_v37, %v2323_v10 }
 0x242   : > { %v2812_v1 = vmax.f32 %v2688_v9, %v2690_v63 }
 0x244   : > { %v2816_v51 = vmax.f32 %v2812_v1, %v12819_v57  ;;  %v2325_v57 = vadd.f32 %v11122_v35, %v2165_v6 }
 0x246   : > { %v2817_v16 = vmax.f32 %v2815_v7, %v2816_v51  ;;  %v2819_v46 = vmul.f32 %v2816_v51, %v10814_v13  ;;  %v3033_v56 = vpop.f32.mrf.mxu2  ;;  %v3115_v0 = vpop.f32.mrf.mxu3  ;;  %v2643_v7 = vadd.f32 %v2609_v12, %v2483_v58 }
 0x247   : > { %v11317_v23 = vadd.f32 %v3115_v0, %v3033_v56  ;;  %v2451_v2 = vpop.f32.mrf.mxu0  ;;  %v2611_v47 = vpop.f32.mrf.mxu1  ;;  %v2324_v0 = vadd.f32 %v11111_v26, %v2164_v41 }
 0x248   : > { %v2823_v30 = vrot.slane %v2819_v46, 7  ;;  %v2659_v37 = vmul.f32 %v11274_v14, %v2643_v7  ;;  %v2326_v46 = vadd.f32 %v11129_v3, %v2166_v32  ;;  %v12820_v3 = vmax.f32 %v11290_v29, 0.0 }
 0x249   : > { %v2484_v45 = vadd.f32 %v2451_v2, %v2324_v0 }
 0x24a   : > { %v2824_v8 = vsel %vm2737_vm2, %v2822_v20, %v2823_v30  ;;  %v2675_v30 = vadd.f32 %v11284_v17, %v2659_v37 }
 0x24b   : > { %v2826_v9 = vmax.f32 %v2817_v16, %v2824_v8  ;;  %v2644_v12 = vadd.f32 %v2611_v47, %v2484_v45 }
 0x24c   : > { %v2691_v50 = vmax.f32 %v2675_v30, 0.0 }
 0x24d   : > { %2827 = vst [vmem:[#allocation3 + $0x33] sm:$0xff] %v2826_v9  ;;  %v3390_v1 = vpack.c.bf16 %v2826_v9, %v3382_v52  ;;  %v2660_v47 = vmul.f32 %v11274_v14, %v2644_v12 }
 0x24f   : > { %v2454_v24 = vpop.f32.mrf.mxu0  ;;  %v2614_v51 = vpop.f32.mrf.mxu1  ;;  %3476 = vmatmul.bf16.gmra.mxu0 %v3390_v1  ;;  %v2676_v8 = vadd.f32 %v11284_v17, %v2660_v47  ;;  %v9948_v47 = vld [vmem:[%s12792_s2 + $0xb0] sm:$0xff] }
 0x250   : > { %v2485_v21 = vadd.f32 %v2454_v24, %v2325_v57 }
 0x251   : > { %v2692_v57 = vmax.f32 %v2676_v8, 0.0 }
 0x252   : > { %v2645_v38 = vadd.f32 %v2614_v51, %v2485_v21  ;;  %v2167_v51 = vadd.f32 %v11144_v15, %v11134_v31  ;;  %v9949_v31 = vld [vmem:[%s12792_s2 + $0xb8] sm:$0xff] }
 0x253   : > { %v9957_v15 = vld [vmem:[%s12792_s2 + $0xf8] sm:$0xff]  ;;  %3210 = vmatpush.bf16.msra.mxu2 %v9949_v31 }
 0x254   : > { %v2661_v10 = vmul.f32 %v11274_v14, %v2645_v38  ;;  %v11331_v16 = vld [vmem:[#allocation3 + $0x2c] sm:$0xff]  ;;  %v11333_v26 = vld [vmem:[#allocation3 + $0x34] sm:$0xff]  ;;  %v2327_v21 = vadd.f32 %v11146_v42, %v2167_v51  ;;  %v2169_v42 = vadd.f32 %v11186_v60, %v11176_v48  ;;  %3334 = vmatpush.bf16.msra.mxu3 %v9957_v15 }
 0x255   : > { %v3514_v35 = vpack.c.bf16 %v11333_v26, %v11331_v16 }
 0x256   : > { %v11339_v56 = vadd.f32 %v11284_v17, %v2661_v10  ;;  %v2329_v48 = vadd.f32 %v11188_v36, %v2169_v42  ;;  %v9953_v42 = vld [vmem:[%s12792_s2 + $0xd8] sm:$0xff] }
 0x257   : > { %v2456_v2 = vpop.f32.mrf.mxu0  ;;  %v2616_v43 = vpop.f32.mrf.mxu1  ;;  %3600 = vmatmul.bf16.gmra.mxu1 %v3514_v35  ;;  %3211 = vmatpush.bf16.msra.mxu2 %v9948_v47 }
 0x258   : > { %v2693_v20 = vmax.f32 %v11339_v56, 0.0  ;;  %v2486_v58 = vadd.f32 %v2456_v2, %v2326_v46 }
 0x25a   : > { %v2832_v41 = vmax.f32 %v2691_v50, %v2693_v20  ;;  %v2646_v6 = vadd.f32 %v2616_v43, %v2486_v58 }
 0x25c   : > { %v2836_v9 = vmax.f32 %v2832_v41, %v12820_v3  ;;  %v2662_v7 = vmul.f32 %v11274_v14, %v2646_v6  ;;  %v9947_v3 = vld [vmem:[%s12792_s2 + $0xa8] sm:$0xff] }
 0x25d   : > { %3212 = vmatpush.bf16.msra.mxu2 %v9947_v3  ;;  %v9951_v3 = vld [vmem:[%s12792_s2 + $0xc8] sm:$0xff] }
 0x25e   : > { %v11350_v52 = vadd.f32 %v11284_v17, %v2662_v7  ;;  %v2839_v45 = vmul.f32 %v2836_v9, %v10814_v13  ;;  %v2940_v7 = vld [vmem:[#allocation3 + $0x31] sm:$0xff] }
 0x25f   : > { %v2459_v1 = vpop.f32.mrf.mxu0  ;;  %v2619_v0 = vpop.f32.mrf.mxu1 }
 0x260   : > { %v2694_v24 = vmax.f32 %v11350_v52, 0.0  ;;  %v2843_v10 = vrot.slane %v2839_v45, 7  ;;  %v2487_v46 = vadd.f32 %v2459_v1, %v2327_v21 }
 0x262   : > { %v2833_v37 = vmax.f32 %v2692_v57, %v2694_v24  ;;  %v2647_v50 = vadd.f32 %v2619_v0, %v2487_v46 }
 0x264   : > { %v2837_v29 = vmax.f32 %v2833_v37, %v2690_v63  ;;  %v2168_v63 = vadd.f32 %v11163_v34, %v11155_v19  ;;  %v9956_v19 = vld [vmem:[%s12792_s2 + $0xf0] sm:$0xff]  ;;  %v2663_v41 = vmul.f32 %v11274_v14, %v2647_v50 }
 0x265   : > { %3335 = vmatpush.bf16.msra.mxu3 %v9956_v19  ;;  %v2909_v37 = vld [vmem:[#allocation3 + $0x30] sm:$0xff] }
 0x266   : > { %v2838_v32 = vmax.f32 %v2836_v9, %v2837_v29  ;;  %v2840_v38 = vmul.f32 %v2837_v29, %v10814_v13  ;;  %v2328_v34 = vadd.f32 %v11165_v4, %v2168_v63  ;;  %v9955_v9 = vld [vmem:[%s12792_s2 + $0xe8] sm:$0xff]  ;;  %v2170_v4 = vadd.f32 %v11205_v33, %v11197_v5  ;;  %v9954_v5 = vld [vmem:[%s12792_s2 + $0xe0] sm:$0xff] }
 0x267   : > { %v2461_v30 = vpop.f32.mrf.mxu0  ;;  %v2621_v12 = vpop.f32.mrf.mxu1  ;;  %v2679_v1 = vadd.f32 %v11284_v17, %v2663_v41 }
 0x268   : > { %v2844_v35 = vrot.slane %v2840_v38, 7  ;;  %v2488_v6 = vadd.f32 %v2461_v30, %v2328_v34  ;;  %v2330_v38 = vadd.f32 %v11207_v28, %v2170_v4  ;;  %v9945_v28 = vld [vmem:[%s12792_s2 + $0x98] sm:$0xff] }
 0x269   : > { %3336 = vmatpush.bf16.msra.mxu3 %v9955_v9  ;;  %v2695_v46 = vmax.f32 %v2679_v1, 0.0  ;;  %v2171_v9 = vadd.f32 %v11222_v59, %v11218_v55  ;;  %v9950_v55 = vld [vmem:[%s12792_s2 + $0xc0] sm:$0xff] }
 0x26a   : > { %v2845_v2 = vsel %vm2737_vm2, %v2843_v10, %v2844_v35  ;;  %v2648_v0 = vadd.f32 %v2621_v12, %v2488_v6 }
 0x26b   : > { %v11371_v43 = vmax.f32 %v2838_v32, %v2845_v2  ;;  %v9946_v32 = vld [vmem:[%s12792_s2 + $0xa0] sm:$0xff]  ;;  %v2331_v59 = vadd.f32 %v11224_v18, %v2171_v9 }
 0x26c   : > { %v2664_v31 = vmul.f32 %v11274_v14, %v2648_v0  ;;  %3213 = vmatpush.bf16.msra.mxu2 %v9946_v32  ;;  %v9942_v0 = vld [vmem:[%s12792_s2 + $0x80] sm:$0xff] }
 0x26d   : > { %2848 = vst [vmem:[#allocation3 + $0x3d] sm:$0xff] %v11371_v43  ;;  %3337 = vmatpush.bf16.msra.mxu3 %v9954_v5  ;;  %v12821_v32 = vld [vmem:[#allocation13_spill] sm:$0xff]  ;;  %v12822_v18 = vld [vmem:[#allocation14_spill] sm:$0xff] }
 0x26e   : > { %v2680_v47 = vadd.f32 %v11284_v17, %v2664_v31  ;;  %v2173_v5 = vadd.f32 %v12822_v18, %v12821_v32 }
 0x26f   : > { %v2464_v60 = vpop.f32.mrf.mxu0  ;;  %v2624_v58 = vpop.f32.mrf.mxu1 }
 0x270   : > { %v2489_v8 = vadd.f32 %v2464_v60, %v2329_v48  ;;  %3214 = vmatpush.bf16.msra.mxu2 %v9945_v28  ;;  %v9944_v48 = vld [vmem:[%s12792_s2 + $0x90] sm:$0xff] }
 0x271   : > { %3338 = vmatpush.bf16.msra.mxu3 %v9953_v42  ;;  %v9952_v60 = vld [vmem:[%s12792_s2 + $0xd0] sm:$0xff] }
 0x272   : > { %v2649_v36 = vadd.f32 %v2624_v58, %v2489_v8  ;;  %v2696_v8 = vmax.f32 %v2680_v47, 0.0  ;;  %v12825_v28 = vld [vmem:[#allocation12_spill] sm:$0xff] }
 0x274   : > { %v2665_v57 = vmul.f32 %v11274_v14, %v2649_v36  ;;  %v2941_v51 = vld [vmem:[#allocation3 + $0x39] sm:$0xff]  ;;  %3215 = vmatpush.bf16.msra.mxu2 %v9944_v48  ;;  %v1848_v36 = vadd.f32 %v11226_v61, %v10997_v44  ;;  %v9995_v48 = vld [vmem:[%s12792_s2 + $0x228] sm:$0xff] }
 0x275   : > { %v2910_v45 = vld [vmem:[#allocation3 + $0x38] sm:$0xff]  ;;  %v2947_v29 = vpack.c.bf16 %v2941_v51, %v2940_v7  ;;  %3339 = vmatpush.bf16.msra.mxu3 %v9952_v60 }
 0x276   : > { %v2916_v21 = vpack.c.bf16 %v2910_v45, %v2909_v37  ;;  %v11399_v33 = vld [vmem:[#allocation3 + $0x3c] sm:$0xff]  ;;  %v11403_v30 = vadd.f32 %v11284_v17, %v2665_v57  ;;  %v2012_v52 = vadd.f32 %v11228_v49, %v1848_v36 }
 0x277   : > { %v3638_v12 = vpack.c.bf16 %v11399_v33, %v11333_v26  ;;  %v2466_v10 = vpop.f32.mrf.mxu0  ;;  %v2626_v35 = vpop.f32.mrf.mxu1  ;;  %3037 = vmatmul.bf16.gmra.mxu2 %v2947_v29  ;;  %v9997_v29 = vld [vmem:[%s12792_s2 + $0x238] sm:$0xff] }
 0x278   : > { %3119 = vmatmul.bf16.gmra.mxu3 %v2916_v21  ;;  %v2697_v15 = vmax.f32 %v11403_v30, 0.0  ;;  %v2490_v63 = vadd.f32 %v2466_v10, %v2330_v38  ;;  %v2172_v21 = vadd.f32 %v11230_v62, %v2012_v52  ;;  %v12823_v10 = vld [vmem:[#allocation11_spill] sm:$0xff]  ;;  %3954 = vmatpush.bf16.msrb.mxu0 %v9997_v29  ;;  %v3384_v9 = vld [vmem:[#allocation3 + $0x3b] sm:$0xff] }
 0x279   : > { %3340 = vmatpush.bf16.msra.mxu3 %v9951_v3  ;;  %v9990_v30 = vld [vmem:[%s12792_s2 + $0x200] sm:$0xff] }
 0x27a   : > { %v2853_v2 = vmax.f32 %v2695_v46, %v2697_v15  ;;  %v2650_v50 = vadd.f32 %v2626_v35, %v2490_v63  ;;  %v12824_v35 = vld [vmem:[#allocation16_spill] sm:$0xff]  ;;  %v2332_v42 = vadd.f32 %v12825_v28, %v2172_v21 }
 0x27b   : > { %v1853_v46 = vadd.f32 %v12824_v35, %v12823_v10  ;;  %v9996_v63 = vld [vmem:[%s12792_s2 + $0x230] sm:$0xff]  ;;  %v9993_v35 = vld [vmem:[%s12792_s2 + $0x218] sm:$0xff] }
 0x27c   : > { %v2857_v19 = vmax.f32 %v2853_v2, %v2693_v20  ;;  %v2666_v34 = vmul.f32 %v11274_v14, %v2650_v50  ;;  %v9943_v20 = vld [vmem:[%s12792_s2 + $0x88] sm:$0xff]  ;;  %v12827_v50 = vld [vmem:[#allocation17_spill] sm:$0xff]  ;;  %3955 = vmatpush.bf16.msrb.mxu0 %v9996_v63  ;;  %v9992_v63 = vld [vmem:[%s12792_s2 + $0x210] sm:$0xff] }
 0x27d   : > { %3216 = vmatpush.bf16.msra.mxu2 %v9943_v20  ;;  %3341 = vmatpush.bf16.msra.mxu3 %v9950_v55  ;;  %v12826_v2 = vld [vmem:[#allocation15_spill] sm:$0xff]  ;;  %v2014_v47 = vadd.f32 %v12827_v50, %v1853_v46 }
 0x27e   : > { %v11428_v58 = vadd.f32 %v11284_v17, %v2666_v34  ;;  %v2860_v7 = vmul.f32 %v2857_v19, %v10814_v13  ;;  %v2333_v62 = vadd.f32 %v12826_v2, %v2173_v5  ;;  %v9991_v50 = vld [vmem:[%s12792_s2 + $0x208] sm:$0xff] }
 0x27f   : > { %v2469_v41 = vpop.f32.mrf.mxu0  ;;  %v2629_v6 = vpop.f32.mrf.mxu1 }
 0x280   : > { %v2698_v56 = vmax.f32 %v11428_v58, 0.0  ;;  %v2491_v45 = vadd.f32 %v2469_v41, %v2331_v59  ;;  %3956 = vmatpush.bf16.msrb.mxu0 %v9995_v48  ;;  %v3130_v48 = vld [vmem:[#allocation3 + $0x2] sm:$0xff] }
 0x281   : > { %3217 = vmatpush.bf16.msra.mxu2 %v9942_v0 }
 0x282   : > { %v2854_v4 = vmax.f32 %v2696_v8, %v2698_v56  ;;  %v2651_v31 = vadd.f32 %v2629_v6, %v2491_v45  ;;  %v12828_v8 = vld [vmem:[#allocation18_spill] sm:$0xff] }
 0x283   : > { %v2174_v20 = vadd.f32 %v12828_v8, %v2014_v47 }
 0x284   : > { %v2858_v1 = vmax.f32 %v2854_v4, %v2694_v24  ;;  %v2864_v24 = vrot.slane %v2860_v7, 7  ;;  %v2667_v60 = vmul.f32 %v11274_v14, %v2651_v31  ;;  %v9994_v4 = vld [vmem:[%s12792_s2 + $0x220] sm:$0xff] }
 0x285   : > { %3957 = vmatpush.bf16.msrb.mxu0 %v9994_v4 }
 0x286   : > { %v2859_v57 = vmax.f32 %v2857_v19, %v2858_v1  ;;  %v2861_v44 = vmul.f32 %v2858_v1, %v10814_v13  ;;  %v2683_v36 = vadd.f32 %v11284_v17, %v2667_v60  ;;  %v3131_v60 = vld [vmem:[#allocation3 + $0xa] sm:$0xff] }
 0x287   : > { %v2471_v61 = vpop.f32.mrf.mxu0  ;;  %v2631_v51 = vpop.f32.mrf.mxu1 }
 0x288   : > { %v2865_v37 = vrot.slane %v2861_v44, 7  ;;  %v2492_v41 = vadd.f32 %v2471_v61, %v2332_v42  ;;  %v2699_v18 = vmax.f32 %v2683_v36, 0.0 }
 0x289   : > { %3958 = vmatpush.bf16.msrb.mxu0 %v9993_v35  ;;  %v3874_v35 = vld [vmem:[#allocation3 + $0x16] sm:$0xff] }
 0x28a   : > { %v2866_v38 = vsel %vm2737_vm2, %v2864_v24, %v2865_v37  ;;  %v2652_v7 = vadd.f32 %v2631_v51, %v2492_v41  ;;  %v3255_v41 = vld [vmem:[#allocation3 + $0x12] sm:$0xff] }
 0x28b   : > { %v2868_v49 = vmax.f32 %v2859_v57, %v2866_v38  ;;  %v12829_v57 = vld [vmem:[#allocation19_spill] sm:$0xff] }
 0x28c   : > { %v2334_v44 = vadd.f32 %v12829_v57, %v2174_v20  ;;  %v2668_v5 = vmul.f32 %v11274_v14, %v2652_v7  ;;  %v3264_v20 = vpack.c.bf16 %v3255_v41, %v3131_v60  ;;  %v3133_v7 = vld [vmem:[#allocation3 + $0x1a] sm:$0xff] }
 0x28d   : > { %2869 = vst [vmem:[#allocation3 + $0x47] sm:$0xff] %v2868_v49  ;;  %3959 = vmatpush.bf16.msrb.mxu0 %v9992_v63  ;;  %v9977_v63 = vld [vmem:[%s12792_s2 + $0x198] sm:$0xff] }
 0x28e   : > { %v2684_v28 = vadd.f32 %v11284_v17, %v2668_v5  ;;  %v9978_v5 = vld [vmem:[%s12792_s2 + $0x1a0] sm:$0xff] }
 0x28f   : > { %v2474_v19 = vpop.f32.mrf.mxu0  ;;  %v2634_v34 = vpop.f32.mrf.mxu1 }
 0x290   : > { %v2493_v6 = vadd.f32 %v2474_v19, %v2333_v62  ;;  %v2700_v47 = vmax.f32 %v2684_v28, 0.0  ;;  %v9985_v28 = vld [vmem:[%s12792_s2 + $0x1d8] sm:$0xff] }
 0x291   : > { %3960 = vmatpush.bf16.msrb.mxu0 %v9991_v50  ;;  %v9975_v50 = vld [vmem:[%s12792_s2 + $0x188] sm:$0xff] }
 0x292   : > { %v2653_v3 = vadd.f32 %v2634_v34, %v2493_v6 }
 0x294   : > { %v2669_v1 = vmul.f32 %v11274_v14, %v2653_v3  ;;  %v2942_v0 = vld [vmem:[#allocation3 + $0x41] sm:$0xff]  ;;  %v2943_v55 = vld [vmem:[#allocation3 + $0x49] sm:$0xff] }
 0x295   : > { %v2911_v59 = vld [vmem:[#allocation3 + $0x40] sm:$0xff]  ;;  %v2948_v61 = vpack.c.bf16 %v2943_v55, %v2942_v0  ;;  %v2912_v52 = vld [vmem:[#allocation3 + $0x48] sm:$0xff]  ;;  %3961 = vmatpush.bf16.msrb.mxu0 %v9990_v30 }
 0x296   : > { %v3385_v24 = vld [vmem:[#allocation3 + $0x43] sm:$0xff]  ;;  %v2685_v45 = vadd.f32 %v11284_v17, %v2669_v1  ;;  %v2917_v29 = vpack.c.bf16 %v2912_v52, %v2911_v59 }
 0x297   : > { %v11481_v37 = vld [vmem:[#allocation3 + $0x44] sm:$0xff]  ;;  %v3391_v21 = vpack.c.bf16 %v3385_v24, %v3384_v9  ;;  %v2476_v51 = vpop.f32.mrf.mxu0  ;;  %3042 = vmatmul.bf16.gmra.mxu2 %v2948_v61  ;;  %v2636_v46 = vpop.f32.mrf.mxu1 }
 0x298   : > { %v3515_v32 = vpack.c.bf16 %v11481_v37, %v11399_v33  ;;  %v2701_v38 = vmax.f32 %v2685_v45, 0.0  ;;  %v2494_v10 = vadd.f32 %v2476_v51, %v2334_v44  ;;  %3124 = vmatmul.bf16.gmra.mxu3 %v2917_v29  ;;  %v3257_v1 = vld [vmem:[#allocation3 + $0x22] sm:$0xff]  ;;  %v9989_v44 = vld [vmem:[%s12792_s2 + $0x1f8] sm:$0xff]  ;;  %v9980_v45 = vld [vmem:[%s12792_s2 + $0x1b0] sm:$0xff] }
 0x299   : > { %3481 = vmatmul.bf16.gmra.mxu0 %v3391_v21  ;;  %v3265_v52 = vpack.c.bf16 %v3257_v1, %v3133_v7  ;;  %3830 = vmatpush.bf16.msrb.mxu3 %v9989_v44  ;;  %v9988_v29 = vld [vmem:[%s12792_s2 + $0x1f0] sm:$0xff]  ;;  %v9979_v21 = vld [vmem:[%s12792_s2 + $0x1a8] sm:$0xff]  ;;  %v3875_v51 = vld [vmem:[#allocation3 + $0x1e] sm:$0xff] }
 0x29a   : > { %3605 = vmatmul.bf16.gmra.mxu1 %v3515_v32  ;;  %v2874_v49 = vmax.f32 %v2699_v18, %v2701_v38  ;;  %v2654_v31 = vadd.f32 %v2636_v46, %v2494_v10  ;;  %v9987_v32 = vld [vmem:[%s12792_s2 + $0x1e8] sm:$0xff]  ;;  %v9986_v38 = vld [vmem:[%s12792_s2 + $0x1e0] sm:$0xff]  ;;  %v3259_v10 = vld [vmem:[#allocation3 + $0x32] sm:$0xff] }
 0x29b   : > { %v3135_v18 = vld [vmem:[#allocation3 + $0x2a] sm:$0xff]  ;;  %v3751_v44 = vld [vmem:[#allocation3 + $0x1d] sm:$0xff] }
 0x29c   : > { %v2878_v42 = vmax.f32 %v2874_v49, %v2697_v15  ;;  %v2670_v2 = vmul.f32 %v11274_v14, %v2654_v31  ;;  %v3140_v15 = vpack.c.bf16 %v3131_v60, %v3130_v48  ;;  %v3142_v46 = vpack.c.bf16 %v3135_v18, %v3257_v1  ;;  %v9974_v48 = vld [vmem:[%s12792_s2 + $0x180] sm:$0xff] }
 0x29d   : > { %3831 = vmatpush.bf16.msrb.mxu3 %v9988_v29  ;;  %v3884_v49 = vpack.c.bf16 %v3875_v51, %v3874_v35  ;;  %v3266_v31 = vpack.c.bf16 %v3259_v10, %v3135_v18  ;;  %v9982_v60 = vld [vmem:[%s12792_s2 + $0x1c0] sm:$0xff]  ;;  %v3753_v35 = vld [vmem:[#allocation3 + $0x2d] sm:$0xff] }
 0x29e   : > { %v2686_v62 = vadd.f32 %v11284_v17, %v2670_v2  ;;  %v2881_v14 = vmul.f32 %v2878_v42, %v10814_v13  ;;  %v9984_v2 = vld [vmem:[%s12792_s2 + $0x1d0] sm:$0xff]  ;;  %v3876_v30 = vld [vmem:[#allocation3 + $0x26] sm:$0xff] }
 0x2a0   : > { %v2702_v19 = vmax.f32 %v2686_v62, 0.0  ;;  %v2885_v3 = vrot.slane %v2881_v14, 7  ;;  %v2892_v62 = vld [vmem:[%s12797_s7 + $0x8] sm:$0xff] }
 0x2a1   : > { %3832 = vmatpush.bf16.msrb.mxu3 %v9987_v32  ;;  %4037 = vperm.xlu1 %10275, %v2892_v62   ;;  %v3754_v62 = vld [vmem:[#allocation3 + $0x35] sm:$0xff] }
 0x2a2   : > { %v2875_v34 = vmax.f32 %v2700_v47, %v2702_v19  ;;  %v9983_v47 = vld [vmem:[%s12792_s2 + $0x1c8] sm:$0xff] }
 0x2a3   : > { %v3877_v19 = vld [vmem:[#allocation3 + $0x2e] sm:$0xff] }
 0x2a4   : > { %v2879_v17 = vmax.f32 %v2875_v34, %v2698_v56  ;;  %v3141_v56 = vpack.c.bf16 %v3133_v7, %v3255_v41  ;;  %v3137_v34 = vld [vmem:[#allocation3 + $0x3a] sm:$0xff]  ;;  %v3261_v41 = vld [vmem:[#allocation3 + $0x42] sm:$0xff] }
 0x2a5   : > { %3833 = vmatpush.bf16.msrb.mxu3 %v9986_v38  ;;  %v3143_v14 = vpack.c.bf16 %v3137_v34, %v3259_v10  ;;  %v3883_v10 = vld [vmem:[#allocation3 + $0x5e] sm:$0xff] }
 0x2a6   : > { %v2880_v6 = vmax.f32 %v2878_v42, %v2879_v17  ;;  %v2882_v8 = vmul.f32 %v2879_v17, %v10814_v13  ;;  %v9981_v13 = vld [vmem:[%s12792_s2 + $0x1b8] sm:$0xff]  ;;  %v9976_v42 = vld [vmem:[%s12792_s2 + $0x190] sm:$0xff]  ;;  %v3885_v17 = vpack.c.bf16 %v3877_v19, %v3876_v30 }
 0x2a7   : > { %3218 = vmatmul.bf16.vlgmr.msra.gmra.mxu2 %v3140_v15  ;;  %v3267_v15 = vpack.c.bf16 %v3261_v41, %v3137_v34 }
 0x2a8   : > { %v2886_v9 = vrot.slane %v2882_v8, 7  ;;  %3342 = vmatmul.bf16.vlgmr.msra.gmra.mxu3 %v3264_v20  ;;  %3706 = vmatpush.bf16.msrb.mxu2 %v9981_v13  ;;  %v3878_v20 = vld [vmem:[#allocation3 + $0x36] sm:$0xff] }
 0x2a9   : > { %3834 = vmatpush.bf16.msrb.mxu3 %v9985_v28  ;;  %v2895_v28 = vld [vmem:[%s12797_s7 + $0x20] sm:$0xff] }
 0x2aa   : > { %v2887_v4 = vsel %vm2737_vm2, %v2885_v3, %v2886_v9  ;;  %v3879_v3 = vld [vmem:[#allocation3 + $0x3e] sm:$0xff] }
 0x2ab   : > { %v2889_v36 = vmax.f32 %v2880_v6, %v2887_v4  ;;  %v2893_v6 = vld [vmem:[%s12797_s7 + $0x10] sm:$0xff]  ;;  %v3886_v7 = vpack.c.bf16 %v3879_v3, %v3878_v20  ;;  %v3635_v3 = vld [vmem:[#allocation3 + $0x5c] sm:$0xff] }
 0x2ac   : > { %3707 = vmatpush.bf16.msrb.mxu2 %v9980_v45  ;;  %4042 = vperm.xlu1 %10275, %v2893_v6   ;;  %v2897_v4 = vld [vmem:[%s12797_s7 + $0x30] sm:$0xff] }
 0x2ad   : > { %2890 = vst [vmem:[#allocation3 + $0x51] sm:$0xff] %v2889_v36  ;;  %3835 = vmatpush.bf16.msrb.mxu3 %v9984_v2 }
 0x2b0   : > { %3708 = vmatpush.bf16.msrb.mxu2 %v9979_v21  ;;  %v12830_v21 = vpack.c.bf16 %v11027_v27, %v11025_v25  ;;  %v3752_v25 = vld [vmem:[#allocation3 + $0x25] sm:$0xff] }
 0x2b1   : > { %3836 = vmatpush.bf16.msrb.mxu3 %v9983_v47 }
 0x2b4   : > { %v3386_v0 = vld [vmem:[#allocation3 + $0x4b] sm:$0xff]  ;;  %v3387_v55 = vld [vmem:[#allocation3 + $0x53] sm:$0xff]  ;;  %3709 = vmatpush.bf16.msrb.mxu2 %v9978_v5  ;;  %4062 = vperm.xlu1 %10275, %v2897_v4  }
 0x2b5   : > { %v11509_v58 = vld [vmem:[#allocation3 + $0x4c] sm:$0xff]  ;;  %v3392_v59 = vpack.c.bf16 %v3387_v55, %v3386_v0  ;;  %v11511_v57 = vld [vmem:[#allocation3 + $0x54] sm:$0xff]  ;;  %3837 = vmatpush.bf16.msrb.mxu3 %v9982_v60 }
 0x2b6   : > { %v3639_v61 = vpack.c.bf16 %v11509_v58, %v11481_v37  ;;  %v3516_v24 = vpack.c.bf16 %v11511_v57, %v11509_v58  ;;  %v3139_v8 = vld [vmem:[#allocation3 + $0x4a] sm:$0xff]  ;;  %v3263_v9 = vld [vmem:[#allocation3 + $0x52] sm:$0xff]  ;;  %v3640_v37 = vpack.c.bf16 %v3635_v3, %v11511_v57 }
 0x2b7   : > { %3223 = vmatmul.bf16.gmra.mxu2 %v3141_v56  ;;  %3486 = vmatmul.bf16.gmra.mxu0 %v3392_v59  ;;  %v3144_v36 = vpack.c.bf16 %v3139_v8, %v3261_v41  ;;  %v3268_v1 = vpack.c.bf16 %v3263_v9, %v3139_v8  ;;  %v2900_v0 = vld [vmem:[%s12797_s7 + $0x48] sm:$0xff]  ;;  %v5475_v55 = vld [vmem:[%s12798_s8 + $0x10] sm:$0xff]  ;;  %v11580_v56 = vpop.f32.mrf.mxu2  ;;  %v11582_v59 = vpop.f32.mrf.mxu3 }
 0x2b8   : > { %3347 = vmatmul.bf16.gmra.mxu3 %v3265_v52  ;;  %3610 = vmatmul.bf16.gmra.mxu1 %v3516_v24  ;;  %v3881_v13 = vld [vmem:[#allocation3 + $0x4e] sm:$0xff]  ;;  %v3880_v52 = vld [vmem:[#allocation3 + $0x46] sm:$0xff]  ;;  %v7251_v32 = vmul.f32 0.0625, %v5475_v55  ;;  %v3882_v38 = vld [vmem:[#allocation3 + $0x56] sm:$0xff] }
 0x2b9   : > { %3710 = vmatpush.bf16.msrb.mxu2 %v9977_v63  ;;  %v3750_v24 = vld [vmem:[#allocation3 + $0x15] sm:$0xff]  ;;  %v3887_v45 = vpack.c.bf16 %v3881_v13, %v3880_v52  ;;  %v3888_v27 = vpack.c.bf16 %v3883_v10, %v3882_v38  ;;  %v11594_v63 = vpop.f32.mrf.mxu0  ;;  %v3756_v41 = vld [vmem:[#allocation3 + $0x45] sm:$0xff] }
 0x2ba   : > { %v3760_v29 = vpack.c.bf16 %v3751_v44, %v3750_v24  ;;  %v3758_v4 = vld [vmem:[#allocation3 + $0x55] sm:$0xff] }
 0x2bb   : > { %v10012_v38 = vld [vmem:[%s12792_s2 + $0x2b0] sm:$0xff] }
 0x2bc   : > { %4077 = vperm.xlu1 %10275, %v2900_v0  }
 0x2bd   : > { %3711 = vmatpush.bf16.msrb.mxu2 %v9976_v42 }
 0x2c1   : > { %3712 = vmatpush.bf16.msrb.mxu2 %v9975_v50  ;;  %v11610_v50 = vpop.f32.mrf.mxu0 }
 0x2c4   : > { %6314 = vperm.xlu1 %10275, %v5475_v55  }
 0x2c5   : > { %3713 = vmatpush.bf16.msrb.mxu2 %v9974_v48 }
 0x2c7   : > { %3228 = vmatmul.bf16.gmra.mxu2 %v3142_v46  ;;  %3962 = vmatmul.bf16.vlgmr.msrb.gmra.mxu0 %v3884_v49  ;;  %v2894_v46 = vld [vmem:[%s12797_s7 + $0x18] sm:$0xff]  ;;  %v3637_v49 = vpack.c.bf16 %v11331_v16, %v11263_v22  ;;  %v3762_v22 = vpack.c.bf16 %v11371_v43, %v3754_v62  ;;  %v5473_v43 = vld [vmem:[%s12798_s8] sm:$0xff]  ;;  %v10003_v62 = vld [vmem:[%s12792_s2 + $0x268] sm:$0xff] }
 0x2c8   : > { %3352 = vmatmul.bf16.gmra.mxu3 %v3266_v31  ;;  %4047 = vperm.xlu2 %10276, %v2894_v46   ;;  %v3761_v31 = vpack.c.bf16 %v3753_v35, %v3752_v25  ;;  %v2898_v16 = vld [vmem:[%s12797_s7 + $0x38] sm:$0xff]  ;;  %v7249_v60 = vmul.f32 0.0625, %v5473_v43  ;;  %v10004_v35 = vld [vmem:[%s12792_s2 + $0x270] sm:$0xff] }
 0x2c9   : > { %v11617_v48 = vpop.f32.mrf.mxu0  ;;  %v10020_v46 = vld [vmem:[%s12792_s2 + $0x2f0] sm:$0xff] }
 0x2cc   : > { %7264 = vperm.xlu1 %10275, %v7251_v32  }
 0x2d0   : > { %4052 = vperm.xlu2 %10276, %v2895_v28   ;;  %v10011_v28 = vld [vmem:[%s12792_s2 + $0x2a8] sm:$0xff] }
 0x2d1   : > { %v11627_v6 = vpop.f32.mrf.mxu0 }
 0x2d7   : > { %3233 = vmatmul.bf16.gmra.mxu2 %v3143_v14  ;;  %3967 = vmatmul.bf16.gmra.mxu0 %v3885_v17 }
 0x2d8   : > { %3357 = vmatmul.bf16.gmra.mxu3 %v3267_v15  ;;  %4067 = vperm.xlu2 %10276, %v2898_v16  }
 0x2e0   : > { %6304 = vperm.xlu2 %10276, %v5473_v43   ;;  %v10002_v43 = vld [vmem:[%s12792_s2 + $0x260] sm:$0xff] }
 0x2e7   : > { %3238 = vmatmul.bf16.gmra.mxu2 %v3144_v36  ;;  %3972 = vmatmul.bf16.gmra.mxu0 %v3886_v7  ;;  %v3759_v36 = vld [vmem:[#allocation3 + $0x5d] sm:$0xff]  ;;  %v11635_v7 = vpop.f32.mrf.mxu0 }
 0x2e8   : > { %3362 = vmatmul.bf16.gmra.mxu3 %v3268_v1  ;;  %7254 = vperm.xlu2 %10276, %v7249_v60   ;;  %v3764_v58 = vpack.c.bf16 %v3759_v36, %v3758_v4  ;;  %v10008_v4 = vld [vmem:[%s12792_s2 + $0x290] sm:$0xff] }
 0x2e9   : > { %v10000_v36 = vld [vmem:[%s12792_s2 + $0x250] sm:$0xff] }
 0x2ef   : > { %v11641_v55 = vpop.f32.mrf.mxu0 }
 0x2f7   : > { %3714 = vmatmul.bf16.vlgmr.msrb.gmra.mxu2 %v12830_v21  ;;  %3977 = vmatmul.bf16.gmra.mxu0 %v3887_v45 }
 0x2f8   : > { %3838 = vmatmul.bf16.vlgmr.msrb.gmra.mxu3 %v3760_v29 }
 0x2fa   : > { %v3038_v51 = vpop.f32.mrf.mxu2 }
 0x2fb   : > { %v3120_v18 = vpop.f32.mrf.mxu3 }
 0x2fc   : > { %v11587_v5 = vadd.f32 %v3120_v18, %v3038_v51  ;;  %v10005_v18 = vld [vmem:[%s12792_s2 + $0x278] sm:$0xff] }
 0x2fd   : > { %4296 = vmatpush.bf16.msra.mxu2 %v10005_v18 }
 0x301   : > { %4297 = vmatpush.bf16.msra.mxu2 %v10004_v35  ;;  %v10006_v35 = vld [vmem:[%s12792_s2 + $0x280] sm:$0xff] }
 0x302   : > { %v11599_v42 = vpop.f32.mrf.mxu2 }
 0x303   : > { %v11601_v2 = vpop.f32.mrf.mxu3 }
 0x305   : > { %4298 = vmatpush.bf16.msra.mxu2 %v10003_v62 }
 0x307   : > { %3719 = vmatmul.bf16.gmra.mxu2 %v3637_v49  ;;  %3982 = vmatmul.bf16.gmra.mxu0 %v3888_v27 }
 0x308   : > { %3843 = vmatmul.bf16.gmra.mxu3 %v3761_v31 }
 0x309   : > { %4299 = vmatpush.bf16.msra.mxu2 %v10002_v43 }
 0x316   : > { %v11647_v52 = vpop.f32.mrf.mxu0 }
 0x317   : > { %3724 = vmatmul.bf16.gmra.mxu2 %v3638_v12  ;;  %v3757_v12 = vld [vmem:[#allocation3 + $0x4d] sm:$0xff] }
 0x318   : > { %3848 = vmatmul.bf16.gmra.mxu3 %v3762_v22  ;;  %v3763_v30 = vpack.c.bf16 %v3757_v12, %v3756_v41  ;;  %v10019_v22 = vld [vmem:[%s12792_s2 + $0x2e8] sm:$0xff]  ;;  %v10018_v12 = vld [vmem:[%s12792_s2 + $0x2e0] sm:$0xff]  ;;  %v10028_v41 = vld [vmem:[%s12792_s2 + $0x330] sm:$0xff] }
 0x31a   : > { %v3043_v47 = vpop.f32.mrf.mxu2 }
 0x31b   : > { %v3125_v19 = vpop.f32.mrf.mxu3 }
 0x31c   : > { %v11612_v34 = vadd.f32 %v3125_v19, %v3043_v47  ;;  %v10010_v19 = vld [vmem:[%s12792_s2 + $0x2a0] sm:$0xff] }
 0x31e   : > { %v11655_v21 = vpop.f32.mrf.mxu0 }
 0x322   : > { %v11619_v26 = vpop.f32.mrf.mxu2 }
 0x323   : > { %v11621_v33 = vpop.f32.mrf.mxu3 }
 0x327   : > { %3729 = vmatmul.bf16.gmra.mxu2 %v3639_v61 }
 0x328   : > { %3853 = vmatmul.bf16.gmra.mxu3 %v3763_v30  ;;  %v10009_v30 = vld [vmem:[%s12792_s2 + $0x298] sm:$0xff] }
 0x32a   : > { %v3219_v14 = vpop.f32.mrf.mxu2 }
 0x32b   : > { %v3244_v17 = vadd.f32 %v3219_v14, %v11257_v53  ;;  %v3343_v15 = vpop.f32.mrf.mxu3  ;;  %v10001_v14 = vld [vmem:[%s12792_s2 + $0x258] sm:$0xff] }
 0x32c   : > { %4300 = vmatpush.bf16.msra.mxu2 %v10001_v14 }
 0x32d   : > { %v11629_v8 = vadd.f32 %v3343_v15, %v3244_v17  ;;  %v10017_v17 = vld [vmem:[%s12792_s2 + $0x2d8] sm:$0xff]  ;;  %v10027_v15 = vld [vmem:[%s12792_s2 + $0x328] sm:$0xff] }
 0x32f   : > { %v3492_v62 = vadd.f32 %v11594_v63, %v11629_v8 }
 0x330   : > { %4301 = vmatpush.bf16.msra.mxu2 %v10000_v36 }
 0x332   : > { %v11631_v20 = vpop.f32.mrf.mxu2 }
 0x333   : > { %v11633_v9 = vpop.f32.mrf.mxu3 }
 0x334   : > { %v3487_v10 = vpop.f32.mrf.mxu0 }
 0x337   : > { %3734 = vmatmul.bf16.gmra.mxu2 %v3640_v37  ;;  %v10016_v37 = vld [vmem:[%s12792_s2 + $0x2d0] sm:$0xff] }
 0x338   : > { %3858 = vmatmul.bf16.gmra.mxu3 %v3764_v58  ;;  %v3591_v58 = vpop.f32.mrf.mxu1 }
 0x33a   : > { %v3224_v53 = vpop.f32.mrf.mxu2 }
 0x33b   : > { %v3246_v61 = vadd.f32 %v3224_v53, %v11292_v39  ;;  %v3348_v1 = vpop.f32.mrf.mxu3  ;;  %v10013_v39 = vld [vmem:[%s12792_s2 + $0x2b8] sm:$0xff] }
 0x33c   : > { %4214 = vmatpush.bf16.msrb.mxu1 %v10013_v39  ;;  %v11691_v16 = vpop.f32.mrf.mxu0  ;;  %v9999_v39 = vld [vmem:[%s12792_s2 + $0x248] sm:$0xff] }
 0x33d   : > { %v11639_v0 = vadd.f32 %v3348_v1, %v3246_v61  ;;  %v10026_v1 = vld [vmem:[%s12792_s2 + $0x320] sm:$0xff]  ;;  %4302 = vmatpush.bf16.msra.mxu2 %v9999_v39  ;;  %v11794_v39 = vpop.permute.xlu0 %4032 }
 0x340   : > { %4215 = vmatpush.bf16.msrb.mxu1 %v10012_v38 }
 0x342   : > { %v11643_v13 = vpop.f32.mrf.mxu2 }
 0x343   : > { %v11645_v44 = vpop.f32.mrf.mxu3 }
 0x344   : > { %4216 = vmatpush.bf16.msrb.mxu1 %v10011_v28  ;;  %v3593_v28 = vpop.f32.mrf.mxu1 }
 0x348   : > { %4217 = vmatpush.bf16.msrb.mxu1 %v10010_v19  ;;  %v3616_v19 = vadd.f32 %v3591_v58, %v3492_v62  ;;  %v11804_v62 = vpop.permute.xlu1 %4037 }
 0x34a   : > { %v3229_v24 = vpop.f32.mrf.mxu2 }
 0x34b   : > { %v3248_v57 = vadd.f32 %v3229_v24, %v11317_v23  ;;  %v3353_v45 = vpop.f32.mrf.mxu3  ;;  %v10021_v23 = vld [vmem:[%s12792_s2 + $0x2f8] sm:$0xff]  ;;  %v3963_v24 = vpop.f32.mrf.mxu0 }
 0x34c   : > { %4410 = vmatpush.bf16.msra.mxu3 %v10021_v23  ;;  %4218 = vmatpush.bf16.msrb.mxu1 %v10009_v30  ;;  %v10025_v23 = vld [vmem:[%s12792_s2 + $0x318] sm:$0xff]  ;;  %v11780_v30 = vld [vmem:[%s12795_s5 + $0x1] ss:$0 sm:$0xff]  ;;  %v3596_v14 = vpop.f32.mrf.mxu1 }
 0x34d   : > { %v11650_v29 = vadd.f32 %v3353_v45, %v3248_v57  ;;  %v10007_v45 = vld [vmem:[%s12792_s2 + $0x288] sm:$0xff] }
 0x350   : > { %4411 = vmatpush.bf16.msra.mxu3 %v10020_v46  ;;  %4219 = vmatpush.bf16.msrb.mxu1 %v10008_v4  ;;  %v9998_v46 = vld [vmem:[%s12792_s2 + $0x240] sm:$0xff] }
 0x351   : > { %4303 = vmatpush.bf16.msra.mxu2 %v9998_v46 }
 0x352   : > { %v11657_v32 = vpop.f32.mrf.mxu2 }
 0x353   : > { %v11659_v51 = vpop.f32.mrf.mxu3 }
 0x354   : > { %4412 = vmatpush.bf16.msra.mxu3 %v10019_v22  ;;  %4220 = vmatpush.bf16.msrb.mxu1 %v10007_v45 }
 0x358   : > { %4413 = vmatpush.bf16.msra.mxu3 %v10018_v12  ;;  %4221 = vmatpush.bf16.msrb.mxu1 %v10006_v35  ;;  %v10022_v12 = vld [vmem:[%s12792_s2 + $0x300] sm:$0xff]  ;;  %v3598_v35 = vpop.f32.mrf.mxu1 }
 0x35a   : > { %v3234_v49 = vpop.f32.mrf.mxu2 }
 0x35b   : > { %v3250_v25 = vadd.f32 %v3234_v49, %v11587_v5  ;;  %v3358_v27 = vpop.f32.mrf.mxu3  ;;  %v10029_v5 = vld [vmem:[%s12792_s2 + $0x338] sm:$0xff]  ;;  %v3108_v49 = vadd.f32 %v11269_v40, %v11267_v54  ;;  %v10023_v54 = vld [vmem:[%s12792_s2 + $0x308] sm:$0xff] }
 0x35c   : > { %4534 = vmatpush.bf16.msra.mxu0 %v10029_v5  ;;  %4414 = vmatpush.bf16.msra.mxu3 %v10017_v17  ;;  %v3965_v5 = vpop.f32.mrf.mxu0  ;;  %v11785_v17 = vld [vmem:[%s12796_s6 + $0x1] ss:$0 sm:$0xff] }
 0x35d   : > { %v11677_v31 = vadd.f32 %v3358_v27, %v3250_v25  ;;  %v10024_v27 = vld [vmem:[%s12792_s2 + $0x310] sm:$0xff]  ;;  %v3245_v22 = vadd.f32 %v11631_v20, %v3108_v49 }
 0x35f   : > { %v3369_v40 = vadd.f32 %v11633_v9, %v3245_v22 }
 0x360   : > { %4535 = vmatpush.bf16.msra.mxu0 %v10028_v41  ;;  %4415 = vmatpush.bf16.msra.mxu3 %v10016_v37 }
 0x361   : > { %v3493_v8 = vadd.f32 %v11610_v50, %v3369_v40  ;;  %v12831_v50 = vld [vmem:[#allocation20_spill] sm:$0xff] }
 0x362   : > { %v11693_v47 = vpop.f32.mrf.mxu2  ;;  %v3113_v36 = vadd.f32 %v12831_v50, %v11303_v11 }
 0x363   : > { %v11704_v60 = vpop.f32.mrf.mxu3  ;;  %v3617_v4 = vadd.f32 %v3593_v28, %v3493_v8  ;;  %v3601_v8 = vpop.f32.mrf.mxu1 }
 0x364   : > { %4536 = vmatpush.bf16.msra.mxu0 %v10027_v15  ;;  %v3968_v15 = vpop.f32.mrf.mxu0 }
 0x368   : > { %4537 = vmatpush.bf16.msra.mxu0 %v10026_v1  ;;  %v3247_v1 = vadd.f32 %v11643_v13, %v3113_v36 }
 0x36a   : > { %v3239_v3 = vpop.f32.mrf.mxu2  ;;  %v3371_v11 = vadd.f32 %v11645_v44, %v3247_v1  ;;  %v4330_v44 = vld [vmem:[#allocation4 + $0x2] sm:$0xff]  ;;  %v3496_v1 = vadd.f32 %v11635_v7, %v11650_v29 }
 0x36b   : > { %v3252_v53 = vadd.f32 %v3239_v3, %v11612_v34  ;;  %v3363_v61 = vpop.f32.mrf.mxu3  ;;  %v10015_v34 = vld [vmem:[%s12792_s2 + $0x2c8] sm:$0xff] }
 0x36c   : > { %4416 = vmatpush.bf16.msra.mxu3 %v10015_v34  ;;  %4538 = vmatpush.bf16.msra.mxu0 %v10025_v23  ;;  %v3970_v13 = vpop.f32.mrf.mxu0  ;;  %v3495_v28 = vadd.f32 %v11627_v6, %v3371_v11 }
 0x36d   : > { %v3376_v57 = vadd.f32 %v3363_v61, %v3252_v53 }
 0x36f   : > { %v11743_v18 = vadd.f32 %v3487_v10, %v3376_v57  ;;  %v10014_v10 = vld [vmem:[%s12792_s2 + $0x2c0] sm:$0xff] }
 0x370   : > { %4417 = vmatpush.bf16.msra.mxu3 %v10014_v10  ;;  %4539 = vmatpush.bf16.msra.mxu0 %v10024_v27 }
 0x372   : > { %v11748_v38 = vpop.f32.mrf.mxu2 }
 0x373   : > { %v11761_v25 = vpop.f32.mrf.mxu3 }
 0x374   : > { %4540 = vmatpush.bf16.msra.mxu0 %v10023_v54  ;;  %v4134_v54 = vld [vmem:[#allocation4 + $0x1] sm:$0xff] }
 0x378   : > { %4541 = vmatpush.bf16.msra.mxu0 %v10022_v12 }
 0x37a   : > { %v3715_v43 = vpop.f32.mrf.mxu2 }
 0x37b   : > { %v3740_v41 = vadd.f32 %v3715_v43, %v3616_v19  ;;  %v3839_v63 = vpop.f32.mrf.mxu3  ;;  %v3619_v43 = vadd.f32 %v3598_v35, %v3495_v28  ;;  %v3620_v35 = vadd.f32 %v3601_v8, %v3496_v1  ;;  %v10045_v1 = vld [vmem:[%s12792_s2 + $0x3b8] sm:$0xff] }
 0x37c   : > { %4782 = vmatpush.bf16.msrb.mxu2 %v10045_v1 }
 0x37d   : > { %v3864_v20 = vadd.f32 %v3839_v63, %v3740_v41 }
 0x37f   : > { %v3988_v9 = vadd.f32 %v3963_v24, %v3864_v20  ;;  %v3494_v24 = vadd.f32 %v11617_v48, %v11639_v0 }
 0x381   : > { %v3999_v3 = vmul.f32 %v11780_v30, %v3988_v9  ;;  %v3618_v10 = vadd.f32 %v3596_v14, %v3494_v24  ;;  %v10291_v14 = vld [vmem:[#allocation3] sm:$0xff] }
 0x382   : > { %v3717_v37 = vpop.f32.mrf.mxu2 }
 0x383   : > { %v4010_v58 = vadd.f32 %v11785_v17, %v3999_v3  ;;  %v3741_v53 = vadd.f32 %v3717_v37, %v3617_v4  ;;  %v3841_v61 = vpop.f32.mrf.mxu3  ;;  %v3118_v4 = vadd.f32 %v11582_v59, %v11580_v56  ;;  %v11819_v56 = vpop.permute.xlu1 %4042 }
 0x385   : > { %v4020_v57 = vmax.f32 %v4010_v58, 0.0  ;;  %v3865_v45 = vadd.f32 %v3841_v61, %v3741_v53  ;;  %v3249_v53 = vadd.f32 %v11657_v32, %v3118_v4  ;;  %v3973_v61 = vpop.f32.mrf.mxu0 }
 0x387   : > { %v11797_v34 = vmul.f32 %v11794_v39, %v4020_v57  ;;  %v3989_v23 = vadd.f32 %v3965_v5, %v3865_v45 }
 0x389   : > { %4090 = vst [vmem:[#allocation4 + $0xb] sm:$0xff] %v11797_v34  ;;  %v4000_v46 = vmul.f32 %v11780_v30, %v3989_v23  ;;  %v3373_v23 = vadd.f32 %v11659_v51, %v3249_v53 }
 0x38a   : > { %v3720_v49 = vpop.f32.mrf.mxu2 }
 0x38b   : > { %v4011_v48 = vadd.f32 %v11785_v17, %v4000_v46  ;;  %v3742_v0 = vadd.f32 %v3720_v49, %v3618_v10  ;;  %v3844_v27 = vpop.f32.mrf.mxu3  ;;  %v3603_v49 = vpop.f32.mrf.mxu1 }
 0x38d   : > { %v4021_v22 = vmax.f32 %v4011_v48, 0.0  ;;  %v3866_v5 = vadd.f32 %v3844_v27, %v3742_v0  ;;  %v3497_v0 = vadd.f32 %v11641_v55, %v3373_v23  ;;  %v11829_v27 = vpop.permute.xlu2 %4047  ;;  %v3975_v28 = vpop.f32.mrf.mxu0 }
 0x38f   : > { %v11807_v40 = vmul.f32 %v11804_v62, %v4021_v22  ;;  %v3990_v19 = vadd.f32 %v3968_v15, %v3866_v5 }
 0x390   : > { %v4135_v12 = vld [vmem:[#allocation4 + $0x9] sm:$0xff] }
 0x391   : > { %v4103_v41 = vld [vmem:[#allocation4 + $0x8] sm:$0xff]  ;;  %4091 = vst [vmem:[#allocation4 + $0x13] sm:$0xff] %v11807_v40  ;;  %v4001_v20 = vmul.f32 %v11780_v30, %v3990_v19  ;;  %v4144_v6 = vpack.c.bf16 %v4135_v12, %v4134_v54  ;;  %v4588_v15 = vpack.c.bf16 %v11807_v40, %v11797_v34  ;;  %v3621_v19 = vadd.f32 %v3603_v49, %v3497_v0 }
 0x392   : > { %v4331_v63 = vld [vmem:[#allocation4 + $0xa] sm:$0xff]  ;;  %v4112_v9 = vpack.c.bf16 %v4103_v41, %v10291_v14  ;;  %v3722_v50 = vpop.f32.mrf.mxu2 }
 0x393   : > { %v4340_v3 = vpack.c.bf16 %v4331_v63, %v4330_v44  ;;  %v4012_v36 = vadd.f32 %v11785_v17, %v4001_v20  ;;  %v3743_v37 = vadd.f32 %v3722_v50, %v3619_v43  ;;  %v3846_v58 = vpop.f32.mrf.mxu3  ;;  %4222 = vmatmul.bf16.vlgmr.msrb.gmra.mxu1 %v4144_v6  ;;  %v3123_v6 = vadd.f32 %v11601_v2, %v11599_v42  ;;  %v10037_v2 = vld [vmem:[%s12792_s2 + $0x378] sm:$0xff] }
 0x394   : > { %4304 = vmatmul.bf16.vlgmr.msra.gmra.mxu2 %v4112_v9  ;;  %4658 = vmatpush.bf16.msra.mxu1 %v10037_v2  ;;  %v10060_v2 = vld [vmem:[%s12792_s2 + $0x430] sm:$0xff] }
 0x395   : > { %4418 = vmatmul.bf16.vlgmr.msra.gmra.mxu3 %v4340_v3  ;;  %v4022_v24 = vmax.f32 %v4012_v36, 0.0  ;;  %v3867_v57 = vadd.f32 %v3846_v58, %v3743_v37  ;;  %v3606_v3 = vpop.f32.mrf.mxu1  ;;  %v3251_v37 = vadd.f32 %v11693_v47, %v3123_v6  ;;  %v3498_v58 = vadd.f32 %v11647_v52, %v11677_v31  ;;  %v11844_v42 = vpop.permute.xlu2 %4052  ;;  %v10053_v47 = vld [vmem:[%s12792_s2 + $0x3f8] sm:$0xff] }
 0x396   : > { %4906 = vmatpush.bf16.msrb.mxu3 %v10053_v47 }
 0x397   : > { %v11822_v59 = vmul.f32 %v11819_v56, %v4022_v24  ;;  %v3991_v45 = vadd.f32 %v3970_v13, %v3867_v57  ;;  %v3375_v31 = vadd.f32 %v11704_v60, %v3251_v37  ;;  %v3978_v57 = vpop.f32.mrf.mxu0  ;;  %v10044_v60 = vld [vmem:[%s12792_s2 + $0x3b0] sm:$0xff]  ;;  %v3128_v37 = vadd.f32 %v11621_v33, %v11619_v26  ;;  %v10033_v33 = vld [vmem:[%s12792_s2 + $0x358] sm:$0xff] }
 0x398   : > { %v4455_v11 = vld [vmem:[#allocation4 + $0x12] sm:$0xff]  ;;  %4783 = vmatpush.bf16.msrb.mxu2 %v10044_v60 }
 0x399   : > { %4092 = vst [vmem:[#allocation4 + $0x1b] sm:$0xff] %v11822_v59  ;;  %v4002_v32 = vmul.f32 %v11780_v30, %v3991_v45  ;;  %v4464_v46 = vpack.c.bf16 %v4455_v11, %v4331_v63  ;;  %v4136_v54 = vld [vmem:[#allocation4 + $0x11] sm:$0xff]  ;;  %v3253_v26 = vadd.f32 %v11748_v38, %v3128_v37 }
 0x39a   : > { %v3725_v10 = vpop.f32.mrf.mxu2  ;;  %v4104_v44 = vld [vmem:[#allocation4 + $0x10] sm:$0xff] }
 0x39b   : > { %v4013_v7 = vadd.f32 %v11785_v17, %v4002_v32  ;;  %v3744_v29 = vadd.f32 %v3725_v10, %v3620_v35  ;;  %v3849_v48 = vpop.f32.mrf.mxu3  ;;  %4542 = vmatmul.bf16.vlgmr.msra.gmra.mxu0 %v4464_v46  ;;  %v10036_v46 = vld [vmem:[%s12792_s2 + $0x370] sm:$0xff]  ;;  %v10049_v38 = vld [vmem:[%s12792_s2 + $0x3d8] sm:$0xff] }
 0x39c   : > { %v10052_v10 = vld [vmem:[%s12792_s2 + $0x3f0] sm:$0xff]  ;;  %4659 = vmatpush.bf16.msra.mxu1 %v10036_v46 }
 0x39d   : > { %v4023_v13 = vmax.f32 %v4013_v7, 0.0  ;;  %v3868_v51 = vadd.f32 %v3849_v48, %v3744_v29  ;;  %v3499_v48 = vadd.f32 %v11655_v21, %v3375_v31  ;;  %v3608_v0 = vpop.f32.mrf.mxu1  ;;  %4907 = vmatpush.bf16.msrb.mxu3 %v10052_v10  ;;  %v10051_v21 = vld [vmem:[%s12792_s2 + $0x3e8] sm:$0xff]  ;;  %v3377_v10 = vadd.f32 %v11761_v25, %v3253_v26  ;;  %v10048_v25 = vld [vmem:[%s12792_s2 + $0x3d0] sm:$0xff] }
 0x39f   : > { %v11832_v22 = vmul.f32 %v11829_v27, %v4023_v13  ;;  %v3992_v5 = vadd.f32 %v3973_v61, %v3868_v51 }
 0x3a0   : > { %v4137_v43 = vld [vmem:[#allocation4 + $0x19] sm:$0xff] }
 0x3a1   : > { %v4105_v12 = vld [vmem:[#allocation4 + $0x18] sm:$0xff]  ;;  %4093 = vst [vmem:[#allocation4 + $0x23] sm:$0xff] %v11832_v22  ;;  %v4003_v63 = vmul.f32 %v11780_v30, %v3992_v5  ;;  %v4145_v55 = vpack.c.bf16 %v4137_v43, %v4136_v54  ;;  %v4589_v9 = vpack.c.bf16 %v11832_v22, %v11822_v59  ;;  %v10035_v5 = vld [vmem:[%s12792_s2 + $0x368] sm:$0xff]  ;;  %4908 = vmatpush.bf16.msrb.mxu3 %v10051_v21 }
 0x3a2   : > { %v4333_v41 = vld [vmem:[#allocation4 + $0x1a] sm:$0xff]  ;;  %v4113_v8 = vpack.c.bf16 %v4105_v12, %v4104_v44  ;;  %v3727_v14 = vpop.f32.mrf.mxu2  ;;  %4660 = vmatpush.bf16.msra.mxu1 %v10035_v5 }
 0x3a3   : > { %v4341_v20 = vpack.c.bf16 %v4333_v41, %v4455_v11  ;;  %v4014_v4 = vadd.f32 %v11785_v17, %v4003_v63  ;;  %v3745_v50 = vadd.f32 %v3727_v14, %v3621_v19  ;;  %v3851_v36 = vpop.f32.mrf.mxu3  ;;  %4227 = vmatmul.bf16.gmra.mxu1 %v4145_v55  ;;  %v3622_v11 = vadd.f32 %v3606_v3, %v3498_v58  ;;  %v10043_v54 = vld [vmem:[%s12792_s2 + $0x3a8] sm:$0xff]  ;;  %v3980_v58 = vpop.f32.mrf.mxu0  ;;  %v10058_v5 = vld [vmem:[%s12792_s2 + $0x420] sm:$0xff] }
 0x3a4   : > { %4309 = vmatmul.bf16.gmra.mxu2 %v4113_v8  ;;  %v3623_v63 = vadd.f32 %v3608_v0, %v3499_v48 }
 0x3a5   : > { %4423 = vmatmul.bf16.gmra.mxu3 %v4341_v20  ;;  %v4024_v53 = vmax.f32 %v4014_v4, 0.0  ;;  %v3869_v61 = vadd.f32 %v3851_v36, %v3745_v50  ;;  %4784 = vmatpush.bf16.msrb.mxu2 %v10043_v54  ;;  %v10034_v50 = vld [vmem:[%s12792_s2 + $0x360] sm:$0xff] }
 0x3a6   : > { %v10042_v36 = vld [vmem:[%s12792_s2 + $0x3a0] sm:$0xff]  ;;  %4661 = vmatpush.bf16.msra.mxu1 %v10034_v50  ;;  %v10057_v50 = vld [vmem:[%s12792_s2 + $0x418] sm:$0xff] }
 0x3a7   : > { %v11856_v24 = vmul.f32 %v11844_v42, %v4024_v53  ;;  %v3993_v52 = vadd.f32 %v3975_v28, %v3869_v61  ;;  %v11872_v28 = vpop.permute.xlu0 %4057  ;;  %v10050_v61 = vld [vmem:[%s12792_s2 + $0x3e0] sm:$0xff] }
 0x3a8   : > { %v4457_v45 = vld [vmem:[#allocation4 + $0x22] sm:$0xff]  ;;  %4909 = vmatpush.bf16.msrb.mxu3 %v10050_v61 }
 0x3a9   : > { %4094 = vst [vmem:[#allocation4 + $0x2b] sm:$0xff] %v11856_v24  ;;  %v4004_v23 = vmul.f32 %v11780_v30, %v3993_v52  ;;  %v4465_v32 = vpack.c.bf16 %v4457_v45, %v4333_v41  ;;  %v4138_v43 = vld [vmem:[#allocation4 + $0x21] sm:$0xff]  ;;  %v10061_v41 = vld [vmem:[%s12792_s2 + $0x438] sm:$0xff]  ;;  %4785 = vmatpush.bf16.msrb.mxu2 %v10042_v36 }
 0x3aa   : > { %v3730_v35 = vpop.f32.mrf.mxu2  ;;  %v4106_v12 = vld [vmem:[#allocation4 + $0x20] sm:$0xff]  ;;  %5030 = vmatpush.bf16.msrb.mxu0 %v10061_v41  ;;  %4662 = vmatpush.bf16.msra.mxu1 %v10033_v33  ;;  %v10038_v33 = vld [vmem:[%s12792_s2 + $0x380] sm:$0xff] }
 0x3ab   : > { %v4015_v49 = vadd.f32 %v11785_v17, %v4004_v23  ;;  %v3746_v7 = vadd.f32 %v3730_v35, %v3622_v11  ;;  %v3854_v29 = vpop.f32.mrf.mxu3  ;;  %4547 = vmatmul.bf16.gmra.mxu0 %v4465_v32  ;;  %v10041_v11 = vld [vmem:[%s12792_s2 + $0x398] sm:$0xff]  ;;  %v11915_v32 = vpop.permute.xlu1 %4062  ;;  %v10059_v35 = vld [vmem:[%s12792_s2 + $0x428] sm:$0xff] }
 0x3ac   : > { %4910 = vmatpush.bf16.msrb.mxu3 %v10049_v38 }
 0x3ad   : > { %v4025_v13 = vmax.f32 %v4015_v49, 0.0  ;;  %v3870_v51 = vadd.f32 %v3854_v29, %v3746_v7  ;;  %v10032_v7 = vld [vmem:[%s12792_s2 + $0x350] sm:$0xff]  ;;  %4786 = vmatpush.bf16.msrb.mxu2 %v10041_v11 }
 0x3ae   : > { %5031 = vmatpush.bf16.msrb.mxu0 %v10060_v2  ;;  %4663 = vmatpush.bf16.msra.mxu1 %v10032_v7 }
 0x3af   : > { %v11884_v44 = vmul.f32 %v11872_v28, %v4025_v13  ;;  %v3994_v19 = vadd.f32 %v3978_v57, %v3870_v51  ;;  %v3611_v57 = vpop.f32.mrf.mxu1  ;;  %v10040_v13 = vld [vmem:[%s12792_s2 + $0x390] sm:$0xff] }
 0x3b0   : > { %v4139_v55 = vld [vmem:[#allocation4 + $0x29] sm:$0xff]  ;;  %v3624_v48 = vadd.f32 %v3611_v57, %v11743_v18  ;;  %4911 = vmatpush.bf16.msrb.mxu3 %v10048_v25  ;;  %v10046_v57 = vld [vmem:[%s12792_s2 + $0x3c0] sm:$0xff] }
 0x3b1   : > { %v4107_v8 = vld [vmem:[#allocation4 + $0x28] sm:$0xff]  ;;  %4095 = vst [vmem:[#allocation4 + $0x33] sm:$0xff] %v11884_v44  ;;  %v4005_v6 = vmul.f32 %v11780_v30, %v3994_v19  ;;  %v4146_v14 = vpack.c.bf16 %v4139_v55, %v4138_v43  ;;  %v4590_v1 = vpack.c.bf16 %v11884_v44, %v11856_v24  ;;  %v3501_v19 = vadd.f32 %v11691_v16, %v3377_v10  ;;  %v3983_v43 = vpop.f32.mrf.mxu0  ;;  %v11947_v55 = vpop.permute.xlu2 %4067  ;;  %v10047_v16 = vld [vmem:[%s12792_s2 + $0x3c8] sm:$0xff] }
 0x3b2   : > { %v4335_v20 = vld [vmem:[#allocation4 + $0x2a] sm:$0xff]  ;;  %v4114_v3 = vpack.c.bf16 %v4107_v8, %v4106_v12  ;;  %v3732_v53 = vpop.f32.mrf.mxu2  ;;  %5032 = vmatpush.bf16.msrb.mxu0 %v10059_v35  ;;  %v10031_v12 = vld [vmem:[%s12792_s2 + $0x348] sm:$0xff]  ;;  %4787 = vmatpush.bf16.msrb.mxu2 %v10040_v13 }
 0x3b3   : > { %v4342_v4 = vpack.c.bf16 %v4335_v20, %v4457_v45  ;;  %v4016_v47 = vadd.f32 %v11785_v17, %v4005_v6  ;;  %v3747_v52 = vadd.f32 %v3732_v53, %v3623_v63  ;;  %v3856_v31 = vpop.f32.mrf.mxu3  ;;  %4232 = vmatmul.bf16.gmra.mxu1 %v4146_v14  ;;  %v10039_v8 = vld [vmem:[%s12792_s2 + $0x388] sm:$0xff]  ;;  %v10056_v35 = vld [vmem:[%s12792_s2 + $0x410] sm:$0xff] }
 0x3b4   : > { %4314 = vmatmul.bf16.gmra.mxu2 %v4114_v3  ;;  %4664 = vmatpush.bf16.msra.mxu1 %v10031_v12  ;;  %v10055_v13 = vld [vmem:[%s12792_s2 + $0x408] sm:$0xff] }
 0x3b5   : > { %4428 = vmatmul.bf16.gmra.mxu3 %v4342_v4  ;;  %v4026_v45 = vmax.f32 %v4016_v47, 0.0  ;;  %v3871_v23 = vadd.f32 %v3856_v31, %v3747_v52  ;;  %v10030_v31 = vld [vmem:[%s12792_s2 + $0x340] sm:$0xff]  ;;  %v4952_v40 = vld [vmem:[#allocation4 + $0x25] sm:$0xff] }
 0x3b6   : > { %5033 = vmatpush.bf16.msrb.mxu0 %v10058_v5  ;;  %4788 = vmatpush.bf16.msrb.mxu2 %v10039_v8  ;;  %v10063_v24 = vld [vmem:[%s12792_s2 + $0x448] sm:$0xff] }
 0x3b7   : > { %v11924_v46 = vmul.f32 %v11915_v32, %v4026_v45  ;;  %v3995_v60 = vadd.f32 %v3980_v58, %v3871_v23  ;;  %4912 = vmatpush.bf16.msrb.mxu3 %v10047_v16 }
 0x3b8   : > { %v4459_v49 = vld [vmem:[#allocation4 + $0x32] sm:$0xff]  ;;  %4665 = vmatpush.bf16.msra.mxu1 %v10030_v31 }
 0x3b9   : > { %4096 = vst [vmem:[#allocation4 + $0x3b] sm:$0xff] %v11924_v46  ;;  %v4006_v29 = vmul.f32 %v11780_v30, %v3995_v60  ;;  %v4466_v0 = vpack.c.bf16 %v4459_v49, %v4335_v20  ;;  %v3613_v20 = vpop.f32.mrf.mxu1  ;;  %v4140_v3 = vld [vmem:[#allocation4 + $0x31] sm:$0xff]  ;;  %v3985_v7 = vpop.f32.mrf.mxu0 }
 0x3ba   : > { %v3735_v51 = vpop.f32.mrf.mxu2  ;;  %v4108_v4 = vld [vmem:[#allocation4 + $0x30] sm:$0xff]  ;;  %v3625_v36 = vadd.f32 %v3613_v20, %v3501_v19  ;;  %5034 = vmatpush.bf16.msrb.mxu0 %v10057_v50  ;;  %4789 = vmatpush.bf16.msrb.mxu2 %v10038_v33  ;;  %v4827_v50 = vld [vmem:[#allocation4 + $0x1c] sm:$0xff] }
 0x3bb   : > { %v4017_v54 = vadd.f32 %v11785_v17, %v4006_v29  ;;  %v3748_v18 = vadd.f32 %v3735_v51, %v3624_v48  ;;  %v3859_v21 = vpop.f32.mrf.mxu3  ;;  %4552 = vmatmul.bf16.gmra.mxu0 %v4466_v0  ;;  %4913 = vmatpush.bf16.msrb.mxu3 %v10046_v57  ;;  %v10069_v31 = vld [vmem:[%s12792_s2 + $0x478] sm:$0xff]  ;;  %v10068_v57 = vld [vmem:[%s12792_s2 + $0x470] sm:$0xff] }
 0x3bc   : > { %5154 = vmatpush.bf16.msrb.mxu1 %v10069_v31  ;;  %v4953_v34 = vld [vmem:[#allocation4 + $0x2d] sm:$0xff] }
 0x3bd   : > { %v4027_v41 = vmax.f32 %v4017_v54, 0.0  ;;  %v3872_v63 = vadd.f32 %v3859_v21, %v3748_v18  ;;  %v10054_v54 = vld [vmem:[%s12792_s2 + $0x400] sm:$0xff]  ;;  %v11992_v21 = vpop.permute.xlu1 %4077 }
 0x3be   : > { %5035 = vmatpush.bf16.msrb.mxu0 %v10056_v35  ;;  %v10065_v35 = vld [vmem:[%s12792_s2 + $0x458] sm:$0xff] }
 0x3bf   : > { %v11956_v6 = vmul.f32 %v11947_v55, %v4027_v41  ;;  %v3996_v14 = vadd.f32 %v3983_v43, %v3872_v63 }
 0x3c0   : > { %v4141_v37 = vld [vmem:[#allocation4 + $0x39] sm:$0xff]  ;;  %5155 = vmatpush.bf16.msrb.mxu1 %v10068_v57 }
 0x3c1   : > { %v4109_v58 = vld [vmem:[#allocation4 + $0x38] sm:$0xff]  ;;  %4097 = vst [vmem:[#allocation4 + $0x43] sm:$0xff] %v11956_v6  ;;  %v4007_v61 = vmul.f32 %v11780_v30, %v3996_v14  ;;  %v4147_v2 = vpack.c.bf16 %v4141_v37, %v4140_v3  ;;  %v4591_v45 = vpack.c.bf16 %v11956_v6, %v11924_v46 }
 0x3c2   : > { %v4337_v53 = vld [vmem:[#allocation4 + $0x3a] sm:$0xff]  ;;  %v4115_v47 = vpack.c.bf16 %v4109_v58, %v4108_v4  ;;  %v3737_v26 = vpop.f32.mrf.mxu2  ;;  %5036 = vmatpush.bf16.msrb.mxu0 %v10055_v13 }
 0x3c3   : > { %v4343_v52 = vpack.c.bf16 %v4337_v53, %v4459_v49  ;;  %v4018_v23 = vadd.f32 %v11785_v17, %v4007_v61  ;;  %v3749_v11 = vadd.f32 %v3737_v26, %v3625_v36  ;;  %4237 = vmatmul.bf16.gmra.mxu1 %v4147_v2  ;;  %v3861_v38 = vpop.f32.mrf.mxu3  ;;  %v11978_v49 = vpop.permute.xlu0 %4072  ;;  %v4703_v4 = vld [vmem:[#allocation4 + $0x14] sm:$0xff]  ;;  %v4702_v36 = vld [vmem:[#allocation4 + $0xc] sm:$0xff] }
 0x3c4   : > { %4319 = vmatmul.bf16.gmra.mxu2 %v4115_v47  ;;  %v4712_v37 = vpack.c.bf16 %v4703_v4, %v4702_v36  ;;  %v4836_v58 = vpack.c.bf16 %v4827_v50, %v4703_v4  ;;  %v4950_v61 = vld [vmem:[#allocation4 + $0x15] sm:$0xff]  ;;  %v4705_v47 = vld [vmem:[#allocation4 + $0x24] sm:$0xff] }
 0x3c5   : > { %4433 = vmatmul.bf16.gmra.mxu3 %v4343_v52  ;;  %v4028_v60 = vmax.f32 %v4018_v23, 0.0  ;;  %v3873_v10 = vadd.f32 %v3861_v38, %v3749_v11  ;;  %v4829_v52 = vld [vmem:[#allocation4 + $0x2c] sm:$0xff]  ;;  %v4713_v26 = vpack.c.bf16 %v4705_v47, %v4827_v50  ;;  %v10067_v23 = vld [vmem:[%s12792_s2 + $0x468] sm:$0xff]  ;;  %v4707_v11 = vld [vmem:[#allocation4 + $0x34] sm:$0xff] }
 0x3c6   : > { %5037 = vmatpush.bf16.msrb.mxu0 %v10054_v54  ;;  %v4837_v33 = vpack.c.bf16 %v4829_v52, %v4705_v47  ;;  %5156 = vmatpush.bf16.msrb.mxu1 %v10067_v23  ;;  %v4714_v59 = vpack.c.bf16 %v4707_v11, %v4829_v52 }
 0x3c7   : > { %v11981_v29 = vmul.f32 %v11978_v49, %v4028_v60  ;;  %v3997_v48 = vadd.f32 %v3985_v7, %v3873_v10  ;;  %v4954_v10 = vld [vmem:[#allocation4 + $0x35] sm:$0xff] }
 0x3c8   : > { %v4461_v0 = vld [vmem:[#allocation4 + $0x42] sm:$0xff] }
 0x3c9   : > { %4098 = vst [vmem:[#allocation4 + $0x4b] sm:$0xff] %v11981_v29  ;;  %v4008_v51 = vmul.f32 %v11780_v30, %v3997_v48  ;;  %v4467_v25 = vpack.c.bf16 %v4461_v0, %v4337_v53  ;;  %v4142_v43 = vld [vmem:[#allocation4 + $0x41] sm:$0xff] }
 0x3ca   : > { %v4110_v12 = vld [vmem:[#allocation4 + $0x40] sm:$0xff]  ;;  %v10064_v48 = vld [vmem:[%s12792_s2 + $0x450] sm:$0xff] }
 0x3cb   : > { %v4019_v5 = vadd.f32 %v11785_v17, %v4008_v51  ;;  %4557 = vmatmul.bf16.gmra.mxu0 %v4467_v25  ;;  %v4951_v53 = vld [vmem:[#allocation4 + $0x1d] sm:$0xff] }
 0x3cc   : > { %v4960_v2 = vpack.c.bf16 %v4951_v53, %v4950_v61  ;;  %v4831_v38 = vld [vmem:[#allocation4 + $0x3c] sm:$0xff] }
 0x3cd   : > { %v4029_v18 = vmax.f32 %v4019_v5, 0.0  ;;  %v4838_v22 = vpack.c.bf16 %v4831_v38, %v4707_v11  ;;  %v4955_v60 = vld [vmem:[#allocation4 + $0x3d] sm:$0xff] }
 0x3ce   : > { %v4962_v7 = vpack.c.bf16 %v4955_v60, %v4954_v10  ;;  %v10062_v25 = vld [vmem:[%s12792_s2 + $0x440] sm:$0xff]  ;;  %v5077_v60 = vld [vmem:[#allocation4 + $0x2e] sm:$0xff] }
 0x3cf   : > { %v11995_v19 = vmul.f32 %v11992_v21, %v4029_v18 }
 0x3d0   : > { %v4143_v41 = vld [vmem:[#allocation4 + $0x49] sm:$0xff] }
 0x3d1   : > { %v4111_v63 = vld [vmem:[#allocation4 + $0x48] sm:$0xff]  ;;  %4099 = vst [vmem:[#allocation4 + $0x53] sm:$0xff] %v11995_v19  ;;  %v4148_v17 = vpack.c.bf16 %v4143_v41, %v4142_v43  ;;  %v4592_v20 = vpack.c.bf16 %v11995_v19, %v11981_v29 }
 0x3d2   : > { %v4339_v30 = vld [vmem:[#allocation4 + $0x4a] sm:$0xff]  ;;  %v4116_v8 = vpack.c.bf16 %v4111_v63, %v4110_v12 }
 0x3d3   : > { %v4344_v16 = vpack.c.bf16 %v4339_v30, %v4461_v0  ;;  %4242 = vmatmul.bf16.gmra.mxu1 %v4148_v17  ;;  %v4709_v44 = vld [vmem:[#allocation4 + $0x44] sm:$0xff] }
 0x3d4   : > { %4324 = vmatmul.bf16.gmra.mxu2 %v4116_v8  ;;  %v4715_v13 = vpack.c.bf16 %v4709_v44, %v4831_v38  ;;  %v4956_v63 = vld [vmem:[#allocation4 + $0x45] sm:$0xff] }
 0x3d5   : > { %4438 = vmatmul.bf16.gmra.mxu3 %v4344_v16 }
 0x3d8   : > { %v4463_v14 = vld [vmem:[#allocation4 + $0x52] sm:$0xff] }
 0x3d9   : > { %v4468_v3 = vpack.c.bf16 %v4463_v14, %v4339_v30  ;;  %v4957_v54 = vld [vmem:[#allocation4 + $0x4d] sm:$0xff] }
 0x3da   : > { %v4963_v17 = vpack.c.bf16 %v4957_v54, %v4956_v63  ;;  %v4711_v46 = vld [vmem:[#allocation4 + $0x54] sm:$0xff] }
 0x3db   : > { %4562 = vmatmul.bf16.gmra.mxu0 %v4468_v3 }
 0x3e3   : > { %4666 = vmatmul.bf16.vlgmr.msra.gmra.mxu1 %v4588_v15  ;;  %v4961_v15 = vpack.c.bf16 %v4953_v34, %v4952_v40  ;;  %v5075_v34 = vld [vmem:[#allocation4 + $0x1e] sm:$0xff] }
 0x3e4   : > { %4790 = vmatmul.bf16.vlgmr.msrb.gmra.mxu2 %v4712_v37  ;;  %v4958_v37 = vld [vmem:[#allocation4 + $0x55] sm:$0xff] }
 0x3e5   : > { %4914 = vmatmul.bf16.vlgmr.msrb.gmra.mxu3 %v4836_v58  ;;  %v4959_v58 = vld [vmem:[#allocation4 + $0x5d] sm:$0xff] }
 0x3e6   : > { %v4964_v31 = vpack.c.bf16 %v4959_v58, %v4958_v37 }
 0x3eb   : > { %5038 = vmatmul.bf16.vlgmr.msrb.gmra.mxu0 %v4960_v2 }
 0x3f3   : > { %4671 = vmatmul.bf16.gmra.mxu1 %v4589_v9  ;;  %v10066_v9 = vld [vmem:[%s12792_s2 + $0x460] sm:$0xff] }
 0x3f4   : > { %4795 = vmatmul.bf16.gmra.mxu2 %v4713_v26  ;;  %5157 = vmatpush.bf16.msrb.mxu1 %v10066_v9 }
 0x3f5   : > { %4919 = vmatmul.bf16.gmra.mxu3 %v4837_v33 }
 0x3f8   : > { %5158 = vmatpush.bf16.msrb.mxu1 %v10065_v35 }
 0x3fb   : > { %5043 = vmatmul.bf16.gmra.mxu0 %v4961_v15 }
 0x3fc   : > { %5159 = vmatpush.bf16.msrb.mxu1 %v10064_v48 }
 0x400   : > { %5160 = vmatpush.bf16.msrb.mxu1 %v10063_v24  ;;  %v5076_v24 = vld [vmem:[#allocation4 + $0x26] sm:$0xff] }
 0x403   : > { %4676 = vmatmul.bf16.gmra.mxu1 %v4590_v1  ;;  %v4833_v1 = vld [vmem:[#allocation4 + $0x4c] sm:$0xff] }
 0x404   : > { %4800 = vmatmul.bf16.gmra.mxu2 %v4714_v59  ;;  %v4839_v51 = vpack.c.bf16 %v4833_v1, %v4709_v44  ;;  %5161 = vmatpush.bf16.msrb.mxu1 %v10062_v25  ;;  %v4716_v4 = vpack.c.bf16 %v4711_v46, %v4833_v1  ;;  %v5085_v44 = vpack.c.bf16 %v5077_v60, %v5076_v24 }
 0x405   : > { %4924 = vmatmul.bf16.gmra.mxu3 %v4838_v22 }
 0x40b   : > { %5048 = vmatmul.bf16.gmra.mxu0 %v4962_v7 }
 0x410   : > { %v4223_v0 = vpop.f32.mrf.mxu1 }
 0x413   : > { %4681 = vmatmul.bf16.gmra.mxu1 %v4591_v45  ;;  %v4835_v45 = vld [vmem:[#allocation4 + $0x5c] sm:$0xff] }
 0x414   : > { %4805 = vmatmul.bf16.gmra.mxu2 %v4715_v13  ;;  %v4840_v50 = vpack.c.bf16 %v4835_v45, %v4711_v46 }
 0x415   : > { %4929 = vmatmul.bf16.gmra.mxu3 %v4839_v51 }
 0x417   : > { %v4305_v5 = vpop.f32.mrf.mxu2 }
 0x418   : > { %v4306_v18 = vadd.f32 %v4305_v5, %v4223_v0  ;;  %v4419_v43 = vpop.f32.mrf.mxu3  ;;  %v12036_v12 = vpop.f32.mrf.mxu1 }
 0x419   : > { %v4543_v41 = vpop.f32.mrf.mxu0 }
 0x41a   : > { %v4444_v30 = vadd.f32 %v4419_v43, %v4306_v18  ;;  %v5079_v43 = vld [vmem:[#allocation4 + $0x3e] sm:$0xff] }
 0x41b   : > { %5053 = vmatmul.bf16.gmra.mxu0 %v4963_v17  ;;  %v5078_v17 = vld [vmem:[#allocation4 + $0x36] sm:$0xff] }
 0x41c   : > { %v12038_v8 = vadd.f32 %v4543_v41, %v4444_v30  ;;  %v5086_v46 = vpack.c.bf16 %v5079_v43, %v5078_v17 }
 0x41f   : > { %v12040_v16 = vpop.f32.mrf.mxu2 }
 0x420   : > { %v12042_v6 = vpop.f32.mrf.mxu3  ;;  %v4228_v14 = vpop.f32.mrf.mxu1  ;;  %v4308_v17 = vadd.f32 %v12040_v16, %v12036_v12 }
 0x421   : > { %v12044_v3 = vpop.f32.mrf.mxu0 }
 0x423   : > { %4686 = vmatmul.bf16.gmra.mxu1 %v4592_v20  ;;  %v5074_v20 = vld [vmem:[#allocation4 + $0x16] sm:$0xff] }
 0x424   : > { %4810 = vmatmul.bf16.gmra.mxu2 %v4716_v4  ;;  %v5084_v15 = vpack.c.bf16 %v5075_v34, %v5074_v20  ;;  %v5083_v20 = vld [vmem:[#allocation4 + $0x5e] sm:$0xff] }
 0x425   : > { %4934 = vmatmul.bf16.gmra.mxu3 %v4840_v50 }
 0x427   : > { %v4310_v36 = vpop.f32.mrf.mxu2 }
 0x428   : > { %v4311_v53 = vadd.f32 %v4310_v36, %v4228_v14  ;;  %v4424_v61 = vpop.f32.mrf.mxu3  ;;  %v12049_v2 = vpop.f32.mrf.mxu1 }
 0x429   : > { %v4548_v47 = vpop.f32.mrf.mxu0 }
 0x42a   : > { %v4446_v52 = vadd.f32 %v4424_v61, %v4311_v53  ;;  %v5081_v53 = vld [vmem:[#allocation4 + $0x4e] sm:$0xff] }
 0x42b   : > { %5058 = vmatmul.bf16.gmra.mxu0 %v4964_v31 }
 0x42c   : > { %v4570_v26 = vadd.f32 %v4548_v47, %v4446_v52  ;;  %v5080_v47 = vld [vmem:[#allocation4 + $0x46] sm:$0xff] }
 0x42d   : > { %v5087_v31 = vpack.c.bf16 %v5081_v53, %v5080_v47 }
 0x42f   : > { %v12051_v33 = vpop.f32.mrf.mxu2 }
 0x430   : > { %v12053_v40 = vpop.f32.mrf.mxu3  ;;  %v4233_v29 = vpop.f32.mrf.mxu1 }
 0x431   : > { %v12055_v19 = vpop.f32.mrf.mxu0 }
 0x433   : > { %5162 = vmatmul.bf16.vlgmr.msrb.gmra.mxu1 %v5084_v15 }
 0x437   : > { %v4315_v57 = vpop.f32.mrf.mxu2 }
 0x438   : > { %v4316_v23 = vadd.f32 %v4315_v57, %v4233_v29  ;;  %v4429_v11 = vpop.f32.mrf.mxu3  ;;  %v12057_v38 = vpop.f32.mrf.mxu1  ;;  %v5082_v29 = vld [vmem:[#allocation4 + $0x56] sm:$0xff] }
 0x439   : > { %v4553_v59 = vpop.f32.mrf.mxu0 }
 0x43a   : > { %v4448_v22 = vadd.f32 %v4429_v11, %v4316_v23  ;;  %v5088_v23 = vpack.c.bf16 %v5083_v20, %v5082_v29  ;;  %v12101_v29 = vld [vmem:[%s12795_s5 + $0x2] ss:$0 sm:$0xff] }
 0x43c   : > { %v4572_v9 = vadd.f32 %v4553_v59, %v4448_v22 }
 0x43f   : > { %v12059_v35 = vpop.f32.mrf.mxu2 }
 0x440   : > { %v12061_v10 = vpop.f32.mrf.mxu3  ;;  %v4238_v7 = vpop.f32.mrf.mxu1 }
 0x441   : > { %v12063_v48 = vpop.f32.mrf.mxu0 }
 0x443   : > { %5167 = vmatmul.bf16.gmra.mxu1 %v5085_v44 }
 0x447   : > { %v4320_v1 = vpop.f32.mrf.mxu2 }
 0x448   : > { %v4321_v0 = vadd.f32 %v4320_v1, %v4238_v7  ;;  %v4434_v13 = vpop.f32.mrf.mxu3  ;;  %v12065_v51 = vpop.f32.mrf.mxu1 }
 0x449   : > { %v4558_v25 = vpop.f32.mrf.mxu0 }
 0x44a   : > { %v4450_v5 = vadd.f32 %v4434_v13, %v4321_v0 }
 0x44c   : > { %v4574_v54 = vadd.f32 %v4558_v25, %v4450_v5 }
 0x44f   : > { %v12067_v18 = vpop.f32.mrf.mxu2 }
 0x450   : > { %v12069_v41 = vpop.f32.mrf.mxu3  ;;  %v4243_v63 = vpop.f32.mrf.mxu1 }
 0x451   : > { %v12071_v30 = vpop.f32.mrf.mxu0 }
 0x453   : > { %5172 = vmatmul.bf16.gmra.mxu1 %v5086_v46 }
 0x457   : > { %v4325_v45 = vpop.f32.mrf.mxu2 }
 0x458   : > { %v4326_v14 = vadd.f32 %v4325_v45, %v4243_v63  ;;  %v4439_v4 = vpop.f32.mrf.mxu3  ;;  %v12073_v50 = vpop.f32.mrf.mxu1 }
 0x459   : > { %v4563_v37 = vpop.f32.mrf.mxu0 }
 0x45a   : > { %v4452_v36 = vadd.f32 %v4439_v4, %v4326_v14  ;;  %v4445_v14 = vadd.f32 %v12042_v6, %v4308_v17  ;;  %v12106_v6 = vld [vmem:[%s12796_s6 + $0x2] ss:$0 sm:$0xff] }
 0x45c   : > { %v4576_v58 = vadd.f32 %v4563_v37, %v4452_v36  ;;  %v4569_v36 = vadd.f32 %v12044_v3, %v4445_v14  ;;  %v4313_v3 = vadd.f32 %v12051_v33, %v12049_v2 }
 0x45f   : > { %v12078_v60 = vpop.f32.mrf.mxu2 }
 0x460   : > { %v4667_v61 = vpop.f32.mrf.mxu1  ;;  %v12082_v24 = vpop.f32.mrf.mxu3 }
 0x461   : > { %v4692_v52 = vadd.f32 %v4667_v61, %v12038_v8  ;;  %v12084_v44 = vpop.f32.mrf.mxu0 }
 0x463   : > { %5177 = vmatmul.bf16.gmra.mxu1 %v5087_v31 }
 0x467   : > { %v4791_v0 = vpop.f32.mrf.mxu2 }
 0x468   : > { %v4669_v34 = vpop.f32.mrf.mxu1  ;;  %v4915_v13 = vpop.f32.mrf.mxu3  ;;  %v4816_v4 = vadd.f32 %v4791_v0, %v4692_v52 }
 0x469   : > { %v5039_v25 = vpop.f32.mrf.mxu0  ;;  %v4693_v61 = vadd.f32 %v4669_v34, %v4569_v36 }
 0x46a   : > { %v4940_v37 = vadd.f32 %v4915_v13, %v4816_v4 }
 0x46c   : > { %v5064_v47 = vadd.f32 %v5039_v25, %v4940_v37 }
 0x46f   : > { %v4793_v5 = vpop.f32.mrf.mxu2 }
 0x470   : > { %v4672_v15 = vpop.f32.mrf.mxu1  ;;  %v4917_v63 = vpop.f32.mrf.mxu3  ;;  %v4817_v31 = vadd.f32 %v4793_v5, %v4693_v61 }
 0x471   : > { %v4694_v57 = vadd.f32 %v4672_v15, %v4570_v26  ;;  %v5041_v46 = vpop.f32.mrf.mxu0 }
 0x472   : > { %v4941_v52 = vadd.f32 %v4917_v63, %v4817_v31 }
 0x473   : > { %5182 = vmatmul.bf16.gmra.mxu1 %v5088_v23 }
 0x474   : > { %v5065_v0 = vadd.f32 %v5041_v46, %v4941_v52 }
 0x477   : > { %v4796_v45 = vpop.f32.mrf.mxu2 }
 0x478   : > { %v4674_v11 = vpop.f32.mrf.mxu1  ;;  %v4920_v53 = vpop.f32.mrf.mxu3  ;;  %v4818_v13 = vadd.f32 %v4796_v45, %v4694_v57 }
 0x47a   : > { %v4942_v2 = vadd.f32 %v4920_v53, %v4818_v13 }
 0x47f   : > { %v4798_v12 = vpop.f32.mrf.mxu2 }
 0x480   : > { %v4677_v59 = vpop.f32.mrf.mxu1  ;;  %v4922_v23 = vpop.f32.mrf.mxu3 }
 0x481   : > { %v12076_v22 = vadd.f32 %v4677_v59, %v4572_v9  ;;  %v5198_v59 = vld [vmem:[#allocation3 + $0xb] sm:$0xff] }
 0x487   : > { %v4801_v4 = vpop.f32.mrf.mxu2 }
 0x488   : > { %v12080_v7 = vpop.f32.mrf.mxu1 }
 0x48f   : > { %v4803_v52 = vpop.f32.mrf.mxu2 }
 0x490   : > { %v4682_v8 = vpop.f32.mrf.mxu1 }
 0x491   : > { %v12086_v1 = vadd.f32 %v4682_v8, %v4574_v54  ;;  %v4447_v8 = vadd.f32 %v12053_v40, %v4313_v3  ;;  %v5199_v40 = vld [vmem:[#allocation3 + $0x13] sm:$0xff] }
 0x493   : > { %v4571_v36 = vadd.f32 %v12055_v19, %v4447_v8  ;;  %v4318_v19 = vadd.f32 %v12059_v35, %v12057_v38 }
 0x495   : > { %v4695_v37 = vadd.f32 %v4674_v11, %v4571_v36 }
 0x497   : > { %v4819_v57 = vadd.f32 %v4798_v12, %v4695_v37  ;;  %v4449_v12 = vadd.f32 %v12061_v10, %v4318_v19 }
 0x498   : > { %v12088_v26 = vpop.f32.mrf.mxu1 }
 0x499   : > { %v4943_v53 = vadd.f32 %v4922_v23, %v4819_v57  ;;  %v4573_v23 = vadd.f32 %v12063_v48, %v4449_v12  ;;  %v4323_v48 = vadd.f32 %v12067_v18, %v12065_v51  ;;  %v5202_v57 = vld [vmem:[#allocation3 + $0x2b] sm:$0xff] }
 0x4a0   : > { %v4687_v43 = vpop.f32.mrf.mxu1 }
 0x4a1   : > { %v12090_v9 = vadd.f32 %v4687_v43, %v4576_v58  ;;  %v5044_v58 = vpop.f32.mrf.mxu0 }
 0x4a2   : > { %v5066_v46 = vadd.f32 %v5044_v58, %v4942_v2  ;;  %v5200_v58 = vld [vmem:[#allocation3 + $0x1b] sm:$0xff] }
 0x4a8   : > { %v12095_v54 = vpop.f32.mrf.mxu1 }
 0x4a9   : > { %v5046_v43 = vpop.f32.mrf.mxu0 }
 0x4b0   : > { %v5163_v16 = vpop.f32.mrf.mxu1 }
 0x4b1   : > { %v5188_v20 = vadd.f32 %v5163_v16, %v5064_v47  ;;  %v4925_v47 = vpop.f32.mrf.mxu3  ;;  %v5049_v3 = vpop.f32.mrf.mxu0 }
 0x4b3   : > { %v5209_v34 = vmul.f32 %v12101_v29, %v5188_v20 }
 0x4b5   : > { %v5220_v15 = vadd.f32 %v12106_v6, %v5209_v34 }
 0x4b7   : > { %v5230_v25 = vadd.f32 %v5220_v15, %v5198_v59  ;;  %v5067_v15 = vadd.f32 %v5046_v43, %v4943_v53  ;;  %v4820_v59 = vadd.f32 %v4801_v4, %v12076_v22  ;;  %v4806_v43 = vpop.f32.mrf.mxu2  ;;  %v5201_v22 = vld [vmem:[#allocation3 + $0x23] sm:$0xff] }
 0x4b8   : > { %v5165_v5 = vpop.f32.mrf.mxu1 }
 0x4b9   : > { %v5240_v17 = vmax.f32 %v5230_v25, 0.0  ;;  %v5189_v14 = vadd.f32 %v5165_v5, %v5065_v0  ;;  %v4927_v35 = vpop.f32.mrf.mxu3 }
 0x4bb   : > { %v5250_v33 = vmul.f32 %v5240_v17, %v11794_v39  ;;  %v5210_v63 = vmul.f32 %v12101_v29, %v5189_v14  ;;  %v4697_v17 = vadd.f32 %v12080_v7, %v4573_v23  ;;  %v5051_v14 = vpop.f32.mrf.mxu0 }
 0x4bd   : > { %5260 = vst [vmem:[#allocation5 + $0xb] sm:$0xff] %v5250_v33  ;;  %v5221_v61 = vadd.f32 %v12106_v6, %v5210_v63  ;;  %v4821_v36 = vadd.f32 %v4803_v52, %v4697_v17  ;;  %v5204_v17 = vld [vmem:[#allocation3 + $0x3b] sm:$0xff] }
 0x4bf   : > { %v5231_v45 = vadd.f32 %v5221_v61, %v5199_v40  ;;  %v4808_v19 = vpop.f32.mrf.mxu2 }
 0x4c0   : > { %v5168_v31 = vpop.f32.mrf.mxu1 }
 0x4c1   : > { %v5241_v16 = vmax.f32 %v5231_v45, 0.0  ;;  %v5190_v20 = vadd.f32 %v5168_v31, %v5066_v46  ;;  %v4930_v40 = vpop.f32.mrf.mxu3  ;;  %v4451_v45 = vadd.f32 %v12069_v41, %v4323_v48  ;;  %v4822_v31 = vadd.f32 %v4806_v43, %v12086_v1  ;;  %v5203_v1 = vld [vmem:[#allocation3 + $0x33] sm:$0xff] }
 0x4c3   : > { %v5251_v39 = vmul.f32 %v5241_v16, %v11804_v62  ;;  %v5211_v11 = vmul.f32 %v12101_v29, %v5190_v20  ;;  %v4944_v62 = vadd.f32 %v4925_v47, %v4820_v59  ;;  %v5054_v16 = vpop.f32.mrf.mxu0 }
 0x4c5   : > { %5261 = vst [vmem:[#allocation5 + $0x13] sm:$0xff] %v5251_v39  ;;  %v5222_v34 = vadd.f32 %v12106_v6, %v5211_v11  ;;  %v5068_v4 = vadd.f32 %v5049_v3, %v4944_v62  ;;  %v4946_v3 = vadd.f32 %v4930_v40, %v4822_v31  ;;  %v12146_v62 = vld [vmem:[#allocation3] sm:$0xff] }
 0x4c7   : > { %v5232_v8 = vadd.f32 %v5222_v34, %v5200_v58  ;;  %v5070_v58 = vadd.f32 %v5054_v16, %v4946_v3 }
 0x4c8   : > { %v5170_v0 = vpop.f32.mrf.mxu1 }
 0x4c9   : > { %v5242_v13 = vmax.f32 %v5232_v8, 0.0  ;;  %v5191_v38 = vadd.f32 %v5170_v0, %v5067_v15  ;;  %v4932_v34 = vpop.f32.mrf.mxu3 }
 0x4cb   : > { %v5252_v25 = vmul.f32 %v5242_v13, %v11819_v56  ;;  %v5212_v5 = vmul.f32 %v12101_v29, %v5191_v38  ;;  %v4945_v56 = vadd.f32 %v4927_v35, %v4821_v36  ;;  %v5056_v13 = vpop.f32.mrf.mxu0 }
 0x4cd   : > { %5262 = vst [vmem:[#allocation5 + $0x1b] sm:$0xff] %v5252_v25  ;;  %v5223_v10 = vadd.f32 %v12106_v6, %v5212_v5  ;;  %v5069_v47 = vadd.f32 %v5051_v14, %v4945_v56  ;;  %v5309_v25 = vpack.c.bf16 %v12146_v62, %v12146_v62  ;;  %v5205_v56 = vld [vmem:[#allocation3 + $0x43] sm:$0xff] }
 0x4cf   : > { %v5233_v2 = vadd.f32 %v5223_v10, %v5201_v22  ;;  %v5392_v10 = vsel %vm518_vm0, %v5309_v25, 0  ;;  %v10071_v25 = vld [vmem:[%s12794_s4 + $0x8] sm:$0xff] }
 0x4d0   : > { %v5173_v33 = vpop.f32.mrf.mxu1  ;;  %5395 = vmatpush.bf16.msra.mxu2 %v5392_v10  ;;  %v10102_v10 = vld [vmem:[%s12792_s2 + $0x530] sm:$0xff] }
 0x4d1   : > { %v5243_v63 = vmax.f32 %v5233_v2, 0.0  ;;  %v5192_v37 = vadd.f32 %v5173_v33, %v5068_v4 }
 0x4d3   : > { %v5253_v61 = vmul.f32 %v5243_v63, %v11829_v27  ;;  %v5213_v7 = vmul.f32 %v12101_v29, %v5192_v37  ;;  %v4575_v27 = vadd.f32 %v12071_v30, %v4451_v45  ;;  %v4328_v30 = vadd.f32 %v12078_v60, %v12073_v50 }
 0x4d5   : > { %5263 = vst [vmem:[#allocation5 + $0x23] sm:$0xff] %v5253_v61  ;;  %v5224_v46 = vadd.f32 %v12106_v6, %v5213_v7  ;;  %v4699_v52 = vadd.f32 %v12088_v26, %v4575_v27  ;;  %v4453_v5 = vadd.f32 %v12082_v24, %v4328_v30  ;;  %v5059_v24 = vpop.f32.mrf.mxu0 }
 0x4d7   : > { %v5234_v20 = vadd.f32 %v5224_v46, %v5202_v57  ;;  %v4823_v12 = vadd.f32 %v4808_v19, %v4699_v52  ;;  %v4577_v36 = vadd.f32 %v12084_v44, %v4453_v5  ;;  %v10072_v5 = vld [vmem:[%s12794_s4 + $0x10] sm:$0xff] }
 0x4d8   : > { %v5175_v53 = vpop.f32.mrf.mxu1 }
 0x4d9   : > { %v5244_v51 = vmax.f32 %v5234_v20, 0.0  ;;  %v5193_v18 = vadd.f32 %v5175_v53, %v5069_v47  ;;  %v4947_v38 = vadd.f32 %v4932_v34, %v4823_v12  ;;  %v4701_v48 = vadd.f32 %v12095_v54, %v4577_v36  ;;  %v5206_v20 = vld [vmem:[#allocation3 + $0x4b] sm:$0xff]  ;;  %v10099_v36 = vld [vmem:[%s12792_s2 + $0x518] sm:$0xff] }
 0x4db   : > { %v5254_v39 = vmul.f32 %v5244_v51, %v11844_v42  ;;  %v5214_v11 = vmul.f32 %v12101_v29, %v5193_v18  ;;  %v4811_v42 = vpop.f32.mrf.mxu2  ;;  %v5071_v14 = vadd.f32 %v5056_v13, %v4947_v38  ;;  %v5292_v38 = vld [vmem:[#allocation5 + $0x10] sm:$0xff] }
 0x4dc   : > { %v4824_v50 = vadd.f32 %v4811_v42, %v12090_v9  ;;  %v5293_v42 = vld [vmem:[#allocation5 + $0x18] sm:$0xff] }
 0x4dd   : > { %5264 = vst [vmem:[#allocation5 + $0x2b] sm:$0xff] %v5254_v39  ;;  %v5225_v41 = vadd.f32 %v12106_v6, %v5214_v11  ;;  %v5061_v54 = vpop.f32.mrf.mxu0 }
 0x4df   : > { %v5235_v15 = vadd.f32 %v5225_v41, %v5203_v1 }
 0x4e0   : > { %v5178_v59 = vpop.f32.mrf.mxu1 }
 0x4e1   : > { %v5245_v8 = vmax.f32 %v5235_v15, 0.0  ;;  %v5194_v0 = vadd.f32 %v5178_v59, %v5070_v58 }
 0x4e3   : > { %v5255_v35 = vmul.f32 %v5245_v8, %v11872_v28  ;;  %v5215_v26 = vmul.f32 %v12101_v29, %v5194_v0  ;;  %v4935_v28 = vpop.f32.mrf.mxu3  ;;  %v4813_v37 = vpop.f32.mrf.mxu2 }
 0x4e4   : > { %v4948_v2 = vadd.f32 %v4935_v28, %v4824_v50  ;;  %v4825_v7 = vadd.f32 %v4813_v37, %v4701_v48  ;;  %v5295_v30 = vld [vmem:[#allocation5 + $0x28] sm:$0xff]  ;;  %v10076_v50 = vld [vmem:[%s12794_s4 + $0x30] sm:$0xff]  ;;  %v10101_v28 = vld [vmem:[%s12792_s2 + $0x528] sm:$0xff] }
 0x4e5   : > { %5265 = vst [vmem:[#allocation5 + $0x33] sm:$0xff] %v5255_v35  ;;  %v5226_v23 = vadd.f32 %v12106_v6, %v5215_v26  ;;  %v5291_v35 = vld [vmem:[#allocation5 + $0x8] sm:$0xff]  ;;  %v10092_v37 = vld [vmem:[%s12792_s2 + $0x4e0] sm:$0xff] }
 0x4e6   : > { %v5072_v61 = vadd.f32 %v5059_v24, %v4948_v2  ;;  %v5303_v26 = vpack.c.bf16 %v5291_v35, %v12146_v62  ;;  %v10073_v62 = vld [vmem:[%s12794_s4 + $0x18] sm:$0xff]  ;;  %v10094_v2 = vld [vmem:[%s12792_s2 + $0x4f0] sm:$0xff]  ;;  %v10097_v24 = vld [vmem:[%s12792_s2 + $0x508] sm:$0xff] }
 0x4e7   : > { %v5236_v60 = vadd.f32 %v5226_v23, %v5204_v17  ;;  %v10070_v23 = vld [vmem:[%s12794_s4] sm:$0xff]  ;;  %v10134_v35 = vld [vmem:[%s12792_s2 + $0x630] sm:$0xff] }
 0x4e8   : > { %v5180_v43 = vpop.f32.mrf.mxu1  ;;  %v10074_v17 = vld [vmem:[%s12794_s4 + $0x20] sm:$0xff] }
 0x4e9   : > { %v5246_v22 = vmax.f32 %v5236_v60, 0.0  ;;  %v5195_v4 = vadd.f32 %v5180_v43, %v5071_v14  ;;  %v10075_v14 = vld [vmem:[%s12794_s4 + $0x28] sm:$0xff]  ;;  %v10103_v60 = vld [vmem:[%s12792_s2 + $0x538] sm:$0xff]  ;;  %v10096_v48 = vld [vmem:[%s12792_s2 + $0x500] sm:$0xff] }
 0x4ea   : > { %5724 = vmatpush.bf16.msra.mxu0 %v10103_v60  ;;  %v10077_v43 = vld [vmem:[%s12794_s4 + $0x38] sm:$0xff] }
 0x4eb   : > { %v5256_v33 = vmul.f32 %v5246_v22, %v11915_v32  ;;  %v5216_v63 = vmul.f32 %v12101_v29, %v5195_v4  ;;  %v4937_v44 = vpop.f32.mrf.mxu3  ;;  %v10100_v22 = vld [vmem:[%s12792_s2 + $0x520] sm:$0xff]  ;;  %v10095_v4 = vld [vmem:[%s12792_s2 + $0x4f8] sm:$0xff] }
 0x4ec   : > { %v4949_v47 = vadd.f32 %v4937_v44, %v4825_v7  ;;  %5570 = vmatpush.bf16.msra.mxu3 %v10095_v4  ;;  %v10089_v7 = vld [vmem:[%s12792_s2 + $0x4c8] sm:$0xff]  ;;  %v10151_v60 = vld [vmem:[%s12792_s2 + $0x6b8] sm:$0xff]  ;;  %v10114_v4 = vld [vmem:[%s12792_s2 + $0x590] sm:$0xff] }
 0x4ed   : > { %5266 = vst [vmem:[#allocation5 + $0x3b] sm:$0xff] %v5256_v33  ;;  %v5227_v9 = vadd.f32 %v12106_v6, %v5216_v63  ;;  %v10098_v33 = vld [vmem:[%s12792_s2 + $0x510] sm:$0xff]  ;;  %v10093_v63 = vld [vmem:[%s12792_s2 + $0x4e8] sm:$0xff] }
 0x4ee   : > { %v5073_v19 = vadd.f32 %v5061_v54, %v4949_v47  ;;  %5725 = vmatpush.bf16.msra.mxu0 %v10102_v10  ;;  %v10086_v47 = vld [vmem:[%s12792_s2 + $0x4b0] sm:$0xff]  ;;  %v10115_v10 = vld [vmem:[%s12792_s2 + $0x598] sm:$0xff] }
 0x4ef   : > { %v5237_v40 = vadd.f32 %v5227_v9, %v5205_v56  ;;  %v10091_v9 = vld [vmem:[%s12792_s2 + $0x4d8] sm:$0xff] }
 0x4f0   : > { %v5183_v46 = vpop.f32.mrf.mxu1  ;;  %5571 = vmatpush.bf16.msra.mxu3 %v10094_v2  ;;  %v10149_v2 = vld [vmem:[%s12792_s2 + $0x6a8] sm:$0xff] }
 0x4f1   : > { %v5247_v57 = vmax.f32 %v5237_v40, 0.0  ;;  %v5196_v45 = vadd.f32 %v5183_v46, %v5072_v61  ;;  %v10090_v61 = vld [vmem:[%s12792_s2 + $0x4d0] sm:$0xff]  ;;  %v10088_v46 = vld [vmem:[%s12792_s2 + $0x4c0] sm:$0xff] }
 0x4f2   : > { %5726 = vmatpush.bf16.msra.mxu0 %v10101_v28  ;;  %v10131_v28 = vld [vmem:[%s12792_s2 + $0x618] sm:$0xff] }
 0x4f3   : > { %v5257_v32 = vmul.f32 %v5247_v57, %v11947_v55  ;;  %v5217_v31 = vmul.f32 %v12101_v29, %v5196_v45  ;;  %v5207_v55 = vld [vmem:[#allocation3 + $0x53] sm:$0xff] }
 0x4f4   : > { %v5297_v0 = vld [vmem:[#allocation5 + $0x38] sm:$0xff]  ;;  %5572 = vmatpush.bf16.msra.mxu3 %v10093_v63  ;;  %v10087_v57 = vld [vmem:[%s12792_s2 + $0x4b8] sm:$0xff] }
 0x4f5   : > { %5267 = vst [vmem:[#allocation5 + $0x43] sm:$0xff] %v5257_v32  ;;  %v5228_v16 = vadd.f32 %v12106_v6, %v5217_v31  ;;  %v10111_v45 = vld [vmem:[%s12792_s2 + $0x578] sm:$0xff]  ;;  %v10110_v32 = vld [vmem:[%s12792_s2 + $0x570] sm:$0xff]  ;;  %v10085_v31 = vld [vmem:[%s12792_s2 + $0x4a8] sm:$0xff] }
 0x4f6   : > { %5727 = vmatpush.bf16.msra.mxu0 %v10100_v22  ;;  %5815 = vmatpush.bf16.msra.mxu1 %v10111_v45  ;;  %v10150_v22 = vld [vmem:[%s12792_s2 + $0x6b0] sm:$0xff]  ;;  %v10129_v63 = vld [vmem:[%s12792_s2 + $0x608] sm:$0xff] }
 0x4f7   : > { %v5238_v53 = vadd.f32 %v5228_v16, %v5206_v20  ;;  %v10109_v16 = vld [vmem:[%s12792_s2 + $0x568] sm:$0xff]  ;;  %v10142_v45 = vld [vmem:[%s12792_s2 + $0x670] sm:$0xff] }
 0x4f8   : > { %v5185_v51 = vpop.f32.mrf.mxu1  ;;  %5573 = vmatpush.bf16.msra.mxu3 %v10092_v37 }
 0x4f9   : > { %v5248_v18 = vmax.f32 %v5238_v53, 0.0  ;;  %v5197_v27 = vadd.f32 %v5185_v51, %v5073_v19  ;;  %v10127_v51 = vld [vmem:[%s12792_s2 + $0x5f8] sm:$0xff] }
 0x4fa   : > { %5728 = vmatpush.bf16.msra.mxu0 %v10099_v36  ;;  %5816 = vmatpush.bf16.msra.mxu1 %v10110_v32  ;;  %v10130_v36 = vld [vmem:[%s12792_s2 + $0x610] sm:$0xff]  ;;  %v10141_v32 = vld [vmem:[%s12792_s2 + $0x668] sm:$0xff] }
 0x4fb   : > { %v5258_v3 = vmul.f32 %v5248_v18, %v11978_v49  ;;  %v5218_v39 = vmul.f32 %v12101_v29, %v5197_v27  ;;  %v5296_v49 = vld [vmem:[#allocation5 + $0x30] sm:$0xff] }
 0x4fc   : > { %v5298_v59 = vld [vmem:[#allocation5 + $0x40] sm:$0xff]  ;;  %v5306_v29 = vpack.c.bf16 %v5297_v0, %v5296_v49  ;;  %5574 = vmatpush.bf16.msra.mxu3 %v10091_v9  ;;  %v10084_v18 = vld [vmem:[%s12792_s2 + $0x4a0] sm:$0xff] }
 0x4fd   : > { %5268 = vst [vmem:[#allocation5 + $0x4b] sm:$0xff] %v5258_v3  ;;  %v5229_v11 = vadd.f32 %v12106_v6, %v5218_v39  ;;  %v5294_v6 = vld [vmem:[#allocation5 + $0x20] sm:$0xff]  ;;  %v10108_v27 = vld [vmem:[%s12792_s2 + $0x560] sm:$0xff]  ;;  %v10083_v3 = vld [vmem:[%s12792_s2 + $0x498] sm:$0xff] }
 0x4fe   : > { %v5305_v13 = vpack.c.bf16 %v5295_v30, %v5294_v6  ;;  %5729 = vmatpush.bf16.msra.mxu0 %v10098_v33  ;;  %5817 = vmatpush.bf16.msra.mxu1 %v10109_v16  ;;  %v10107_v39 = vld [vmem:[%s12792_s2 + $0x558] sm:$0xff]  ;;  %v10124_v0 = vld [vmem:[%s12792_s2 + $0x5e0] sm:$0xff]  ;;  %v10113_v33 = vld [vmem:[%s12792_s2 + $0x588] sm:$0xff] }
 0x4ff   : > { %v5239_v52 = vadd.f32 %v5229_v11, %v5207_v55  ;;  %v10126_v55 = vld [vmem:[%s12792_s2 + $0x5f0] sm:$0xff]  ;;  %v10080_v49 = vld [vmem:[%s12792_s2 + $0x480] sm:$0xff]  ;;  %v10123_v30 = vld [vmem:[%s12792_s2 + $0x5d8] sm:$0xff] }
 0x500   : > { %5575 = vmatpush.bf16.msra.mxu3 %v10090_v61  ;;  %v10119_v6 = vld [vmem:[%s12792_s2 + $0x5b8] sm:$0xff]  ;;  %v10148_v9 = vld [vmem:[%s12792_s2 + $0x6a0] sm:$0xff] }
 0x501   : > { %v5249_v41 = vmax.f32 %v5239_v52, 0.0  ;;  %v10082_v52 = vld [vmem:[%s12792_s2 + $0x490] sm:$0xff]  ;;  %v10112_v61 = vld [vmem:[%s12792_s2 + $0x580] sm:$0xff] }
 0x502   : > { %5730 = vmatpush.bf16.msra.mxu0 %v10097_v24  ;;  %5818 = vmatpush.bf16.msra.mxu1 %v10108_v27  ;;  %v10139_v27 = vld [vmem:[%s12792_s2 + $0x658] sm:$0xff] }
 0x503   : > { %v5259_v34 = vmul.f32 %v5249_v41, %v11992_v21  ;;  %v5304_v21 = vpack.c.bf16 %v5293_v42, %v5292_v38  ;;  %v10106_v41 = vld [vmem:[%s12792_s2 + $0x550] sm:$0xff] }
 0x504   : > { %v5299_v15 = vld [vmem:[#allocation5 + $0x48] sm:$0xff]  ;;  %5576 = vmatpush.bf16.msra.mxu3 %v10089_v7  ;;  %v10122_v38 = vld [vmem:[%s12792_s2 + $0x5d0] sm:$0xff]  ;;  %v10128_v7 = vld [vmem:[%s12792_s2 + $0x600] sm:$0xff] }
 0x505   : > { %5269 = vst [vmem:[#allocation5 + $0x53] sm:$0xff] %v5259_v34  ;;  %v5307_v8 = vpack.c.bf16 %v5299_v15, %v5298_v59  ;;  %v10125_v34 = vld [vmem:[%s12792_s2 + $0x5e8] sm:$0xff] }
 0x506   : > { %5731 = vmatpush.bf16.msra.mxu0 %v10096_v48  ;;  %5819 = vmatpush.bf16.msra.mxu1 %v10107_v39 }
 0x508   : > { %5577 = vmatpush.bf16.msra.mxu3 %v10088_v46 }
 0x50a   : > { %5997 = vmatpush.bf16.msrb.mxu0 %v10127_v51  ;;  %5820 = vmatpush.bf16.msra.mxu1 %v10106_v41 }
 0x50c   : > { %v5300_v1 = vld [vmem:[#allocation5 + $0x50] sm:$0xff]  ;;  %v5301_v58 = vld [vmem:[#allocation5 + $0x58] sm:$0xff]  ;;  %5636 = vmatpush.bf16.msrb.mxu3 %v10087_v57  ;;  %v10146_v57 = vld [vmem:[%s12792_s2 + $0x690] sm:$0xff] }
 0x50d   : > { %v5308_v12 = vpack.c.bf16 %v5301_v58, %v5300_v1  ;;  %v10081_v58 = vld [vmem:[%s12792_s2 + $0x488] sm:$0xff] }
 0x50e   : > { %5998 = vmatpush.bf16.msrb.mxu0 %v10126_v55 }
 0x50f   : > { %5396 = vmatpush.bf16.msra.mxu2 %v5308_v12  ;;  %v10105_v12 = vld [vmem:[%s12792_s2 + $0x548] sm:$0xff] }
 0x510   : > { %5637 = vmatpush.bf16.msrb.mxu3 %v10086_v47  ;;  %5821 = vmatpush.bf16.msra.mxu1 %v10105_v12  ;;  %v10145_v47 = vld [vmem:[%s12792_s2 + $0x688] sm:$0xff]  ;;  %v10136_v12 = vld [vmem:[%s12792_s2 + $0x640] sm:$0xff] }
 0x512   : > { %5999 = vmatpush.bf16.msrb.mxu0 %v10125_v34 }
 0x513   : > { %5397 = vmatpush.bf16.msra.mxu2 %v5307_v8 }
 0x514   : > { %5638 = vmatpush.bf16.msrb.mxu3 %v10085_v31 }
 0x516   : > { %6000 = vmatpush.bf16.msrb.mxu0 %v10124_v0 }
 0x517   : > { %5398 = vmatpush.bf16.msra.mxu2 %v5306_v29  ;;  %v10104_v29 = vld [vmem:[%s12792_s2 + $0x540] sm:$0xff] }
 0x518   : > { %5639 = vmatpush.bf16.msrb.mxu3 %v10084_v18  ;;  %5822 = vmatpush.bf16.msra.mxu1 %v10104_v29  ;;  %v10140_v18 = vld [vmem:[%s12792_s2 + $0x660] sm:$0xff] }
 0x51a   : > { %6001 = vmatpush.bf16.msrb.mxu0 %v10123_v30 }
 0x51b   : > { %5399 = vmatpush.bf16.msra.mxu2 %v5305_v13  ;;  %v10135_v13 = vld [vmem:[%s12792_s2 + $0x638] sm:$0xff] }
 0x51c   : > { %5640 = vmatpush.bf16.msrb.mxu3 %v10083_v3  ;;  %6088 = vmatpush.bf16.msrb.mxu1 %v10135_v13 }
 0x51e   : > { %6002 = vmatpush.bf16.msrb.mxu0 %v10122_v38 }
 0x51f   : > { %5400 = vmatpush.bf16.msra.mxu2 %v5304_v21  ;;  %v10118_v21 = vld [vmem:[%s12792_s2 + $0x5b0] sm:$0xff] }
 0x520   : > { %5641 = vmatpush.bf16.msrb.mxu3 %v10082_v52  ;;  %6089 = vmatpush.bf16.msrb.mxu1 %v10134_v35 }
 0x523   : > { %5401 = vmatpush.bf16.msra.mxu2 %v5303_v26  ;;  %v10121_v26 = vld [vmem:[%s12792_s2 + $0x5c8] sm:$0xff] }
 0x524   : > { %5642 = vmatpush.bf16.msrb.mxu3 %v10081_v58  ;;  %6003 = vmatpush.bf16.msrb.mxu0 %v10121_v26 }
 0x526   : > { %8892 = vmatmul.msk.bf16.vlgmr.msra.gmra.mxu2 %vm5360_vm3, %v10070_v23  ;;  %v10117_v23 = vld [vmem:[%s12792_s2 + $0x5a8] sm:$0xff] }
 0x528   : > { %5643 = vmatpush.bf16.msrb.mxu3 %v10080_v49 }
 0x536   : > { %8893 = vmatmul.msk.bf16.gmra.mxu2 %vm5360_vm3, %v10071_v25  ;;  %v10133_v25 = vld [vmem:[%s12792_s2 + $0x628] sm:$0xff] }
 0x537   : > { %6090 = vmatpush.bf16.msrb.mxu1 %v10133_v25 }
 0x546   : > { %8894 = vmatmul.msk.bf16.gmra.mxu2 %vm5360_vm3, %v10072_v5 }
 0x556   : > { %8895 = vmatmul.msk.bf16.gmra.mxu2 %vm5360_vm3, %v10073_v62 }
 0x566   : > { %8896 = vmatmul.msk.bf16.gmra.mxu2 %vm5360_vm3, %v10074_v17  ;;  %v10120_v17 = vld [vmem:[%s12792_s2 + $0x5c0] sm:$0xff] }
 0x567   : > { %6004 = vmatpush.bf16.msrb.mxu0 %v10120_v17 }
 0x576   : > { %8897 = vmatmul.msk.bf16.gmra.mxu2 %vm5360_vm3, %v10075_v14  ;;  %v10116_v14 = vld [vmem:[%s12792_s2 + $0x5a0] sm:$0xff] }
 0x586   : > { %8898 = vmatmul.msk.bf16.gmra.mxu2 %vm5360_vm3, %v10076_v50  ;;  %v10132_v50 = vld [vmem:[%s12792_s2 + $0x620] sm:$0xff] }
 0x587   : > { %6091 = vmatpush.bf16.msrb.mxu1 %v10132_v50 }
 0x58b   : > { %6092 = vmatpush.bf16.msrb.mxu1 %v10131_v28  ;;  %v10191_v28 = vld [vmem:[%s12792_s2 + $0x7f8] sm:$0xff] }
 0x58c   : > { %6753 = vmatpush.bf16.msrb.mxu2 %v10191_v28 }
 0x58f   : > { %6093 = vmatpush.bf16.msrb.mxu1 %v10130_v36 }
 0x593   : > { %6094 = vmatpush.bf16.msrb.mxu1 %v10129_v63 }
 0x596   : > { %8899 = vmatmul.msk.bf16.gmra.mxu2 %vm5360_vm3, %v10077_v43 }
 0x597   : > { %6095 = vmatpush.bf16.msrb.mxu1 %v10128_v7 }
 0x5a9   : > { %v12237_v56 = vpop.f32.mrf.mxu2 }
 0x5aa   : > { %5453 = vst [vmem:[#allocation6] sm:$0xff] %v12237_v56 }
 0x5b1   : > { %v12246_v40 = vpop.f32.mrf.mxu2 }
 0x5b2   : > { %5454 = vst [vmem:[#allocation6 + $0x8] sm:$0xff] %v12246_v40  ;;  %v5481_v37 = vpack.c.bf16 %v12246_v40, %v12237_v56  ;;  %v10147_v56 = vld [vmem:[%s12792_s2 + $0x698] sm:$0xff] }
 0x5b3   : > { %v10143_v40 = vld [vmem:[%s12792_s2 + $0x678] sm:$0xff] }
 0x5b9   : > { %v12258_v44 = vpop.f32.mrf.mxu2  ;;  %v5654_v20 = vld [vmem:[#allocation6 + $0x1] sm:$0xff] }
 0x5ba   : > { %5455 = vst [vmem:[#allocation6 + $0x10] sm:$0xff] %v12258_v44  ;;  %v6200_v49 = vld [vmem:[#allocation6 + $0x7] sm:$0xff] }
 0x5c1   : > { %v5410_v54 = vpop.f32.mrf.mxu2  ;;  %v5655_v19 = vld [vmem:[#allocation6 + $0x9] sm:$0xff] }
 0x5c2   : > { %5456 = vst [vmem:[#allocation6 + $0x18] sm:$0xff] %v5410_v54  ;;  %v5657_v53 = vpack.c.bf16 %v5655_v19, %v5654_v20  ;;  %v10144_v20 = vld [vmem:[%s12792_s2 + $0x680] sm:$0xff] }
 0x5c3   : > { %v6019_v55 = vld [vmem:[#allocation6 + $0xe] sm:$0xff] }
 0x5c4   : > { %5732 = vmatmul.bf16.vlgmr.msra.gmra.mxu0 %v5657_v53  ;;  %v5482_v53 = vpack.c.bf16 %v12258_v44, %v12258_v44  ;;  %v10138_v44 = vld [vmem:[%s12792_s2 + $0x650] sm:$0xff] }
 0x5c5   : > { %6270 = vmatpush.bf16.msra.mxu0 %v10151_v60  ;;  %v10078_v60 = vld [vmem:[%s12794_s4 + $0x40] sm:$0xff] }
 0x5c6   : > { %8900 = vmatmul.msk.bf16.gmra.mxu2 %vm5360_vm3, %v10078_v60  ;;  %v10169_v60 = vld [vmem:[%s12792_s2 + $0x748] sm:$0xff] }
 0x5c9   : > { %v5413_v11 = vpop.f32.mrf.mxu2  ;;  %v5656_v1 = vld [vmem:[#allocation6 + $0x11] sm:$0xff]  ;;  %6271 = vmatpush.bf16.msra.mxu0 %v10150_v22 }
 0x5ca   : > { %5457 = vst [vmem:[#allocation6 + $0x20] sm:$0xff] %v5413_v11  ;;  %v5658_v8 = vpack.c.bf16 %v5656_v1, %v5656_v1  ;;  %v6018_v1 = vld [vmem:[#allocation6 + $0x6] sm:$0xff]  ;;  %v6020_v0 = vld [vmem:[#allocation6 + $0x16] sm:$0xff] }
 0x5cb   : > { %v6021_v58 = vpack.c.bf16 %v6019_v55, %v6018_v1  ;;  %v6202_v13 = vld [vmem:[#allocation6 + $0x17] sm:$0xff]  ;;  %v10164_v1 = vld [vmem:[%s12792_s2 + $0x720] sm:$0xff] }
 0x5cc   : > { %v10157_v55 = vld [vmem:[%s12792_s2 + $0x6e8] sm:$0xff] }
 0x5cd   : > { %6272 = vmatpush.bf16.msra.mxu0 %v10149_v2 }
 0x5d1   : > { %v5415_v15 = vpop.f32.mrf.mxu2  ;;  %6273 = vmatpush.bf16.msra.mxu0 %v10148_v9 }
 0x5d2   : > { %5458 = vst [vmem:[#allocation6 + $0x28] sm:$0xff] %v5415_v15  ;;  %v5503_v59 = vpack.c.bf16 %v5415_v15, %v5413_v11  ;;  %v10137_v11 = vld [vmem:[%s12792_s2 + $0x648] sm:$0xff] }
 0x5d4   : > { %5578 = vmatmul.bf16.vlgmr.msra.gmra.mxu3 %v5503_v59  ;;  %5737 = vmatmul.bf16.gmra.mxu0 %v5658_v8  ;;  %v6201_v59 = vld [vmem:[#allocation6 + $0xf] sm:$0xff] }
 0x5d5   : > { %5906 = vmatpush.bf16.msra.mxu3 %v10119_v6  ;;  %6274 = vmatpush.bf16.msra.mxu0 %v10147_v56  ;;  %v6203_v30 = vpack.c.bf16 %v6201_v59, %v6200_v49  ;;  %v6022_v6 = vpack.c.bf16 %v6020_v0, %v6020_v0  ;;  %v10163_v0 = vld [vmem:[%s12792_s2 + $0x718] sm:$0xff] }
 0x5d6   : > { %v10155_v49 = vld [vmem:[%s12792_s2 + $0x6d8] sm:$0xff] }
 0x5d9   : > { %v5418_v42 = vpop.f32.mrf.mxu2  ;;  %5907 = vmatpush.bf16.msra.mxu3 %v10118_v21  ;;  %6275 = vmatpush.bf16.msra.mxu0 %v10146_v57  ;;  %v6109_v38 = vld [vmem:[#allocation6 + $0x26] sm:$0xff]  ;;  %v6204_v21 = vpack.c.bf16 %v6202_v13, %v6202_v13 }
 0x5da   : > { %5459 = vst [vmem:[#allocation6 + $0x30] sm:$0xff] %v5418_v42  ;;  %v5504_v62 = vpack.c.bf16 %v5418_v42, %v5418_v42 }
 0x5dd   : > { %5908 = vmatpush.bf16.msra.mxu3 %v10117_v23  ;;  %6276 = vmatpush.bf16.msra.mxu0 %v10145_v47  ;;  %v10189_v47 = vld [vmem:[%s12792_s2 + $0x7e8] sm:$0xff] }
 0x5e1   : > { %v5420_v5 = vpop.f32.mrf.mxu2  ;;  %5909 = vmatpush.bf16.msra.mxu3 %v10116_v14  ;;  %6277 = vmatpush.bf16.msra.mxu0 %v10144_v20  ;;  %v6110_v42 = vld [vmem:[#allocation6 + $0x2e] sm:$0xff]  ;;  %v10159_v20 = vld [vmem:[%s12792_s2 + $0x6f8] sm:$0xff] }
 0x5e2   : > { %5460 = vst [vmem:[#allocation6 + $0x38] sm:$0xff] %v5420_v5  ;;  %v6112_v35 = vpack.c.bf16 %v6110_v42, %v6109_v38  ;;  %v10162_v38 = vld [vmem:[%s12792_s2 + $0x710] sm:$0xff] }
 0x5e4   : > { %5583 = vmatmul.bf16.gmra.mxu3 %v5504_v62 }
 0x5e5   : > { %5910 = vmatpush.bf16.msra.mxu3 %v10115_v10 }
 0x5e9   : > { %v5423_v43 = vpop.f32.mrf.mxu2  ;;  %5911 = vmatpush.bf16.msra.mxu3 %v10114_v4  ;;  %v6111_v26 = vld [vmem:[#allocation6 + $0x36] sm:$0xff] }
 0x5ea   : > { %5461 = vst [vmem:[#allocation6 + $0x40] sm:$0xff] %v5423_v43  ;;  %v6113_v25 = vpack.c.bf16 %v6111_v26, %v6111_v26 }
 0x5ed   : > { %5912 = vmatpush.bf16.msra.mxu3 %v10113_v33  ;;  %v10190_v33 = vld [vmem:[%s12792_s2 + $0x7f0] sm:$0xff] }
 0x5ee   : > { %6754 = vmatpush.bf16.msrb.mxu2 %v10190_v33 }
 0x5f1   : > { %v5425_v24 = vpop.f32.mrf.mxu2  ;;  %5913 = vmatpush.bf16.msra.mxu3 %v10112_v61 }
 0x5f2   : > { %5462 = vst [vmem:[#allocation6 + $0x48] sm:$0xff] %v5425_v24  ;;  %v5748_v48 = vpack.c.bf16 %v5425_v24, %v5423_v43  ;;  %v10079_v24 = vld [vmem:[%s12794_s4 + $0x48] sm:$0xff]  ;;  %6755 = vmatpush.bf16.msrb.mxu2 %v10189_v47  ;;  %v10198_v47 = vld [vmem:[%s12792_s2 + $0x830] sm:$0xff] }
 0x5f3   : > { %8901 = vmatmul.msk.bf16.gmra.mxu2 %vm5360_vm3, %v10079_v24  ;;  %v10183_v24 = vld [vmem:[%s12792_s2 + $0x7b8] sm:$0xff] }
 0x5f4   : > { %5644 = vmatmul.bf16.vlgmr.msrb.gmra.mxu3 %v5481_v37  ;;  %5823 = vmatmul.bf16.vlgmr.msra.gmra.mxu1 %v5748_v48 }
 0x5f5   : > { %6179 = vmatpush.bf16.msrb.mxu3 %v10143_v40 }
 0x5f9   : > { %v5428_v46 = vpop.f32.mrf.mxu2  ;;  %6180 = vmatpush.bf16.msrb.mxu3 %v10142_v45  ;;  %v5927_v16 = vld [vmem:[#allocation6 + $0x41] sm:$0xff] }
 0x5fa   : > { %5463 = vst [vmem:[#allocation6 + $0x50] sm:$0xff] %v5428_v46  ;;  %v5749_v51 = vpack.c.bf16 %v5428_v46, %v5428_v46 }
 0x5fd   : > { %6181 = vmatpush.bf16.msrb.mxu3 %v10141_v32 }
 0x601   : > { %v5430_v31 = vpop.f32.mrf.mxu2  ;;  %v5928_v54 = vld [vmem:[#allocation6 + $0x49] sm:$0xff]  ;;  %6182 = vmatpush.bf16.msrb.mxu3 %v10140_v18  ;;  %v10158_v18 = vld [vmem:[%s12792_s2 + $0x6f0] sm:$0xff] }
 0x602   : > { %5464 = vst [vmem:[#allocation6 + $0x58] sm:$0xff] %v5430_v31  ;;  %v5930_v19 = vpack.c.bf16 %v5928_v54, %v5927_v16  ;;  %v10167_v54 = vld [vmem:[%s12792_s2 + $0x738] sm:$0xff] }
 0x603   : > { %6417 = vmatpush.bf16.msra.mxu1 %v10167_v54  ;;  %v10206_v54 = vld [vmem:[%s12792_s2 + $0x870] sm:$0xff] }
 0x604   : > { %6005 = vmatmul.bf16.vlgmr.msrb.gmra.mxu0 %v5930_v19  ;;  %5649 = vmatmul.bf16.gmra.mxu3 %v5482_v53  ;;  %v10175_v19 = vld [vmem:[%s12792_s2 + $0x778] sm:$0xff] }
 0x605   : > { %5828 = vmatmul.bf16.gmra.mxu1 %v5749_v51  ;;  %6183 = vmatpush.bf16.msrb.mxu3 %v10139_v27  ;;  %v10166_v51 = vld [vmem:[%s12792_s2 + $0x730] sm:$0xff] }
 0x606   : > { %6571 = vmatpush.bf16.msrb.mxu0 %v10175_v19  ;;  %v10174_v27 = vld [vmem:[%s12792_s2 + $0x770] sm:$0xff] }
 0x607   : > { %6418 = vmatpush.bf16.msra.mxu1 %v10166_v51  ;;  %v10220_v51 = vld [vmem:[%s12792_s2 + $0x8e0] sm:$0xff] }
 0x609   : > { %v5433_v3 = vpop.f32.mrf.mxu2  ;;  %6184 = vmatpush.bf16.msrb.mxu3 %v10138_v44  ;;  %v5929_v39 = vld [vmem:[#allocation6 + $0x51] sm:$0xff] }
 0x60a   : > { %v5931_v41 = vpack.c.bf16 %v5929_v39, %v5929_v39  ;;  %6572 = vmatpush.bf16.msrb.mxu0 %v10174_v27  ;;  %v10197_v27 = vld [vmem:[%s12792_s2 + $0x828] sm:$0xff] }
 0x60d   : > { %6185 = vmatpush.bf16.msrb.mxu3 %v10137_v11  ;;  %v10165_v11 = vld [vmem:[%s12792_s2 + $0x728] sm:$0xff] }
 0x60e   : > { %6419 = vmatpush.bf16.msra.mxu1 %v10165_v11 }
 0x611   : > { %v5435_v52 = vpop.f32.mrf.mxu2  ;;  %6186 = vmatpush.bf16.msrb.mxu3 %v10136_v12  ;;  %v10172_v12 = vld [vmem:[%s12792_s2 + $0x760] sm:$0xff] }
 0x612   : > { %v5839_v34 = vpack.c.bf16 %v5435_v52, %v5433_v3  ;;  %v10188_v3 = vld [vmem:[%s12792_s2 + $0x7e0] sm:$0xff]  ;;  %v10173_v52 = vld [vmem:[%s12792_s2 + $0x768] sm:$0xff]  ;;  %6420 = vmatpush.bf16.msra.mxu1 %v10164_v1  ;;  %v10219_v1 = vld [vmem:[%s12792_s2 + $0x8d8] sm:$0xff] }
 0x613   : > { %6756 = vmatpush.bf16.msrb.mxu2 %v10188_v3  ;;  %6573 = vmatpush.bf16.msrb.mxu0 %v10173_v52  ;;  %v6305_v52 = vpop.permute.xlu2 %6304 }
 0x614   : > { %6010 = vmatmul.bf16.gmra.mxu0 %v5931_v41  ;;  %5914 = vmatmul.bf16.vlgmr.msra.gmra.mxu3 %v5839_v34  ;;  %v10187_v34 = vld [vmem:[%s12792_s2 + $0x7d8] sm:$0xff] }
 0x615   : > { %6096 = vmatmul.bf16.vlgmr.msrb.gmra.mxu1 %v6021_v58  ;;  %6483 = vmatpush.bf16.msra.mxu3 %v10159_v20  ;;  %v10156_v58 = vld [vmem:[%s12792_s2 + $0x6e0] sm:$0xff]  ;;  %v10221_v20 = vld [vmem:[%s12792_s2 + $0x8e8] sm:$0xff] }
 0x616   : > { %6421 = vmatpush.bf16.msra.mxu1 %v10163_v0 }
 0x617   : > { %6757 = vmatpush.bf16.msrb.mxu2 %v10187_v34  ;;  %6574 = vmatpush.bf16.msrb.mxu0 %v10172_v12  ;;  %v10180_v34 = vld [vmem:[%s12792_s2 + $0x7a0] sm:$0xff] }
 0x619   : > { %v5438_v15 = vpop.f32.mrf.mxu2  ;;  %6484 = vmatpush.bf16.msra.mxu3 %v10158_v18  ;;  %v10181_v18 = vld [vmem:[%s12792_s2 + $0x7a8] sm:$0xff] }
 0x61a   : > { %v5840_v8 = vpack.c.bf16 %v5438_v15, %v5438_v15  ;;  %v10186_v15 = vld [vmem:[%s12792_s2 + $0x7d0] sm:$0xff]  ;;  %6422 = vmatpush.bf16.msra.mxu1 %v10162_v38 }
 0x61b   : > { %6758 = vmatpush.bf16.msrb.mxu2 %v10186_v15 }
 0x61d   : > { %6485 = vmatpush.bf16.msra.mxu3 %v10157_v55 }
 0x621   : > { %v5440_v29 = vpop.f32.mrf.mxu2  ;;  %6486 = vmatpush.bf16.msra.mxu3 %v10156_v58 }
 0x622   : > { %v10171_v29 = vld [vmem:[%s12792_s2 + $0x758] sm:$0xff] }
 0x623   : > { %6575 = vmatpush.bf16.msrb.mxu0 %v10171_v29 }
 0x624   : > { %6278 = vmatmul.bf16.vlgmr.msra.gmra.mxu0 %v6203_v30  ;;  %5919 = vmatmul.bf16.gmra.mxu3 %v5840_v8 }
 0x625   : > { %6101 = vmatmul.bf16.gmra.mxu1 %v6022_v6  ;;  %v10185_v6 = vld [vmem:[%s12792_s2 + $0x7c8] sm:$0xff]  ;;  %6487 = vmatpush.bf16.msra.mxu3 %v10155_v49  ;;  %v10218_v49 = vld [vmem:[%s12792_s2 + $0x8d0] sm:$0xff] }
 0x626   : > { %6759 = vmatpush.bf16.msrb.mxu2 %v10185_v6  ;;  %v10195_v6 = vld [vmem:[%s12792_s2 + $0x818] sm:$0xff] }
 0x634   : > { %6283 = vmatmul.bf16.gmra.mxu0 %v6204_v21  ;;  %6187 = vmatmul.bf16.vlgmr.msrb.gmra.mxu3 %v6112_v35  ;;  %v10154_v21 = vld [vmem:[%s12792_s2 + $0x6d0] sm:$0xff] }
 0x635   : > { %v10170_v35 = vld [vmem:[%s12792_s2 + $0x750] sm:$0xff]  ;;  %6488 = vmatpush.bf16.msra.mxu3 %v10154_v21  ;;  %v6310_v21 = vpop.permute.xlu0 %6309 }
 0x636   : > { %6576 = vmatpush.bf16.msrb.mxu0 %v10170_v35  ;;  %v10194_v35 = vld [vmem:[%s12792_s2 + $0x810] sm:$0xff] }
 0x63a   : > { %6577 = vmatpush.bf16.msrb.mxu0 %v10169_v60  ;;  %v10216_v60 = vld [vmem:[%s12792_s2 + $0x8c0] sm:$0xff] }
 0x641   : > { %v5733_v23 = vpop.f32.mrf.mxu0 }
 0x644   : > { %6192 = vmatmul.bf16.gmra.mxu3 %v6113_v25 }
 0x649   : > { %v12427_v5 = vpop.f32.mrf.mxu0 }
 0x651   : > { %v5738_v62 = vpop.f32.mrf.mxu0 }
 0x657   : > { %v5579_v17 = vpop.f32.mrf.mxu3 }
 0x659   : > { %v5740_v14 = vpop.f32.mrf.mxu0 }
 0x65a   : > { %v10161_v14 = vld [vmem:[%s12792_s2 + $0x708] sm:$0xff] }
 0x65b   : > { %6423 = vmatpush.bf16.msra.mxu1 %v10161_v14 }
 0x65f   : > { %v12429_v50 = vpop.f32.mrf.mxu3 }
 0x667   : > { %v5584_v10 = vpop.f32.mrf.mxu3 }
 0x66f   : > { %v5586_v43 = vpop.f32.mrf.mxu3 }
 0x670   : > { %v10160_v43 = vld [vmem:[%s12792_s2 + $0x700] sm:$0xff] }
 0x671   : > { %v12438_v22 = vpop.f32.mrf.mxu1  ;;  %6424 = vmatpush.bf16.msra.mxu1 %v10160_v43 }
 0x675   : > { %6662 = vmatpush.bf16.msrb.mxu1 %v10183_v24 }
 0x677   : > { %v5645_v4 = vpop.f32.mrf.mxu3 }
 0x678   : > { %v5646_v36 = vadd.f32 %v5645_v4, %v5579_v17  ;;  %v10168_v4 = vld [vmem:[%s12792_s2 + $0x740] sm:$0xff] }
 0x679   : > { %v12440_v2 = vpop.f32.mrf.mxu1  ;;  %6578 = vmatpush.bf16.msrb.mxu0 %v10168_v4  ;;  %v6315_v4 = vpop.permute.xlu1 %6314 }
 0x67a   : > { %v12445_v63 = vadd.f32 %v5733_v23, %v5646_v36  ;;  %v10184_v23 = vld [vmem:[%s12792_s2 + $0x7c0] sm:$0xff]  ;;  %v10222_v36 = vld [vmem:[%s12792_s2 + $0x8f0] sm:$0xff] }
 0x67b   : > { %6760 = vmatpush.bf16.msrb.mxu2 %v10184_v23 }
 0x67c   : > { %v5833_v42 = vadd.f32 %v12438_v22, %v12445_v63  ;;  %v10152_v22 = vld [vmem:[%s12792_s2 + $0x6c0] sm:$0xff] }
 0x67f   : > { %v5647_v37 = vpop.f32.mrf.mxu3 }
 0x680   : > { %v5648_v13 = vadd.f32 %v5647_v37, %v12429_v50  ;;  %v10153_v50 = vld [vmem:[%s12792_s2 + $0x6c8] sm:$0xff]  ;;  %v10199_v37 = vld [vmem:[%s12792_s2 + $0x838] sm:$0xff] }
 0x681   : > { %v12451_v48 = vpop.f32.mrf.mxu0  ;;  %6489 = vmatpush.bf16.msra.mxu3 %v10153_v50 }
 0x682   : > { %v12453_v9 = vpop.f32.mrf.mxu1 }
 0x685   : > { %6490 = vmatpush.bf16.msra.mxu3 %v10152_v22 }
 0x687   : > { %v5650_v61 = vpop.f32.mrf.mxu3 }
 0x688   : > { %v5651_v7 = vadd.f32 %v5650_v61, %v5584_v10 }
 0x689   : > { %v12455_v56 = vpop.f32.mrf.mxu0  ;;  %6844 = vmatpush.bf16.msrb.mxu3 %v10199_v37 }
 0x68a   : > { %v12457_v40 = vadd.f32 %v5738_v62, %v5651_v7  ;;  %v5831_v46 = vpop.f32.mrf.mxu1  ;;  %v5743_v62 = vadd.f32 %v12427_v5, %v5648_v13  ;;  %v10223_v5 = vld [vmem:[%s12792_s2 + $0x8f8] sm:$0xff]  ;;  %v12590_v7 = vld [vmem:[%s12795_s5 + $0x3] ss:$0 sm:$0xff] }
 0x68b   : > { %7117 = vmatpush.bf16.msra.mxu2 %v10223_v5  ;;  %v10203_v13 = vld [vmem:[%s12792_s2 + $0x858] sm:$0xff] }
 0x68c   : > { %v5834_v28 = vadd.f32 %v12440_v2, %v5743_v62  ;;  %v5835_v19 = vadd.f32 %v12453_v9, %v12457_v40  ;;  %v10217_v62 = vld [vmem:[%s12792_s2 + $0x8c8] sm:$0xff] }
 0x68d   : > { %6845 = vmatpush.bf16.msrb.mxu3 %v10198_v47 }
 0x68f   : > { %v5652_v57 = vpop.f32.mrf.mxu3  ;;  %7118 = vmatpush.bf16.msra.mxu2 %v10222_v36  ;;  %v10176_v36 = vld [vmem:[%s12792_s2 + $0x780] sm:$0xff] }
 0x690   : > { %v10182_v57 = vld [vmem:[%s12792_s2 + $0x7b0] sm:$0xff] }
 0x691   : > { %v12459_v45 = vpop.f32.mrf.mxu0  ;;  %6663 = vmatpush.bf16.msrb.mxu1 %v10182_v57  ;;  %6846 = vmatpush.bf16.msrb.mxu3 %v10197_v27 }
 0x692   : > { %v12464_v32 = vpop.f32.mrf.mxu1 }
 0x693   : > { %7119 = vmatpush.bf16.msra.mxu2 %v10221_v20  ;;  %v10230_v20 = vld [vmem:[%s12793_s3 + $0x30] sm:$0xff] }
 0x695   : > { %6664 = vmatpush.bf16.msrb.mxu1 %v10181_v18  ;;  %v10212_v18 = vld [vmem:[%s12792_s2 + $0x8a0] sm:$0xff] }
 0x697   : > { %v5915_v31 = vpop.f32.mrf.mxu3  ;;  %7120 = vmatpush.bf16.msra.mxu2 %v10220_v51  ;;  %v10229_v51 = vld [vmem:[%s12793_s3 + $0x28] sm:$0xff] }
 0x698   : > { %v5924_v26 = vadd.f32 %v5915_v31, %v5833_v42 }
 0x699   : > { %v6013_v16 = vpop.f32.mrf.mxu0  ;;  %6665 = vmatpush.bf16.msrb.mxu1 %v10180_v34  ;;  %v10227_v34 = vld [vmem:[%s12793_s3 + $0x18] sm:$0xff] }
 0x69a   : > { %v12475_v53 = vpop.f32.mrf.mxu1  ;;  %v6015_v10 = vadd.f32 %v12451_v48, %v5924_v26  ;;  %v10207_v48 = vld [vmem:[%s12792_s2 + $0x878] sm:$0xff]  ;;  %v12603_v16 = vld [vmem:[%s12796_s6 + $0x3] ss:$0 sm:$0xff] }
 0x69b   : > { %6935 = vmatpush.bf16.msra.mxu0 %v10207_v48  ;;  %7121 = vmatpush.bf16.msra.mxu2 %v10219_v1  ;;  %v10210_v1 = vld [vmem:[%s12792_s2 + $0x890] sm:$0xff] }
 0x69c   : > { %v6106_v2 = vadd.f32 %v12464_v32, %v6015_v10  ;;  %v10193_v10 = vld [vmem:[%s12792_s2 + $0x808] sm:$0xff] }
 0x69f   : > { %v5917_v44 = vpop.f32.mrf.mxu3  ;;  %6936 = vmatpush.bf16.msra.mxu0 %v10206_v54  ;;  %7122 = vmatpush.bf16.msra.mxu2 %v10218_v49  ;;  %v10214_v54 = vld [vmem:[%s12792_s2 + $0x8b0] sm:$0xff] }
 0x6a0   : > { %v5925_v33 = vadd.f32 %v5917_v44, %v5834_v28  ;;  %v10205_v44 = vld [vmem:[%s12792_s2 + $0x868] sm:$0xff] }
 0x6a1   : > { %v12489_v39 = vpop.f32.mrf.mxu0  ;;  %v10201_v28 = vld [vmem:[%s12792_s2 + $0x848] sm:$0xff] }
 0x6a2   : > { %v12500_v41 = vpop.f32.mrf.mxu1  ;;  %v6016_v32 = vadd.f32 %v12455_v56, %v5925_v33  ;;  %v10192_v33 = vld [vmem:[%s12792_s2 + $0x800] sm:$0xff] }
 0x6a3   : > { %6937 = vmatpush.bf16.msra.mxu0 %v10205_v44  ;;  %7123 = vmatpush.bf16.msra.mxu2 %v10217_v62 }
 0x6a4   : > { %v6107_v40 = vadd.f32 %v12475_v53, %v6016_v32  ;;  %v10196_v53 = vld [vmem:[%s12792_s2 + $0x820] sm:$0xff] }
 0x6a5   : > { %6847 = vmatpush.bf16.msrb.mxu3 %v10196_v53  ;;  %v10200_v32 = vld [vmem:[%s12792_s2 + $0x840] sm:$0xff] }
 0x6a7   : > { %v12517_v59 = vpop.f32.mrf.mxu3  ;;  %7124 = vmatpush.bf16.msra.mxu2 %v10216_v60 }
 0x6a8   : > { %v5926_v3 = vadd.f32 %v12517_v59, %v5835_v19  ;;  %v10204_v59 = vld [vmem:[%s12792_s2 + $0x860] sm:$0xff] }
 0x6a9   : > { %v12519_v8 = vpop.f32.mrf.mxu0  ;;  %6938 = vmatpush.bf16.msra.mxu0 %v10204_v59  ;;  %6848 = vmatpush.bf16.msrb.mxu3 %v10195_v6  ;;  %v10209_v59 = vld [vmem:[%s12792_s2 + $0x888] sm:$0xff] }
 0x6aa   : > { %v6104_v30 = vpop.f32.mrf.mxu1  ;;  %v6017_v58 = vadd.f32 %v12459_v45, %v5926_v3 }
 0x6ab   : > { %v10179_v30 = vld [vmem:[%s12792_s2 + $0x798] sm:$0xff] }
 0x6ac   : > { %v6108_v29 = vadd.f32 %v12500_v41, %v6017_v58  ;;  %6666 = vmatpush.bf16.msrb.mxu1 %v10179_v30  ;;  %v10178_v41 = vld [vmem:[%s12792_s2 + $0x790] sm:$0xff] }
 0x6ad   : > { %6939 = vmatpush.bf16.msra.mxu0 %v10203_v13  ;;  %6849 = vmatpush.bf16.msrb.mxu3 %v10194_v35  ;;  %v10226_v58 = vld [vmem:[%s12793_s3 + $0x10] sm:$0xff] }
 0x6af   : > { %v5922_v25 = vpop.f32.mrf.mxu3 }
 0x6b0   : > { %v10202_v25 = vld [vmem:[%s12792_s2 + $0x850] sm:$0xff]  ;;  %6667 = vmatpush.bf16.msrb.mxu1 %v10178_v41 }
 0x6b1   : > { %v12549_v17 = vpop.f32.mrf.mxu0  ;;  %6940 = vmatpush.bf16.msra.mxu0 %v10202_v25  ;;  %6850 = vmatpush.bf16.msrb.mxu3 %v10193_v10 }
 0x6b5   : > { %6941 = vmatpush.bf16.msra.mxu0 %v10201_v28  ;;  %6851 = vmatpush.bf16.msrb.mxu3 %v10192_v33 }
 0x6b7   : > { %v6188_v63 = vpop.f32.mrf.mxu3 }
 0x6b8   : > { %v6197_v61 = vadd.f32 %v6188_v63, %v6106_v2 }
 0x6b9   : > { %v6286_v46 = vpop.f32.mrf.mxu0  ;;  %6942 = vmatpush.bf16.msra.mxu0 %v10200_v32 }
 0x6ba   : > { %v6288_v31 = vadd.f32 %v12489_v39, %v6197_v61 }
 0x6bc   : > { %v6292_v56 = vmul.f32 %v12590_v7, %v6288_v31  ;;  %v10215_v31 = vld [vmem:[%s12792_s2 + $0x8b8] sm:$0xff] }
 0x6be   : > { %v6296_v9 = vadd.f32 %v12603_v16, %v6292_v56  ;;  %v10213_v56 = vld [vmem:[%s12792_s2 + $0x8a8] sm:$0xff] }
 0x6bf   : > { %v6190_v39 = vpop.f32.mrf.mxu3 }
 0x6c0   : > { %v6299_v11 = vmax.f32 %v6296_v9, 0.0  ;;  %v6198_v55 = vadd.f32 %v6190_v39, %v6107_v40  ;;  %v10228_v9 = vld [vmem:[%s12793_s3 + $0x20] sm:$0xff] }
 0x6c2   : > { %v6317_v12 = vmul.f32 %v6305_v52, %v6299_v11  ;;  %v6289_v15 = vadd.f32 %v12519_v8, %v6198_v55  ;;  %v5443_v55 = vpop.f32.mrf.mxu2  ;;  %v10211_v52 = vld [vmem:[%s12792_s2 + $0x898] sm:$0xff] }
 0x6c4   : > { %6320 = vst [vmem:[#allocation7 + $0x7] sm:$0xff] %v6317_v12  ;;  %v6293_v0 = vmul.f32 %v12590_v7, %v6289_v15 }
 0x6c6   : > { %v6297_v45 = vadd.f32 %v12603_v16, %v6293_v0  ;;  %v10225_v0 = vld [vmem:[%s12793_s3 + $0x8] sm:$0xff] }
 0x6c7   : > { %v6193_v8 = vpop.f32.mrf.mxu3 }
 0x6c8   : > { %v6300_v42 = vmax.f32 %v6297_v45, 0.0  ;;  %v6199_v38 = vadd.f32 %v6193_v8, %v6108_v29  ;;  %v10208_v45 = vld [vmem:[%s12792_s2 + $0x880] sm:$0xff] }
 0x6c9   : > { %v10224_v29 = vld [vmem:[%s12793_s3] sm:$0xff] }
 0x6ca   : > { %v6318_v26 = vmul.f32 %v6310_v21, %v6300_v42  ;;  %v6290_v23 = vadd.f32 %v12549_v17, %v6199_v38  ;;  %v10177_v17 = vld [vmem:[%s12792_s2 + $0x788] sm:$0xff]  ;;  %v5445_v49 = vpop.f32.mrf.mxu2 }
 0x6cb   : > { %6668 = vmatpush.bf16.msrb.mxu1 %v10177_v17  ;;  %v6347_v63 = vld [vmem:[#allocation7 + $0x1] sm:$0xff] }
 0x6cc   : > { %6321 = vst [vmem:[#allocation7 + $0xf] sm:$0xff] %v6318_v26  ;;  %v6294_v14 = vmul.f32 %v12590_v7, %v6290_v23  ;;  %v6686_v50 = vpack.c.bf16 %v6318_v26, %v6317_v12  ;;  %v6325_v24 = vld [vmem:[#allocation7] sm:$0xff] }
 0x6cd   : > { %v6501_v37 = vld [vmem:[#allocation7 + $0x2] sm:$0xff] }
 0x6ce   : > { %v6298_v5 = vadd.f32 %v12603_v16, %v6294_v14  ;;  %6761 = vmatmul.bf16.vlgmr.msrb.gmra.mxu2 %v6686_v50  ;;  %v10231_v16 = vld [vmem:[%s12793_s3 + $0x38] sm:$0xff] }
 0x6cf   : > { %v6195_v43 = vpop.f32.mrf.mxu3  ;;  %6669 = vmatpush.bf16.msrb.mxu1 %v10176_v36  ;;  %v6592_v30 = vld [vmem:[#allocation7 + $0x6] sm:$0xff] }
 0x6d0   : > { %v6301_v22 = vmax.f32 %v6298_v5, 0.0  ;;  %v7151_v5 = vpack.c.bf16 %v5445_v49, %v5443_v55 }
 0x6d2   : > { %v6319_v2 = vmul.f32 %v6315_v4, %v6301_v22  ;;  %v5448_v35 = vpop.f32.mrf.mxu2 }
 0x6d3   : > { %v6348_v48 = vld [vmem:[#allocation7 + $0x9] sm:$0xff]  ;;  %v7152_v43 = vpack.c.bf16 %v5448_v35, %v5448_v35 }
 0x6d4   : > { %v12691_v61 = vld [vmem:[#allocation7 + $0x8] sm:$0xff]  ;;  %6322 = vst [vmem:[#allocation7 + $0x17] sm:$0xff] %v6319_v2  ;;  %v6350_v46 = vpack.c.bf16 %v6348_v48, %v6347_v63  ;;  %v6687_v19 = vpack.c.bf16 %v6319_v2, %v6319_v2 }
 0x6d5   : > { %v6502_v7 = vld [vmem:[#allocation7 + $0xa] sm:$0xff]  ;;  %v6328_v57 = vpack.c.bf16 %v12691_v61, %v6325_v24 }
 0x6d6   : > { %v6504_v47 = vpack.c.bf16 %v6502_v7, %v6501_v37  ;;  %6425 = vmatmul.bf16.vlgmr.msra.gmra.mxu1 %v6350_v46  ;;  %v6593_v12 = vld [vmem:[#allocation7 + $0xe] sm:$0xff]  ;;  %v10285_v35 = vld [vmem:[%s12795_s5 + $0x4] ss:$0 sm:$0xff] }
 0x6d7   : > { %6491 = vmatmul.bf16.vlgmr.msra.gmra.mxu3 %v6328_v57  ;;  %7026 = vmatpush.bf16.msra.mxu1 %v10215_v31  ;;  %v6595_v6 = vpack.c.bf16 %v6593_v12, %v6592_v30  ;;  %v6865_v42 = vld [vmem:[#allocation7 + $0xc] sm:$0xff] }
 0x6d8   : > { %6579 = vmatmul.bf16.vlgmr.msrb.gmra.mxu0 %v6504_v47  ;;  %7217 = vmatpush.bf16.msra.mxu3 %v10231_v16  ;;  %v6956_v17 = vld [vmem:[#allocation7 + $0xd] sm:$0xff] }
 0x6da   : > { %v5450_v50 = vpop.f32.mrf.mxu2 }
 0x6db   : > { %7027 = vmatpush.bf16.msra.mxu1 %v10214_v54  ;;  %v6349_v27 = vld [vmem:[#allocation7 + $0x11] sm:$0xff]  ;;  %v7049_v21 = vld [vmem:[#allocation7 + $0x1e] sm:$0xff] }
 0x6dc   : > { %7218 = vmatpush.bf16.msra.mxu3 %v10230_v20  ;;  %v6327_v3 = vld [vmem:[#allocation7 + $0x10] sm:$0xff]  ;;  %v6351_v44 = vpack.c.bf16 %v6349_v27, %v6349_v27  ;;  %v7051_v41 = vpack.c.bf16 %v7049_v21, %v7049_v21  ;;  %v6776_v26 = vld [vmem:[#allocation7 + $0x18] sm:$0xff] }
 0x6dd   : > { %v6503_v40 = vld [vmem:[#allocation7 + $0x12] sm:$0xff]  ;;  %v6329_v39 = vpack.c.bf16 %v6327_v3, %v6327_v3  ;;  %v6777_v13 = vpack.c.bf16 %v6327_v3, %v12691_v61  ;;  %v6867_v23 = vld [vmem:[#allocation7 + $0x1c] sm:$0xff]  ;;  %v6778_v62 = vpack.c.bf16 %v6776_v26, %v6776_v26 }
 0x6de   : > { %6766 = vmatmul.bf16.gmra.mxu2 %v6687_v19  ;;  %v6505_v11 = vpack.c.bf16 %v6503_v40, %v6503_v40  ;;  %v7048_v53 = vld [vmem:[#allocation7 + $0x16] sm:$0xff]  ;;  %v6869_v14 = vpack.c.bf16 %v6867_v23, %v6867_v23 }
 0x6df   : > { %7028 = vmatpush.bf16.msra.mxu1 %v10213_v56  ;;  %v7050_v15 = vpack.c.bf16 %v7048_v53, %v6593_v12  ;;  %v6866_v8 = vld [vmem:[#allocation7 + $0x14] sm:$0xff]  ;;  %v6596_v25 = vpack.c.bf16 %v7048_v53, %v7048_v53  ;;  %v6958_v28 = vld [vmem:[#allocation7 + $0x1d] sm:$0xff] }
 0x6e0   : > { %7219 = vmatpush.bf16.msra.mxu3 %v10229_v51  ;;  %v6868_v38 = vpack.c.bf16 %v6866_v8, %v6865_v42  ;;  %v6957_v60 = vld [vmem:[#allocation7 + $0x15] sm:$0xff]  ;;  %v6960_v22 = vpack.c.bf16 %v6958_v28, %v6958_v28 }
 0x6e1   : > { %v6959_v10 = vpack.c.bf16 %v6957_v60, %v6956_v17  ;;  %v10286_v17 = vld [vmem:[%s12796_s6 + $0x4] ss:$0 sm:$0xff] }
 0x6e3   : > { %7029 = vmatpush.bf16.msra.mxu1 %v10212_v18 }
 0x6e4   : > { %7220 = vmatpush.bf16.msra.mxu3 %v10228_v9 }
 0x6e6   : > { %6430 = vmatmul.bf16.gmra.mxu1 %v6351_v44 }
 0x6e7   : > { %6496 = vmatmul.bf16.gmra.mxu3 %v6329_v39  ;;  %7030 = vmatpush.bf16.msra.mxu1 %v10211_v52 }
 0x6e8   : > { %6584 = vmatmul.bf16.gmra.mxu0 %v6505_v11  ;;  %7221 = vmatpush.bf16.msra.mxu3 %v10227_v34 }
 0x6eb   : > { %7031 = vmatpush.bf16.msra.mxu1 %v10210_v1 }
 0x6ec   : > { %7222 = vmatpush.bf16.msra.mxu3 %v10226_v58 }
 0x6ee   : > { %7125 = vmatmul.bf16.vlgmr.msra.gmra.mxu2 %v7050_v15 }
 0x6ef   : > { %7032 = vmatpush.bf16.msra.mxu1 %v10209_v59 }
 0x6f0   : > { %7223 = vmatpush.bf16.msra.mxu3 %v10225_v0 }
 0x6f3   : > { %7033 = vmatpush.bf16.msra.mxu1 %v10208_v45 }
 0x6f4   : > { %7224 = vmatpush.bf16.msra.mxu3 %v10224_v29 }
 0x6f6   : > { %6670 = vmatmul.bf16.vlgmr.msrb.gmra.mxu1 %v6595_v6 }
 0x6f7   : > { %6852 = vmatmul.bf16.vlgmr.msrb.gmra.mxu3 %v6777_v13 }
 0x6f8   : > { %6943 = vmatmul.bf16.vlgmr.msra.gmra.mxu0 %v6868_v38  ;;  %v10287_v38 = vld [vmem:[%s12795_s5 + $0x5] ss:$0 sm:$0xff] }
 0x6fe   : > { %7130 = vmatmul.bf16.gmra.mxu2 %v7051_v41 }
 0x706   : > { %6675 = vmatmul.bf16.gmra.mxu1 %v6596_v25  ;;  %v10288_v25 = vld [vmem:[%s12796_s6 + $0x5] ss:$0 sm:$0xff] }
 0x707   : > { %6857 = vmatmul.bf16.gmra.mxu3 %v6778_v62 }
 0x708   : > { %6948 = vmatmul.bf16.gmra.mxu0 %v6869_v14 }
 0x716   : > { %7034 = vmatmul.bf16.vlgmr.msra.gmra.mxu1 %v6959_v10 }
 0x717   : > { %7225 = vmatmul.bf16.vlgmr.msra.gmra.mxu3 %v7151_v5 }
 0x726   : > { %7039 = vmatmul.bf16.gmra.mxu1 %v6960_v22 }
 0x727   : > { %7230 = vmatmul.bf16.gmra.mxu3 %v7152_v43 }
 0x751   : > { %v6762_v4 = vpop.f32.mrf.mxu2 }
 0x753   : > { %v6426_v36 = vpop.f32.mrf.mxu1 }
 0x755   : > { %v6580_v33 = vpop.f32.mrf.mxu0 }
 0x759   : > { %v6764_v63 = vpop.f32.mrf.mxu2 }
 0x75a   : > { %v6492_v2 = vpop.f32.mrf.mxu3 }
 0x75b   : > { %v6493_v24 = vadd.f32 %v6492_v2, %v6426_v36  ;;  %v6428_v37 = vpop.f32.mrf.mxu1 }
 0x75d   : > { %v6582_v48 = vpop.f32.mrf.mxu0  ;;  %v6589_v61 = vadd.f32 %v6580_v33, %v6493_v24 }
 0x761   : > { %v6767_v46 = vpop.f32.mrf.mxu2 }
 0x762   : > { %v6494_v7 = vpop.f32.mrf.mxu3 }
 0x763   : > { %v6431_v57 = vpop.f32.mrf.mxu1  ;;  %v6495_v1 = vadd.f32 %v6494_v7, %v6428_v37 }
 0x765   : > { %v6585_v47 = vpop.f32.mrf.mxu0  ;;  %v6590_v59 = vadd.f32 %v6582_v48, %v6495_v1 }
 0x769   : > { %v6769_v31 = vpop.f32.mrf.mxu2 }
 0x76a   : > { %v6497_v32 = vpop.f32.mrf.mxu3 }
 0x76b   : > { %v6433_v16 = vpop.f32.mrf.mxu1  ;;  %v6498_v45 = vadd.f32 %v6497_v32, %v6431_v57 }
 0x76c   : > { %v7255_v16 = vpop.permute.xlu2 %7254 }
 0x76d   : > { %v6587_v54 = vpop.f32.mrf.mxu0  ;;  %v6591_v42 = vadd.f32 %v6585_v47, %v6498_v45  ;;  %v7260_v47 = vpop.permute.xlu0 %7259 }
 0x771   : > { %v7126_v19 = vpop.f32.mrf.mxu2 }
 0x772   : > { %v6499_v20 = vpop.f32.mrf.mxu3 }
 0x773   : > { %v6671_v56 = vpop.f32.mrf.mxu1 }
 0x774   : > { %v6680_v51 = vadd.f32 %v6671_v56, %v6589_v61 }
 0x775   : > { %v6944_v18 = vpop.f32.mrf.mxu0 }
 0x776   : > { %v6771_v27 = vadd.f32 %v6762_v4, %v6680_v51 }
 0x779   : > { %v7128_v9 = vpop.f32.mrf.mxu2 }
 0x77a   : > { %v6853_v3 = vpop.f32.mrf.mxu3 }
 0x77b   : > { %v6673_v40 = vpop.f32.mrf.mxu1  ;;  %v6862_v15 = vadd.f32 %v6853_v3, %v6771_v27 }
 0x77c   : > { %v6681_v0 = vadd.f32 %v6673_v40, %v6590_v59 }
 0x77d   : > { %v6946_v44 = vpop.f32.mrf.mxu0  ;;  %v6953_v29 = vadd.f32 %v6944_v18, %v6862_v15 }
 0x77e   : > { %v6772_v30 = vadd.f32 %v6764_v63, %v6681_v0 }
 0x781   : > { %v7131_v11 = vpop.f32.mrf.mxu2 }
 0x782   : > { %v6855_v39 = vpop.f32.mrf.mxu3 }
 0x783   : > { %v6676_v55 = vpop.f32.mrf.mxu1  ;;  %v6863_v13 = vadd.f32 %v6855_v39, %v6772_v30 }
 0x784   : > { %v6682_v21 = vadd.f32 %v6676_v55, %v6591_v42 }
 0x785   : > { %v6949_v52 = vpop.f32.mrf.mxu0  ;;  %v6954_v62 = vadd.f32 %v6946_v44, %v6863_v13  ;;  %v7265_v44 = vpop.permute.xlu1 %7264 }
 0x786   : > { %v6773_v50 = vadd.f32 %v6767_v46, %v6682_v21 }
 0x789   : > { %v7133_v53 = vpop.f32.mrf.mxu2 }
 0x78a   : > { %v6858_v34 = vpop.f32.mrf.mxu3 }
 0x78b   : > { %v6678_v58 = vpop.f32.mrf.mxu1  ;;  %v6864_v5 = vadd.f32 %v6858_v34, %v6773_v50 }
 0x78d   : > { %v6951_v12 = vpop.f32.mrf.mxu0  ;;  %v6955_v63 = vadd.f32 %v6949_v52, %v6864_v5 }
 0x792   : > { %v6860_v49 = vpop.f32.mrf.mxu3 }
 0x793   : > { %v7035_v8 = vpop.f32.mrf.mxu1 }
 0x794   : > { %v7044_v6 = vadd.f32 %v7035_v8, %v6953_v29 }
 0x796   : > { %v7135_v41 = vadd.f32 %v7126_v19, %v7044_v6 }
 0x798   : > { %v7139_v60 = vmul.f32 %v10285_v35, %v7135_v41 }
 0x79a   : > { %v7226_v26 = vpop.f32.mrf.mxu3  ;;  %v7143_v22 = vadd.f32 %v10286_v17, %v7139_v60 }
 0x79b   : > { %v7236_v23 = vmul.f32 %v10287_v38, %v7226_v26  ;;  %v7037_v14 = vpop.f32.mrf.mxu1 }
 0x79c   : > { %v7045_v10 = vadd.f32 %v7037_v14, %v6954_v62 }
 0x79d   : > { %v7240_v28 = vadd.f32 %v10288_v25, %v7236_v23 }
 0x79e   : > { %v7136_v43 = vadd.f32 %v7128_v9, %v7045_v10 }
 0x79f   : > { %v7243_v33 = vadd.f32 %v7240_v28, %v7143_v22 }
 0x7a0   : > { %v7140_v4 = vmul.f32 %v10285_v35, %v7136_v43 }
 0x7a1   : > { %v7246_v7 = vmax.f32 %v7243_v33, 0.0 }
 0x7a2   : > { %v7228_v36 = vpop.f32.mrf.mxu3  ;;  %v7144_v37 = vadd.f32 %v10286_v17, %v7140_v4 }
 0x7a3   : > { %v7237_v2 = vmul.f32 %v10287_v38, %v7228_v36  ;;  %v7040_v24 = vpop.f32.mrf.mxu1  ;;  %v7267_v20 = vmul.f32 %v7255_v16, %v7246_v7 }
 0x7a4   : > { %v7046_v61 = vadd.f32 %v7040_v24, %v6955_v63 }
 0x7a5   : > { %v7241_v48 = vadd.f32 %v10288_v25, %v7237_v2 }
 0x7a6   : > { %v7137_v57 = vadd.f32 %v7131_v11, %v7046_v61 }
 0x7a7   : > { %v7244_v46 = vadd.f32 %v7241_v48, %v7144_v37 }
 0x7a8   : > { %v7141_v31 = vmul.f32 %v10285_v35, %v7137_v57 }
 0x7a9   : > { %v7247_v32 = vmax.f32 %v7244_v46, 0.0 }
 0x7aa   : > { %v7231_v54 = vpop.f32.mrf.mxu3  ;;  %v7145_v27 = vadd.f32 %v10286_v17, %v7141_v31 }
 0x7ab   : > { %v7268_v19 = vmul.f32 %v7260_v47, %v7247_v32  ;;  %v7238_v56 = vmul.f32 %v10287_v38, %v7231_v54  ;;  %v7042_v51 = vpop.f32.mrf.mxu1 }
 0x7ad   : > { %v7270_v18 = vadd.f32 %v7268_v19, %v7267_v20  ;;  %v7242_v3 = vadd.f32 %v10288_v25, %v7238_v56 }
 0x7af   : > { %v7245_v9 = vadd.f32 %v7242_v3, %v7145_v27 }
 0x7b1   : > { %v7248_v40 = vmax.f32 %v7245_v9, 0.0 }
 0x7b2   : > { %v7233_v39 = vpop.f32.mrf.mxu3 }
 0x7b3   : > { %v7269_v55 = vmul.f32 %v7265_v44, %v7248_v40 }
 0x7b5   : > { %v7271_v11 = vadd.f32 %v7270_v18, %v7269_v55 }
 0x7b7   : > { %v7272_v52 = vrot.slane %v7271_v11, 4 }
 0x7b9   : > { %v7273_v34 = vadd.f32 %v7272_v52, %v7271_v11 }
 0x7bb   : > { %v7274_v53 = vrot.slane %v7273_v34, 2 }
 0x7bd   : > { %v7275_v1 = vadd.f32 %v7274_v53, %v7273_v34 }
 0x7bf   : > { %v7276_v58 = vrot.slane %v7275_v1, 1 }
 0x7c1   : > { %v7277_v12 = vadd.f32 %v7276_v58, %v7275_v1 }
 0x7c3   : > { %7278 = vst [vmem:[%s351_s21] sm:$0x1] %v7277_v12 }
 0x7c4   : > { %10320 = shalt.err (!%p10317_p3)
}
 0x7c5   : > { %10233 = dma.vmem_to_hbm [thread:$0]  (%p10452_p5), %s7291_s12, 16, %s7293_s20, %s7280_s18  }
 0x7c6 PF: > { %p10239_p4 = scmp.ge.s32.totalorder %s10355_s16, 2  ;;  %s7304_s28 = sand.u32 1, %s10343_s13  }
 0x7c7   : > { %s7305_s11 = scalar_lea.sflag [#allocation9], %s7304_s28 }
 0x7c8   : > { %p10236_p7 = pnand %p10239_p4, %p10456_p6 }
 0x7ca   : > { %p10237_p8 = pneg %p10236_p7 }
 0x7cc   : > { %10338 = dma.done.wait (%p10237_p8), %s7305_s11, 16  }
 0x7cd   : > { %10340 = vsyncadd (%p10237_p8), %s7305_s11, 4294967280  ;;  %p20_p9 = scmp.ge.s32.totalorder %s10439_s19, 4   ;;  %s12832_s13 = smov %s10347_s14 }
 0x7ce   : > { %s12833_s14 = smov %s10351_s15  ;;  %s12834_s15 = smov %s10450_s22 }
 0x7cf   : > { %s12835_s16 = smov %s10439_s19  ;;  %22 = sbr.rel (!%p20_p9) target bundleno = 5 (0x5), region = 136 }
 0x7d4   :  { %7310 = vsyncpa [#allocation9], 1 }
 0x7d5   :  { %7312 = vsyncpa [#allocation9 + $0x1], 1 }

</bundles_post_ra>
